<compile_context>
chip_gen: v5e
topology: v5e:2x2
jax: 0.10.0
libtpu: 0.0.40
codegen_flags: <defaults>
</compile_context>

<pallas_src>
import functools

import jax
import jax.numpy as jnp
from jax.experimental import pallas as pl
from jax.experimental.pallas import tpu as pltpu

EXPANSION = 4


def _round_up(v, m):
    return -(-v // m) * m


def _vmem_limit_bytes():
    """Generation-aware scoped-VMEM budget: ~75% of capacity, capped at 100MiB."""
    cap = 64 * 1024 * 1024          # conservative fallback (v7x-sized)
    try:
        info = pltpu.get_tpu_info()
        cap = int(getattr(info, "vmem_capacity_bytes", cap) or cap)
    except Exception:
        pass
    return int(min(100 * 1024 * 1024, (cap * 3) // 4))


# ----------------------------- fused kernel bodies -------------------------- #

def _conv1_to_conv2(x_ref, w1_ref, b1_ref, w2_ref, b2_ref, tp_ref,
                    *, H, W, Ho, Wo, stride):
    """conv1(1x1, scale folded)+bias+relu -> pad(1) in VMEM -> strided 3x3
    conv2 (3 dots of K=3P) + bias + relu.  Returns (Ho*Wo, P) f32."""
    P = w1_ref.shape[1]
    Hp, Wp, _ = tp_ref.shape
    zdt = tp_ref.dtype

    # ---- conv1 (1x1) + bn1 (folded) + relu ----
    t = jnp.dot(x_ref[0], w1_ref[...], preferred_element_type=jnp.float32)
    t = jnp.maximum(t + b1_ref[...], 0.0)

    # ---- pad=1 halo: zero only the border (interior fully overwritten).
    # Done every step (cheap, O(border)) so it is correct under megacore
    # "parallel" splitting of the batch grid axis.
    tp_ref[0:1, :, :] = jnp.zeros((1, Wp, P), zdt)
    tp_ref[H + 1:Hp, :, :] = jnp.zeros((Hp - H - 1, Wp, P), zdt)
    tp_ref[:, 0:1, :] = jnp.zeros((Hp, 1, P), zdt)
    tp_ref[:, W + 1:Wp, :] = jnp.zeros((Hp, Wp - W - 1, P), zdt)
    tp_ref[1:H + 1, 1:W + 1, :] = t.reshape(H, W, P).astype(zdt)

    # ---- 3x3 conv at the requested stride, K=3P per ky (weights folded) ----
    if stride == 1:
        def tap(ky, kx):
            return tp_ref[ky:ky + Ho, kx:kx + Wo, :]
    else:
        # Parity view: tap (ky,kx) of a stride-s conv is a static slice of the
        # (Hp//s, s, Wp//s, s, P) reshape (no stride-1-then-subsample waste).
        tp5 = tp_ref[...].reshape(Hp // stride, stride, Wp // stride, stride, P)

        def tap(ky, kx):
            return tp5[ky // stride:ky // stride + Ho, ky % stride,
                       kx // stride:kx // stride + Wo, kx % stride, :]

    acc = None
    for ky in range(3):
        patch = jnp.concatenate([tap(ky, 0), tap(ky, 1), tap(ky, 2)], axis=-1)
        d = jnp.dot(patch.reshape(Ho * Wo, 3 * P), w2_ref[ky],
                    preferred_element_type=jnp.float32)
        acc = d if acc is None else acc + d
    return jnp.maximum(acc + b2_ref[...], 0.0)          # (Ho*Wo, P) f32


def _bottleneck_proj_kernel(x_ref, w1_ref, b1_ref, w2_ref, b2_ref,
                            w3sc_ref, b3sc_ref, o_ref, tp_ref,
                            *, H, W, Ho, Wo, stride):
    """Projection-shortcut Bottleneck: relu([a2 | x_s] @ [[w3*s3],[wsc*ssc]]
    + (b3+bsc)) — conv3 and the shortcut conv share a single MXU pass."""
    Cin = x_ref.shape[2]
    a2 = _conv1_to_conv2(x_ref, w1_ref, b1_ref, w2_ref, b2_ref, tp_ref,
                         H=H, W=W, Ho=Ho, Wo=Wo, stride=stride)
    a2c = a2.astype(w3sc_ref.dtype)

    # Downsampled shortcut built from the x block already resident in VMEM.
    if stride == 1:
        xs = x_ref[0]                                        # (H*W, Cin)
    else:
        xs = x_ref[0].reshape(Ho, stride, Wo, stride, Cin)[:, 0, :, 0, :]
        xs = xs.reshape(Ho * Wo, Cin)

    fused_in = jnp.concatenate([a2c, xs], axis=-1)           # (Ho*Wo, P+Cin)
    out = jnp.dot(fused_in, w3sc_ref[...], preferred_element_type=jnp.float32)
    o_ref[0] = jnp.maximum(out + b3sc_ref[...], 0.0).astype(o_ref.dtype)


def _bottleneck_ident_kernel(x_ref, w1_ref, b1_ref, w2_ref, b2_ref,
                             w3_ref, b3_ref, o_ref, tp_ref, *, H, W):
    """Identity-shortcut Bottleneck: relu(a2 @ (w3*s3) + b3 + x)."""
    a2 = _conv1_to_conv2(x_ref, w1_ref, b1_ref, w2_ref, b2_ref, tp_ref,
                         H=H, W=W, Ho=H, Wo=W, stride=1)
    main = jnp.dot(a2.astype(w3_ref.dtype), w3_ref[...],
                   preferred_element_type=jnp.float32)
    main = main + b3_ref[...] + x_ref[0].astype(jnp.float32)
    o_ref[0] = jnp.maximum(main, 0.0).astype(o_ref.dtype)


# ------------------------------ Bottleneck forward -------------------------- #

def bottleneck_forward(x_nchw, params, *, stride=1, compute_dtype=jnp.bfloat16):
    """Pallas implementation of Bottleneck.forward.  Input/output are NCHW."""
    x = jnp.transpose(x_nchw, (0, 2, 3, 1)).astype(compute_dtype)   # -> NHWC
    N, H, W, Cin = x.shape
    P = params["w1"].shape[1]
    Cout = EXPANSION * P
    Ho = (H - 1) // stride + 1
    Wo = (W - 1) // stride + 1
    if stride != 1:
        assert H % stride == 0 and W % stride == 0, (
            "stride must divide H and W")                  # TODO(synk): general case

    # Fold BN scales into the conv weights (f32 math, then cast once).
    w1f = (params["w1"] * params["s1"][None, :]).astype(compute_dtype)
    w2s = params["w2"] * params["s2"][None, None, :]        # (9, P, P)
    w2k = w2s.reshape(3, 3 * P, P).astype(compute_dtype)    # per-ky K=3P weights
    w3f = params["w3"] * params["s3"][None, :]               # (P, Cout), f32
    b1 = params["b1"].reshape(1, P).astype(jnp.float32)
    b2 = params["b2"].reshape(1, P).astype(jnp.float32)

    x_flat = x.reshape(N, H * W, Cin)                        # lane-dense HBM view
    Hp = _round_up(H + 2, stride)
    Wp = _round_up(W + 2, stride)

    proj = (stride != 1) or (Cin != Cout)
    if proj:
        wscf = params["wsc"] * params["ssc"][None, :]        # (Cin, Cout), f32
        w3sc = jnp.concatenate([w3f, wscf], axis=0).astype(compute_dtype)
        b3sc = (params["b3"] + params["bsc"]).reshape(1, Cout).astype(jnp.float32)
        kernel = functools.partial(_bottleneck_proj_kernel,
                                   H=H, W=W, Ho=Ho, Wo=Wo, stride=stride)
        args = (x_flat, w1f, b1, w2k, b2, w3sc, b3sc)
        in_specs = [
            pl.BlockSpec((1, H * W, Cin), lambda n: (n, 0, 0)),
            pl.BlockSpec((Cin, P), lambda n: (0, 0)),
            pl.BlockSpec((1, P), lambda n: (0, 0)),
            pl.BlockSpec((3, 3 * P, P), lambda n: (0, 0, 0)),
            pl.BlockSpec((1, P), lambda n: (0, 0)),
            pl.BlockSpec((P + Cin, Cout), lambda n: (0, 0)),
            pl.BlockSpec((1, Cout), lambda n: (0, 0)),
        ]
        flops = (2 * N * H * W * Cin * P + 2 * N * Ho * Wo * 9 * P * P
                 + 2 * N * Ho * Wo * (P + Cin) * Cout)
    else:
        w3c = w3f.astype(compute_dtype)
        b3 = params["b3"].reshape(1, Cout).astype(jnp.float32)
        kernel = functools.partial(_bottleneck_ident_kernel, H=H, W=W)
        args = (x_flat, w1f, b1, w2k, b2, w3c, b3)
        in_specs = [
            pl.BlockSpec((1, H * W, Cin), lambda n: (n, 0, 0)),
            pl.BlockSpec((Cin, P), lambda n: (0, 0)),
            pl.BlockSpec((1, P), lambda n: (0, 0)),
            pl.BlockSpec((3, 3 * P, P), lambda n: (0, 0, 0)),
            pl.BlockSpec((1, P), lambda n: (0, 0)),
            pl.BlockSpec((P, Cout), lambda n: (0, 0)),
            pl.BlockSpec((1, Cout), lambda n: (0, 0)),
        ]
        flops = (2 * N * H * W * Cin * P + 2 * N * Ho * Wo * 9 * P * P
                 + 2 * N * Ho * Wo * P * Cout)

    out_bytes = N * Ho * Wo * Cout * jnp.dtype(compute_dtype).itemsize
    bytes_accessed = (sum(int(a.size) * a.dtype.itemsize for a in args)
                      + out_bytes)

    y_flat = pl.pallas_call(
        kernel,
        out_shape=jax.ShapeDtypeStruct((N, Ho * Wo, Cout), compute_dtype),
        grid=(N,),
        in_specs=in_specs,
        out_specs=pl.BlockSpec((1, Ho * Wo, Cout), lambda n: (n, 0, 0)),
        scratch_shapes=[pltpu.VMEM((Hp, Wp, P), compute_dtype)],
        compiler_params=pltpu.CompilerParams(
            dimension_semantics=("parallel",),
            vmem_limit_bytes=_vmem_limit_bytes()),
        cost_estimate=pl.CostEstimate(flops=int(flops), transcendentals=0,
                                      bytes_accessed=int(bytes_accessed)),
    )(*args)

    y = y_flat.reshape(N, Ho, Wo, Cout)
    return jnp.transpose(y, (0, 3, 1, 2)).astype(x_nchw.dtype)   # NHWC -> NCHW


# ------------------------------ pure-JAX reference --------------------------- #

def bottleneck_ref(x_nchw, params, *, stride=1):
    x = jnp.transpose(x_nchw, (0, 2, 3, 1))
    Cin = x.shape[-1]
    planes = params["w1"].shape[1]
    Cout = EXPANSION * planes

    def conv(x, w_hwio, strides, padding):
        return jax.lax.conv_general_dilated(
            x, w_hwio, window_strides=strides, padding=padding,
            dimension_numbers=("NHWC", "HWIO", "NHWC"))

    o = conv(x, params["w1"].reshape(1, 1, Cin, planes), (1, 1), "VALID")
    o = jnp.maximum(o * params["s1"] + params["b1"], 0.0)
    o = conv(o, params["w2"].reshape(3, 3, planes, planes), (stride, stride),
             ((1, 1), (1, 1)))
    o = jnp.maximum(o * params["s2"] + params["b2"], 0.0)
    o = conv(o, params["w3"].reshape(1, 1, planes, Cout), (1, 1), "VALID")
    o = o * params["s3"] + params["b3"]
    if stride != 1 or Cin != Cout:
        sc = conv(x, params["wsc"].reshape(1, 1, Cin, Cout), (stride, stride),
                  "VALID")
        sc = sc * params["ssc"] + params["bsc"]
    else:
        sc = x
    o = jnp.maximum(o + sc, 0.0)
    return jnp.transpose(o, (0, 3, 1, 2))


# ------------------------------ param init ---------------------------------- #

def make_params(key, in_planes, planes):
    Cout = EXPANSION * planes
    eps = 1e-5
    ks = jax.random.split(key, 16)

    def conv_w(k, cin, cout, ksz):
        fan_in = cin * ksz * ksz
        shape = (cin, cout) if ksz == 1 else (ksz * ksz, cin, cout)
        return jax.random.normal(k, shape, jnp.float32) / jnp.sqrt(fan_in)

    def bn(k, c):
        k1, k2, k3, k4 = jax.random.split(k, 4)
        gamma = 1.0 + 0.1 * jax.random.normal(k1, (c,), jnp.float32)
        beta = 0.1 * jax.random.normal(k2, (c,), jnp.float32)
        mean = 0.1 * jax.random.normal(k3, (c,), jnp.float32)
        var = 1.0 + 0.1 * jnp.abs(jax.random.normal(k4, (c,), jnp.float32))
        scale = gamma / jnp.sqrt(var + eps)
        bias = beta - mean * scale
        return scale, bias

    p = {}
    p["w1"] = conv_w(ks[0], in_planes, planes, 1)
    p["s1"], p["b1"] = bn(ks[1], planes)
    p["w2"] = conv_w(ks[2], planes, planes, 3)
    p["s2"], p["b2"] = bn(ks[3], planes)
    p["w3"] = conv_w(ks[4], planes, Cout, 1)
    p["s3"], p["b3"] = bn(ks[5], Cout)
    p["wsc"] = conv_w(ks[6], in_planes, Cout, 1)
    p["ssc"], p["bsc"] = bn(ks[7], Cout)
    return p


# ------------------------------ main ----------------------------------------- #

if __name__ == "__main__":
    key = jax.random.PRNGKey(0)
    kx, kp = jax.random.split(key)

    # (in_planes, planes, stride): projection / strided-conv / identity paths.
    configs = [(4, 4, 1), (4, 4, 2), (16, 4, 1)]

    for in_planes, planes, stride in configs:
        params = make_params(jax.random.fold_in(kp, 100 * in_planes + stride),
                             in_planes, planes)
        x = jax.random.normal(jax.random.fold_in(kx, in_planes),
                              (2, in_planes, 16, 16), jnp.float32)   # NCHW
        y_ref = jax.block_until_ready(bottleneck_ref(x, params, stride=stride))
        scale = 1.0 + float(jnp.max(jnp.abs(y_ref)))

        for dtype, rtol in ((jnp.float32, 2e-3), (jnp.bfloat16, 6e-2)):
            y = bottleneck_forward(x, params, stride=stride,
                                   compute_dtype=dtype)
            y = jax.block_until_ready(y).astype(jnp.float32)
            assert y.shape == y_ref.shape, (y.shape, y_ref.shape)
            err = float(jnp.max(jnp.abs(y - y_ref)))
            assert err < rtol * scale, (
                f"in={in_planes} stride={stride} dtype={dtype.__name__}: "
                f"max abs err {err} (tol {rtol * scale})")

    print("KERNEL_OK")
</pallas_src>

<mosaic_0001>
module attributes {stable_mosaic.version = 11 : i64} {
  func.func @_bottleneck_proj_kernel(%arg0: i32, %arg1: memref<1x256x4xf32, #tpu.memory_space<vmem>>, %arg2: memref<4x4xf32, #tpu.memory_space<vmem>>, %arg3: memref<1x4xf32, #tpu.memory_space<vmem>>, %arg4: memref<3x12x4xf32, #tpu.memory_space<vmem>>, %arg5: memref<1x4xf32, #tpu.memory_space<vmem>>, %arg6: memref<8x16xf32, #tpu.memory_space<vmem>>, %arg7: memref<1x16xf32, #tpu.memory_space<vmem>>, %arg8: memref<1x256x16xf32, #tpu.memory_space<vmem>>, %arg9: memref<18x18x4xf32, #tpu.memory_space<vmem>>) attributes {dimension_semantics = [#tpu.dimension_semantics<parallel>], iteration_bounds = array<i64: 2>, scalar_prefetch = 0 : i64, scratch_operands = 1 : i64, tpu.core_type = #tpu.core_type<tc>, window_params = [{transform_indices = @transform_0, window_bounds = array<i64: 1, 256, 4>}, {pipeline_mode = #tpu.pipeline_mode<synchronous>, transform_indices = @transform_1, window_bounds = array<i64: 4, 4>}, {pipeline_mode = #tpu.pipeline_mode<synchronous>, transform_indices = @transform_2, window_bounds = array<i64: 1, 4>}, {pipeline_mode = #tpu.pipeline_mode<synchronous>, transform_indices = @transform_3, window_bounds = array<i64: 3, 12, 4>}, {pipeline_mode = #tpu.pipeline_mode<synchronous>, transform_indices = @transform_4, window_bounds = array<i64: 1, 4>}, {pipeline_mode = #tpu.pipeline_mode<synchronous>, transform_indices = @transform_5, window_bounds = array<i64: 8, 16>}, {pipeline_mode = #tpu.pipeline_mode<synchronous>, transform_indices = @transform_6, window_bounds = array<i64: 1, 16>}, {transform_indices = @transform_7, window_bounds = array<i64: 1, 256, 16>}]} {
    %c0 = arith.constant 0 : index
    %c0_0 = arith.constant 0 : index
    %c0_1 = arith.constant 0 : index
    %0 = vector.load %arg1[%c0, %c0_0, %c0_1] : memref<1x256x4xf32, #tpu.memory_space<vmem>>, vector<1x256x4xf32>
    %1 = vector.shape_cast %0 : vector<1x256x4xf32> to vector<256x4xf32>
    %c0_2 = arith.constant 0 : index
    %c0_3 = arith.constant 0 : index
    %2 = vector.load %arg2[%c0_2, %c0_3] : memref<4x4xf32, #tpu.memory_space<vmem>>, vector<4x4xf32>
    %cst = arith.constant dense<0.000000e+00> : vector<256x4xf32>
    %3 = tpu.matmul %1, %2, %cst {dimension_numbers = #tpu.dot_dimension_numbers<[1], [0], [0], [1], [0, 0, 1, 1], [], []>} : vector<256x4xf32>, vector<4x4xf32>, vector<256x4xf32> -> vector<256x4xf32>
    %c0_4 = arith.constant 0 : index
    %c0_5 = arith.constant 0 : index
    %4 = vector.load %arg3[%c0_4, %c0_5] : memref<1x4xf32, #tpu.memory_space<vmem>>, vector<1x4xf32>
    %5 = vector.broadcast %4 : vector<1x4xf32> to vector<256x4xf32>
    %6 = arith.addf %3, %5 : vector<256x4xf32>
    %cst_6 = arith.constant 0.000000e+00 : f32
    %7 = vector.broadcast %cst_6 : f32 to vector<256x4xf32>
    %8 = arith.maximumf %6, %7 : vector<256x4xf32>
    %cst_7 = arith.constant 0.000000e+00 : f32
    %9 = vector.broadcast %cst_7 : f32 to vector<1x18x4xf32>
    %c0_8 = arith.constant 0 : index
    %c0_9 = arith.constant 0 : index
    %c0_10 = arith.constant 0 : index
    %10 = vector.load %arg9[%c0_8, %c0_9, %c0_10] : memref<18x18x4xf32, #tpu.memory_space<vmem>>, vector<1x18x4xf32>
    tpu.vector_store %arg9[%c0_8, %c0_9, %c0_10], %9 {strides = array<i32>} : memref<18x18x4xf32, #tpu.memory_space<vmem>>, vector<1x18x4xf32>,
    %cst_11 = arith.constant 0.000000e+00 : f32
    %11 = vector.broadcast %cst_11 : f32 to vector<1x18x4xf32>
    %c17 = arith.constant 17 : index
    %c0_12 = arith.constant 0 : index
    %c0_13 = arith.constant 0 : index
    %12 = vector.load %arg9[%c17, %c0_12, %c0_13] : memref<18x18x4xf32, #tpu.memory_space<vmem>>, vector<1x18x4xf32>
    tpu.vector_store %arg9[%c17, %c0_12, %c0_13], %11 {strides = array<i32>} : memref<18x18x4xf32, #tpu.memory_space<vmem>>, vector<1x18x4xf32>,
    %cst_14 = arith.constant 0.000000e+00 : f32
    %13 = vector.broadcast %cst_14 : f32 to vector<18x1x4xf32>
    %c0_15 = arith.constant 0 : index
    %c0_16 = arith.constant 0 : index
    %c0_17 = arith.constant 0 : index
    %14 = vector.load %arg9[%c0_15, %c0_16, %c0_17] : memref<18x18x4xf32, #tpu.memory_space<vmem>>, vector<18x1x4xf32>
    tpu.vector_store %arg9[%c0_15, %c0_16, %c0_17], %13 {strides = array<i32>} : memref<18x18x4xf32, #tpu.memory_space<vmem>>, vector<18x1x4xf32>,
    %cst_18 = arith.constant 0.000000e+00 : f32
    %15 = vector.broadcast %cst_18 : f32 to vector<18x1x4xf32>
    %c0_19 = arith.constant 0 : index
    %c17_20 = arith.constant 17 : index
    %c0_21 = arith.constant 0 : index
    %16 = vector.load %arg9[%c0_19, %c17_20, %c0_21] : memref<18x18x4xf32, #tpu.memory_space<vmem>>, vector<18x1x4xf32>
    tpu.vector_store %arg9[%c0_19, %c17_20, %c0_21], %15 {strides = array<i32>} : memref<18x18x4xf32, #tpu.memory_space<vmem>>, vector<18x1x4xf32>,
    %17 = vector.shape_cast %8 : vector<256x4xf32> to vector<16x16x4xf32>
    %c1 = arith.constant 1 : index
    %c1_22 = arith.constant 1 : index
    %c0_23 = arith.constant 0 : index
    %18 = vector.load %arg9[%c1, %c1_22, %c0_23] : memref<18x18x4xf32, #tpu.memory_space<vmem>>, vector<16x16x4xf32>
    tpu.vector_store %arg9[%c1, %c1_22, %c0_23], %17 {strides = array<i32>} : memref<18x18x4xf32, #tpu.memory_space<vmem>>, vector<16x16x4xf32>,
    %c0_24 = arith.constant 0 : index
    %c0_25 = arith.constant 0 : index
    %c0_26 = arith.constant 0 : index
    %19 = vector.load %arg9[%c0_24, %c0_25, %c0_26] : memref<18x18x4xf32, #tpu.memory_space<vmem>>, vector<16x16x4xf32>
    %c0_27 = arith.constant 0 : index
    %c1_28 = arith.constant 1 : index
    %c0_29 = arith.constant 0 : index
    %20 = vector.load %arg9[%c0_27, %c1_28, %c0_29] : memref<18x18x4xf32, #tpu.memory_space<vmem>>, vector<16x16x4xf32>
    %c0_30 = arith.constant 0 : index
    %c2 = arith.constant 2 : index
    %c0_31 = arith.constant 0 : index
    %21 = vector.load %arg9[%c0_30, %c2, %c0_31] : memref<18x18x4xf32, #tpu.memory_space<vmem>>, vector<16x16x4xf32>
    %22 = tpu.concatenate %19, %20, %21 in 2 : vector<16x16x4xf32>, vector<16x16x4xf32>, vector<16x16x4xf32> -> vector<16x16x12xf32>
    %23 = vector.shape_cast %22 : vector<16x16x12xf32> to vector<256x12xf32>
    %c0_32 = arith.constant 0 : index
    %c0_33 = arith.constant 0 : index
    %c0_34 = arith.constant 0 : index
    %24 = vector.load %arg4[%c0_32, %c0_33, %c0_34] : memref<3x12x4xf32, #tpu.memory_space<vmem>>, vector<1x12x4xf32>
    %25 = vector.shape_cast %24 : vector<1x12x4xf32> to vector<12x4xf32>
    %cst_35 = arith.constant dense<0.000000e+00> : vector<256x4xf32>
    %26 = tpu.matmul %23, %25, %cst_35 {dimension_numbers = #tpu.dot_dimension_numbers<[1], [0], [0], [1], [0, 0, 1, 1], [], []>} : vector<256x12xf32>, vector<12x4xf32>, vector<256x4xf32> -> vector<256x4xf32>
    %c1_36 = arith.constant 1 : index
    %c0_37 = arith.constant 0 : index
    %c0_38 = arith.constant 0 : index
    %27 = vector.load %arg9[%c1_36, %c0_37, %c0_38] : memref<18x18x4xf32, #tpu.memory_space<vmem>>, vector<16x16x4xf32>
    %c1_39 = arith.constant 1 : index
    %c1_40 = arith.constant 1 : index
    %c0_41 = arith.constant 0 : index
    %28 = vector.load %arg9[%c1_39, %c1_40, %c0_41] : memref<18x18x4xf32, #tpu.memory_space<vmem>>, vector<16x16x4xf32>
    %c1_42 = arith.constant 1 : index
    %c2_43 = arith.constant 2 : index
    %c0_44 = arith.constant 0 : index
    %29 = vector.load %arg9[%c1_42, %c2_43, %c0_44] : memref<18x18x4xf32, #tpu.memory_space<vmem>>, vector<16x16x4xf32>
    %30 = tpu.concatenate %27, %28, %29 in 2 : vector<16x16x4xf32>, vector<16x16x4xf32>, vector<16x16x4xf32> -> vector<16x16x12xf32>
    %31 = vector.shape_cast %30 : vector<16x16x12xf32> to vector<256x12xf32>
    %c1_45 = arith.constant 1 : index
    %c0_46 = arith.constant 0 : index
    %c0_47 = arith.constant 0 : index
    %32 = vector.load %arg4[%c1_45, %c0_46, %c0_47] : memref<3x12x4xf32, #tpu.memory_space<vmem>>, vector<1x12x4xf32>
    %33 = vector.shape_cast %32 : vector<1x12x4xf32> to vector<12x4xf32>
    %cst_48 = arith.constant dense<0.000000e+00> : vector<256x4xf32>
    %34 = tpu.matmul %31, %33, %cst_48 {dimension_numbers = #tpu.dot_dimension_numbers<[1], [0], [0], [1], [0, 0, 1, 1], [], []>} : vector<256x12xf32>, vector<12x4xf32>, vector<256x4xf32> -> vector<256x4xf32>
    %35 = arith.addf %26, %34 : vector<256x4xf32>
    %c2_49 = arith.constant 2 : index
    %c0_50 = arith.constant 0 : index
    %c0_51 = arith.constant 0 : index
    %36 = vector.load %arg9[%c2_49, %c0_50, %c0_51] : memref<18x18x4xf32, #tpu.memory_space<vmem>>, vector<16x16x4xf32>
    %c2_52 = arith.constant 2 : index
    %c1_53 = arith.constant 1 : index
    %c0_54 = arith.constant 0 : index
    %37 = vector.load %arg9[%c2_52, %c1_53, %c0_54] : memref<18x18x4xf32, #tpu.memory_space<vmem>>, vector<16x16x4xf32>
    %c2_55 = arith.constant 2 : index
    %c2_56 = arith.constant 2 : index
    %c0_57 = arith.constant 0 : index
    %38 = vector.load %arg9[%c2_55, %c2_56, %c0_57] : memref<18x18x4xf32, #tpu.memory_space<vmem>>, vector<16x16x4xf32>
    %39 = tpu.concatenate %36, %37, %38 in 2 : vector<16x16x4xf32>, vector<16x16x4xf32>, vector<16x16x4xf32> -> vector<16x16x12xf32>
    %40 = vector.shape_cast %39 : vector<16x16x12xf32> to vector<256x12xf32>
    %c2_58 = arith.constant 2 : index
    %c0_59 = arith.constant 0 : index
    %c0_60 = arith.constant 0 : index
    %41 = vector.load %arg4[%c2_58, %c0_59, %c0_60] : memref<3x12x4xf32, #tpu.memory_space<vmem>>, vector<1x12x4xf32>
    %42 = vector.shape_cast %41 : vector<1x12x4xf32> to vector<12x4xf32>
    %cst_61 = arith.constant dense<0.000000e+00> : vector<256x4xf32>
    %43 = tpu.matmul %40, %42, %cst_61 {dimension_numbers = #tpu.dot_dimension_numbers<[1], [0], [0], [1], [0, 0, 1, 1], [], []>} : vector<256x12xf32>, vector<12x4xf32>, vector<256x4xf32> -> vector<256x4xf32>
    %44 = arith.addf %35, %43 : vector<256x4xf32>
    %c0_62 = arith.constant 0 : index
    %c0_63 = arith.constant 0 : index
    %45 = vector.load %arg5[%c0_62, %c0_63] : memref<1x4xf32, #tpu.memory_space<vmem>>, vector<1x4xf32>
    %46 = vector.broadcast %45 : vector<1x4xf32> to vector<256x4xf32>
    %47 = arith.addf %44, %46 : vector<256x4xf32>
    %cst_64 = arith.constant 0.000000e+00 : f32
    %48 = vector.broadcast %cst_64 : f32 to vector<256x4xf32>
    %49 = arith.maximumf %47, %48 : vector<256x4xf32>
    %c0_65 = arith.constant 0 : index
    %c0_66 = arith.constant 0 : index
    %c0_67 = arith.constant 0 : index
    %50 = vector.load %arg1[%c0_65, %c0_66, %c0_67] : memref<1x256x4xf32, #tpu.memory_space<vmem>>, vector<1x256x4xf32>
    %51 = vector.shape_cast %50 : vector<1x256x4xf32> to vector<256x4xf32>
    %52 = tpu.concatenate %49, %51 in 1 : vector<256x4xf32>, vector<256x4xf32> -> vector<256x8xf32>
    %c0_68 = arith.constant 0 : index
    %c0_69 = arith.constant 0 : index
    %53 = vector.load %arg6[%c0_68, %c0_69] : memref<8x16xf32, #tpu.memory_space<vmem>>, vector<8x16xf32>
    %cst_70 = arith.constant dense<0.000000e+00> : vector<256x16xf32>
    %54 = tpu.matmul %52, %53, %cst_70 {dimension_numbers = #tpu.dot_dimension_numbers<[1], [0], [0], [1], [0, 0, 1, 1], [], []>} : vector<256x8xf32>, vector<8x16xf32>, vector<256x16xf32> -> vector<256x16xf32>
    %c0_71 = arith.constant 0 : index
    %c0_72 = arith.constant 0 : index
    %55 = vector.load %arg7[%c0_71, %c0_72] : memref<1x16xf32, #tpu.memory_space<vmem>>, vector<1x16xf32>
    %56 = vector.broadcast %55 : vector<1x16xf32> to vector<256x16xf32>
    %57 = arith.addf %54, %56 : vector<256x16xf32>
    %cst_73 = arith.constant 0.000000e+00 : f32
    %58 = vector.broadcast %cst_73 : f32 to vector<256x16xf32>
    %59 = arith.maximumf %57, %58 : vector<256x16xf32>
    %c0_74 = arith.constant 0 : index
    %c0_75 = arith.constant 0 : index
    %c0_76 = arith.constant 0 : index
    %60 = vector.load %arg8[%c0_74, %c0_75, %c0_76] : memref<1x256x16xf32, #tpu.memory_space<vmem>>, vector<1x256x16xf32>
    %61 = vector.shape_cast %60 : vector<1x256x16xf32> to vector<256x16xf32>
    %62 = vector.shape_cast %59 : vector<256x16xf32> to vector<1x256x16xf32>
    tpu.vector_store %arg8[%c0_74, %c0_75, %c0_76], %62 {strides = array<i32>} : memref<1x256x16xf32, #tpu.memory_space<vmem>>, vector<1x256x16xf32>,
    return
  }
  func.func @transform_0(%arg0: i32) -> (i32, i32, i32) {
    %c0_i32 = arith.constant 0 : i32
    %c0_i32_0 = arith.constant 0 : i32
    %c0_i32_1 = arith.constant 0 : i32
    return %arg0, %c0_i32, %c0_i32_0 : i32, i32, i32
  }
  func.func @transform_1(%arg0: i32) -> (i32, i32) {
    %c0_i32 = arith.constant 0 : i32
    %c0_i32_0 = arith.constant 0 : i32
    %c0_i32_1 = arith.constant 0 : i32
    return %c0_i32, %c0_i32_0 : i32, i32
  }
  func.func @transform_2(%arg0: i32) -> (i32, i32) {
    %c0_i32 = arith.constant 0 : i32
    %c0_i32_0 = arith.constant 0 : i32
    %c0_i32_1 = arith.constant 0 : i32
    return %c0_i32, %c0_i32_0 : i32, i32
  }
  func.func @transform_3(%arg0: i32) -> (i32, i32, i32) {
    %c0_i32 = arith.constant 0 : i32
    %c0_i32_0 = arith.constant 0 : i32
    %c0_i32_1 = arith.constant 0 : i32
    %c0_i32_2 = arith.constant 0 : i32
    return %c0_i32, %c0_i32_0, %c0_i32_1 : i32, i32, i32
  }
  func.func @transform_4(%arg0: i32) -> (i32, i32) {
    %c0_i32 = arith.constant 0 : i32
    %c0_i32_0 = arith.constant 0 : i32
    %c0_i32_1 = arith.constant 0 : i32
    return %c0_i32, %c0_i32_0 : i32, i32
  }
  func.func @transform_5(%arg0: i32) -> (i32, i32) {
    %c0_i32 = arith.constant 0 : i32
    %c0_i32_0 = arith.constant 0 : i32
    %c0_i32_1 = arith.constant 0 : i32
    return %c0_i32, %c0_i32_0 : i32, i32
  }
  func.func @transform_6(%arg0: i32) -> (i32, i32) {
    %c0_i32 = arith.constant 0 : i32
    %c0_i32_0 = arith.constant 0 : i32
    %c0_i32_1 = arith.constant 0 : i32
    return %c0_i32, %c0_i32_0 : i32, i32
  }
  func.func @transform_7(%arg0: i32) -> (i32, i32, i32) {
    %c0_i32 = arith.constant 0 : i32
    %c0_i32_0 = arith.constant 0 : i32
    %c0_i32_1 = arith.constant 0 : i32
    return %arg0, %c0_i32, %c0_i32_0 : i32, i32, i32
  }
}

</mosaic_0001>

<bundles_post_ra>
// kernel: tpu_custom_call.1
= control target key start
LH: loop header
LB: loop body
LE: loop exit
PB: predicated region body
PF: predicated region fallthrough
CT: control target
= control target key end

     0   :  { %s3416_s24 = smov 0   ;;  %s5190_s0 = inlined_call_operand.vmem [shape: f32[2,256,4], index: 0, kind: input, shape index: {}]   ;;  %s5191_s1 = inlined_call_operand.vmem [shape: f32[4,4], index: 1, kind: input, shape index: {}]   ;;  %s5192_s2 = inlined_call_operand.vmem [shape: f32[1,4], index: 2, kind: input, shape index: {}]   ;;  %s5193_s3 = inlined_call_operand.vmem [shape: f32[3,12,4], index: 3, kind: input, shape index: {}]   ;;  %s5194_s4 = inlined_call_operand.vmem [shape: f32[1,4], index: 4, kind: input, shape index: {}]   ;;  %s5195_s5 = inlined_call_operand.vmem [shape: f32[8,16], index: 5, kind: input, shape index: {}]   ;;  %s5196_s6 = inlined_call_operand.vmem [shape: f32[1,16], index: 6, kind: input, shape index: {}]   ;;  %s5197_s7 = inlined_call_operand.vmem [shape: f32[2,256,16], index: 7, kind: output, shape index: {}]  }
   0x1 LB: > { %s3161_s25 = sadd.s32 4294967295, %s3371_s24   ;;  %p3165_p0 = scmp.ge.s32.totalorder %s3371_s24, 1  ;;  %s3371_s24 = sphi %s3416_s24, %s17_s24  }
   0x2   : > { %p237_p1 = scmp.lt.s32.totalorder %s3371_s24, 3 }
   0x4   : > { %p238_p2 = pnand %p3165_p0, %p237_p1 }
   0x6   : > { %241 = sbr.rel (%p238_p2) target bundleno = 1077 (0x435), region = 48 }
   0xb   : > { %v311_v0 = vld [vmem:[%s5191_s1] sm:$0xf]  ;;  %vm413_vm0 = vcmask 1043456   ;;  %p269_p3 = scmp.lt.s32.totalorder %s3161_s25, 1  ;;  %vm316_vm1 = vcmask 31744   ;;  %v3373_v9 = vmov 0.0  }
   0xc   : > { %3170 = vmatpush.msk.msra.mxu0 %vm413_vm0, %v311_v0  ;;  %3342 = vmatpush.msk.msra.mxu1 %vm413_vm0, %v311_v0  ;;  %562 = vst.msk [vmem:[#allocation2] sm:$0xff] %vm316_vm1, %v3373_v9  ;;  %s3374_s9 = smov 4   ;;  %vm564_vm2 = vcmask 25600   ;;  %vm570_vm3 = vcmask 24576   ;;  %s3375_s10 = smov 8   ;;  %vm1478_vm4 = vcmask 97280  }
   0xd   : > { %s5327_s25 = smov (!%p269_p3, %s3161_s25), 1  ;;  %3343 = vmatpush.msk.msra.mxu3 %vm413_vm0, %v311_v0  ;;  %563 = vst.msk [vmem:[#allocation2 + $0x8] sm:$0xff] %vm316_vm1, %v3373_v9  ;;  %v3545_v27 = vld [vmem:[%s5192_s2] ss:$0 sm:$0xff]  ;;  %vm1024_vm5 = vcmask 64512   ;;  %vm3073_vm6 = vcmask 130048  }
   0xe   : > { %s3340_s28 = sshll.u32 %s5327_s25, 8  ;;  %567 = vst.msk [vmem:[#allocation2 + $0x198] sm:$0xff] %vm316_vm1, %v3373_v9 }
   0xf   : > { %s3438_s8 = scalar_lea.vmem %s5190_s0, %s3340_s28  ;;  %568 = vst.msk [vmem:[#allocation2 + $0x1a0] sm:$0xff] %vm316_vm1, %v3373_v9  ;;  %s5029_s13 = scalar_lea.vmem %s5197_s7, %s3340_s28 }
  0x10   : > { %v279_v1 = vld [vmem:[%s3438_s8] sm:$0xff]  ;;  %v309_v3 = vld [vmem:[%s3438_s8 + $0xf0] sm:$0xff]  ;;  %v280_v4 = vld [vmem:[%s3438_s8 + $0x8] sm:$0xff]  ;;  %565 = vst.msk [vmem:[#allocation2 + $0x10] sm:$0x3] %vm564_vm2, %v3373_v9 }
  0x11   : > { %v287_v2 = vld [vmem:[%s3438_s8 + $0x40] sm:$0xff]  ;;  %3171 = vmatmul.msk.f32.vlgmr.msra.gmra.mxu0 %vm316_vm1, %v279_v1  ;;  %3201 = vmatmul.msk.f32.vlgmr.msra.gmra.mxu3 %vm316_vm1, %v309_v3  ;;  %v288_v5 = vld [vmem:[%s3438_s8 + $0x48] sm:$0xff]  ;;  %v310_v6 = vld [vmem:[%s3438_s8 + $0xf8] sm:$0xff]  ;;  %569 = vst.msk [vmem:[#allocation2 + $0x1a8] sm:$0x3] %vm564_vm2, %v3373_v9 }
  0x12   : > { %3179 = vmatmul.msk.f32.vlgmr.msra.gmra.mxu1 %vm316_vm1, %v287_v2  ;;  %v289_v7 = vld [vmem:[%s3438_s8 + $0x50] sm:$0xff]  ;;  %v290_v10 = vld [vmem:[%s3438_s8 + $0x58] sm:$0xff]  ;;  %v283_v13 = vld [vmem:[%s3438_s8 + $0x20] sm:$0xff]  ;;  %589 = vst.msk [vmem:[#allocation2 + $0x11] sm:$0x1] %vm570_vm3, %v3373_v9 }
  0x13   : > { %v281_v8 = vld [vmem:[%s3438_s8 + $0x10] sm:$0xff]  ;;  %v282_v11 = vld [vmem:[%s3438_s8 + $0x18] sm:$0xff]  ;;  %v291_v14 = vld [vmem:[%s3438_s8 + $0x60] sm:$0xff]  ;;  %571 = vst.msk [vmem:[#allocation2] sm:$0x1] %vm570_vm3, %v3373_v9 }
  0x14   : > { %v672_v12 = vld [vmem:[#allocation2 + $0x1] sm:$0xff]  ;;  %v293_v17 = vld [vmem:[%s3438_s8 + $0x70] sm:$0xff]  ;;  %v294_v18 = vld [vmem:[%s3438_s8 + $0x78] sm:$0xff]  ;;  %572 = vst.msk [vmem:[#allocation2 + $0x18] sm:$0x1] %vm570_vm3, %v3373_v9 }
  0x15   : > { %768 = vrot.lane.b32.xlu0 %v672_v12, %s3374_s9  ;;  %v284_v15 = vld [vmem:[%s3438_s8 + $0x28] sm:$0xff]  ;;  %573 = vst.msk [vmem:[#allocation2 + $0x30] sm:$0x1] %vm570_vm3, %v3373_v9  ;;  %v285_v21 = vld [vmem:[%s3438_s8 + $0x30] sm:$0xff]  ;;  %v295_v22 = vld [vmem:[%s3438_s8 + $0x80] sm:$0xff] }
  0x16   : > { %v292_v16 = vld [vmem:[%s3438_s8 + $0x68] sm:$0xff]  ;;  %574 = vst.msk [vmem:[#allocation2 + $0x48] sm:$0x1] %vm570_vm3, %v3373_v9  ;;  %v286_v24 = vld [vmem:[%s3438_s8 + $0x38] sm:$0xff]  ;;  %v297_v26 = vld [vmem:[%s3438_s8 + $0x90] sm:$0xff] }
  0x17   : > { %v704_v19 = vld [vmem:[#allocation2 + $0x2] sm:$0xff]  ;;  %575 = vst.msk [vmem:[#allocation2 + $0x60] sm:$0x1] %vm570_vm3, %v3373_v9  ;;  %v298_v32 = vld [vmem:[%s3438_s8 + $0x98] sm:$0xff]  ;;  %v301_v60 = vld [vmem:[%s3438_s8 + $0xb0] sm:$0xff] }
  0x18   : > { %v673_v20 = vld [vmem:[#allocation2 + $0x9] sm:$0xff]  ;;  %896 = vrot.lane.b32.xlu1 %v704_v19, %s3375_s10  ;;  %576 = vst.msk [vmem:[#allocation2 + $0x78] sm:$0x1] %vm570_vm3, %v3373_v9  ;;  %v299_v41 = vld [vmem:[%s3438_s8 + $0xa0] sm:$0xff]  ;;  %v302_v3 = vld [vmem:[%s3438_s8 + $0xb8] sm:$0xff] }
  0x19   : > { %3172 = vmatmul.msk.f32.gmra.mxu0 %vm316_vm1, %v280_v4  ;;  %3202 = vmatmul.msk.f32.gmra.mxu3 %vm316_vm1, %v310_v6  ;;  %v705_v23 = vld [vmem:[#allocation2 + $0xa] sm:$0xff]  ;;  %577 = vst.msk [vmem:[#allocation2 + $0x90] sm:$0x1] %vm570_vm3, %v3373_v9  ;;  %v303_v6 = vld [vmem:[%s3438_s8 + $0xc0] sm:$0xff]  ;;  %v306_v19 = vld [vmem:[%s3438_s8 + $0xd8] sm:$0xff] }
  0x1a   : > { %3180 = vmatmul.msk.f32.gmra.mxu1 %vm316_vm1, %v288_v5  ;;  %578 = vst.msk [vmem:[#allocation2 + $0xa8] sm:$0x1] %vm570_vm3, %v3373_v9  ;;  %v296_v25 = vld [vmem:[%s3438_s8 + $0x88] sm:$0xff] }
  0x1b   : > { %579 = vst.msk [vmem:[#allocation2 + $0xc0] sm:$0x1] %vm570_vm3, %v3373_v9  ;;  %v300_v51 = vld [vmem:[%s3438_s8 + $0xa8] sm:$0xff] }
  0x1c   : > { %580 = vst.msk [vmem:[#allocation2 + $0xd8] sm:$0x1] %vm570_vm3, %v3373_v9 }
  0x1d   : > { %770 = vrot.lane.b32.xlu0 %v673_v20, %s3374_s9  ;;  %581 = vst.msk [vmem:[#allocation2 + $0xf0] sm:$0x1] %vm570_vm3, %v3373_v9 }
  0x1e   : > { %582 = vst.msk [vmem:[#allocation2 + $0x108] sm:$0x1] %vm570_vm3, %v3373_v9 }
  0x1f   : > { %583 = vst.msk [vmem:[#allocation2 + $0x120] sm:$0x1] %vm570_vm3, %v3373_v9 }
  0x20   : > { %584 = vst.msk [vmem:[#allocation2 + $0x138] sm:$0x1] %vm570_vm3, %v3373_v9 }
  0x21   : > { %3173 = vmatmul.msk.f32.gmra.mxu0 %vm316_vm1, %v281_v8  ;;  %585 = vst.msk [vmem:[#allocation2 + $0x150] sm:$0x1] %vm570_vm3, %v3373_v9 }
  0x22   : > { %3181 = vmatmul.msk.f32.gmra.mxu1 %vm316_vm1, %v289_v7  ;;  %586 = vst.msk [vmem:[#allocation2 + $0x168] sm:$0x1] %vm570_vm3, %v3373_v9  ;;  %v304_v7 = vld [vmem:[%s3438_s8 + $0xc8] sm:$0xff] }
  0x23   : > { %587 = vst.msk [vmem:[#allocation2 + $0x180] sm:$0x1] %vm570_vm3, %v3373_v9 }
  0x24   : > { %588 = vst.msk [vmem:[#allocation2 + $0x198] sm:$0x1] %vm570_vm3, %v3373_v9 }
  0x25   : > { %898 = vrot.lane.b32.xlu0 %v705_v23, %s3375_s10  ;;  %590 = vst.msk [vmem:[#allocation2 + $0x29] sm:$0x1] %vm570_vm3, %v3373_v9 }
  0x26   : > { %591 = vst.msk [vmem:[#allocation2 + $0x41] sm:$0x1] %vm570_vm3, %v3373_v9 }
  0x27   : > { %592 = vst.msk [vmem:[#allocation2 + $0x59] sm:$0x1] %vm570_vm3, %v3373_v9 }
  0x28   : > { %593 = vst.msk [vmem:[#allocation2 + $0x71] sm:$0x1] %vm570_vm3, %v3373_v9 }
  0x29   : > { %3174 = vmatmul.msk.f32.gmra.mxu0 %vm316_vm1, %v282_v11  ;;  %594 = vst.msk [vmem:[#allocation2 + $0x89] sm:$0x1] %vm570_vm3, %v3373_v9  ;;  %v305_v11 = vld [vmem:[%s3438_s8 + $0xd0] sm:$0xff] }
  0x2a   : > { %3182 = vmatmul.msk.f32.gmra.mxu1 %vm316_vm1, %v290_v10  ;;  %595 = vst.msk [vmem:[#allocation2 + $0xa1] sm:$0x1] %vm570_vm3, %v3373_v9 }
  0x2b   : > { %596 = vst.msk [vmem:[#allocation2 + $0xb9] sm:$0x1] %vm570_vm3, %v3373_v9 }
  0x2c   : > { %597 = vst.msk [vmem:[#allocation2 + $0xd1] sm:$0x1] %vm570_vm3, %v3373_v9 }
  0x2d   : > { %598 = vst.msk [vmem:[#allocation2 + $0xe9] sm:$0x1] %vm570_vm3, %v3373_v9 }
  0x2e   : > { %599 = vst.msk [vmem:[#allocation2 + $0x101] sm:$0x1] %vm570_vm3, %v3373_v9 }
  0x2f   : > { %600 = vst.msk [vmem:[#allocation2 + $0x119] sm:$0x1] %vm570_vm3, %v3373_v9 }
  0x30   : > { %601 = vst.msk [vmem:[#allocation2 + $0x131] sm:$0x1] %vm570_vm3, %v3373_v9 }
  0x31   : > { %3175 = vmatmul.msk.f32.gmra.mxu0 %vm316_vm1, %v283_v13  ;;  %602 = vst.msk [vmem:[#allocation2 + $0x149] sm:$0x1] %vm570_vm3, %v3373_v9 }
  0x32   : > { %3183 = vmatmul.msk.f32.gmra.mxu1 %vm316_vm1, %v291_v14  ;;  %603 = vst.msk [vmem:[#allocation2 + $0x161] sm:$0x1] %vm570_vm3, %v3373_v9 }
  0x33   : > { %604 = vst.msk [vmem:[#allocation2 + $0x179] sm:$0x1] %vm570_vm3, %v3373_v9 }
  0x34   : > { %605 = vst.msk [vmem:[#allocation2 + $0x191] sm:$0x1] %vm570_vm3, %v3373_v9 }
  0x35   : > { %606 = vst.msk [vmem:[#allocation2 + $0x1a9] sm:$0x1] %vm570_vm3, %v3373_v9 }
  0x39   : > { %3176 = vmatmul.msk.f32.gmra.mxu0 %vm316_vm1, %v284_v15 }
  0x3a   : > { %3184 = vmatmul.msk.f32.gmra.mxu1 %vm316_vm1, %v292_v16 }
  0x41   : > { %3177 = vmatmul.msk.f32.gmra.mxu0 %vm316_vm1, %v285_v21 }
  0x42   : > { %3185 = vmatmul.msk.f32.gmra.mxu1 %vm316_vm1, %v293_v17 }
  0x49   : > { %3178 = vmatmul.msk.f32.gmra.mxu0 %vm316_vm1, %v286_v24 }
  0x4a   : > { %3186 = vmatmul.msk.f32.gmra.mxu1 %vm316_vm1, %v294_v18 }
  0x52   : > { %3187 = vmatmul.msk.f32.gmra.mxu1 %vm316_vm1, %v295_v22 }
  0x5a   : > { %3188 = vmatmul.msk.f32.gmra.mxu1 %vm316_vm1, %v296_v25 }
  0x62   : > { %3189 = vmatmul.msk.f32.gmra.mxu1 %vm316_vm1, %v297_v26 }
  0x6a   : > { %3190 = vmatmul.msk.f32.gmra.mxu1 %vm316_vm1, %v298_v32 }
  0x72   : > { %3191 = vmatmul.msk.f32.gmra.mxu1 %vm316_vm1, %v299_v41 }
  0x7a   : > { %3192 = vmatmul.msk.f32.gmra.mxu1 %vm316_vm1, %v300_v51 }
  0x82   : > { %3193 = vmatmul.msk.f32.gmra.mxu1 %vm316_vm1, %v301_v60 }
  0x8a   : > { %3194 = vmatmul.msk.f32.gmra.mxu1 %vm316_vm1, %v302_v3 }
  0x8e   : > { %v434_v28 = vpop.f32.mrf.mxu0 }
  0x8f   : > { %v458_v29 = vpop.f32.mrf.mxu1  ;;  %v435_v30 = vadd.f32 %v3545_v27, %v434_v28 }
  0x90   : > { %v459_v31 = vadd.f32 %v3545_v27, %v458_v29 }
  0x91   : > { %v530_v33 = vmax.f32 %v435_v30, 0.0  ;;  %v307_v30 = vld [vmem:[%s3438_s8 + $0xe0] sm:$0xff] }
  0x92   : > { %v538_v34 = vmax.f32 %v459_v31, 0.0  ;;  %3195 = vmatmul.msk.f32.gmra.mxu1 %vm316_vm1, %v303_v6 }
  0x93   : > { %608 = vst.msk [vmem:[#allocation2 + $0x19] sm:$0xff] %vm316_vm1, %v530_v33 }
  0x94   : > { %616 = vst.msk [vmem:[#allocation2 + $0x79] sm:$0xff] %vm316_vm1, %v538_v34  ;;  %v524_v35 = vpop.f32.mrf.mxu3  ;;  %v308_v34 = vld [vmem:[%s3438_s8 + $0xe8] sm:$0xff] }
  0x95   : > { %v525_v38 = vadd.f32 %v3545_v27, %v524_v35 }
  0x96   : > { %v437_v36 = vpop.f32.mrf.mxu0 }
  0x97   : > { %v461_v37 = vpop.f32.mrf.mxu1  ;;  %v438_v39 = vadd.f32 %v3545_v27, %v437_v36  ;;  %v560_v42 = vmax.f32 %v525_v38, 0.0 }
  0x98   : > { %v462_v40 = vadd.f32 %v3545_v27, %v461_v37 }
  0x99   : > { %v531_v43 = vmax.f32 %v438_v39, 0.0  ;;  %638 = vst.msk [vmem:[#allocation2 + $0x181] sm:$0xff] %vm316_vm1, %v560_v42 }
  0x9a   : > { %v539_v44 = vmax.f32 %v462_v40, 0.0  ;;  %v674_v45 = vld [vmem:[#allocation2 + $0x19] sm:$0xff]  ;;  %3196 = vmatmul.msk.f32.gmra.mxu1 %vm316_vm1, %v304_v7 }
  0x9b   : > { %609 = vst.msk [vmem:[#allocation2 + $0x21] sm:$0xff] %vm316_vm1, %v531_v43  ;;  %v1942_v46 = vld [vmem:[#allocation2 + $0x79] sm:$0xff]  ;;  %772 = vrot.lane.b32.xlu1 %v674_v45, %s3374_s9  ;;  %v3678_v43 = vpop.permute.xlu0 %768 }
  0x9c   : > { %617 = vst.msk [vmem:[#allocation2 + $0x81] sm:$0xff] %vm316_vm1, %v539_v44  ;;  %2044 = vrot.lane.b32.xlu2 %v1942_v46, %s3374_s9  ;;  %v527_v47 = vpop.f32.mrf.mxu3 }
  0x9d   : > { %v528_v48 = vadd.f32 %v3545_v27, %v527_v47 }
  0x9e   : > { %v440_v55 = vpop.f32.mrf.mxu0 }
  0x9f   : > { %v464_v49 = vpop.f32.mrf.mxu1  ;;  %v561_v52 = vmax.f32 %v528_v48, 0.0  ;;  %v441_v56 = vadd.f32 %v3545_v27, %v440_v55 }
  0xa0   : > { %v465_v50 = vadd.f32 %v3545_v27, %v464_v49  ;;  %v1121_v4 = vld [vmem:[#allocation2 + $0x181] sm:$0xff] }
  0xa1   : > { %639 = vst.msk [vmem:[#allocation2 + $0x189] sm:$0xff] %vm316_vm1, %v561_v52  ;;  %v532_v58 = vmax.f32 %v441_v56, 0.0  ;;  %v3204_v52 = vld [vmem:[%s5193_s3 + $0x18] sm:$0xf] }
  0xa2   : > { %v540_v53 = vmax.f32 %v465_v50, 0.0  ;;  %v1092_v54 = vld [vmem:[#allocation2 + $0x21] sm:$0xff]  ;;  %3197 = vmatmul.msk.f32.gmra.mxu1 %vm316_vm1, %v305_v11  ;;  %3344 = vmatpush.msk.msra.mxu2 %vm413_vm0, %v3204_v52 }
  0xa3   : > { %1189 = vrot.lane.b32.xlu0 %v1092_v54, %s3374_s9  ;;  %788 = vrot.lane.b32.xlu1 %v1942_v46, %s3374_s9  ;;  %v683_v61 = vld [vmem:[#allocation2 + $0x81] sm:$0xff]  ;;  %610 = vst.msk [vmem:[#allocation2 + $0x31] sm:$0xff] %vm316_vm1, %v532_v58  ;;  %v3705_v60 = vpop.permute.xlu0 %770 }
  0xa4   : > { %618 = vst.msk [vmem:[#allocation2 + $0x91] sm:$0xff] %vm316_vm1, %v540_v53  ;;  %1203 = vrot.lane.b32.xlu2 %v1942_v46, %s3374_s9  ;;  %v1974_v63 = vld [vmem:[#allocation2 + $0x7a] sm:$0xff]  ;;  %v1124_v9 = vld [vmem:[#allocation2 + $0x22] sm:$0xff]  ;;  %3205 = vmatpush.msk.msrb.mxu1 %vm413_vm0, %v3204_v52 }
  0xa5   : > { %v1123_v5 = vld [vmem:[#allocation2 + $0x1a] sm:$0xff]  ;;  %v3622_v10 = vld [vmem:[#allocation2 + $0x82] sm:$0xff]  ;;  %3345 = vmatpush.msk.msrb.mxu3 %vm413_vm0, %v3204_v52 }
  0xa6   : > { %v443_v0 = vpop.f32.mrf.mxu0  ;;  %v3787_v52 = vld [vmem:[#allocation2 + $0x20] sm:$0xff] }
  0xa7   : > { %v467_v57 = vpop.f32.mrf.mxu1  ;;  %v444_v1 = vadd.f32 %v3545_v27, %v443_v0  ;;  %v3710_v0 = vpop.permute.xlu1 %896 }
  0xa8   : > { %v468_v59 = vadd.f32 %v3545_v27, %v467_v57  ;;  %v1154_v8 = vld [vmem:[#allocation2 + $0x18a] sm:$0xff]  ;;  %v1153_v20 = vld [vmem:[#allocation2 + $0x182] sm:$0xff] }
  0xa9   : > { %v533_v2 = vmax.f32 %v444_v1, 0.0  ;;  %v1122_v29 = vld [vmem:[#allocation2 + $0x189] sm:$0xff] }
  0xaa   : > { %v541_v62 = vmax.f32 %v468_v59, 0.0  ;;  %3198 = vmatmul.msk.f32.gmra.mxu1 %vm316_vm1, %v306_v19  ;;  %v676_v32 = vld [vmem:[#allocation2 + $0x31] sm:$0xff] }
  0xab   : > { %2172 = vrot.lane.b32.xlu0 %v1974_v63, %s3375_s10  ;;  %1187 = vrot.lane.b32.xlu1 %v674_v45, %s3374_s9  ;;  %611 = vst.msk [vmem:[#allocation2 + $0x39] sm:$0xff] %vm316_vm1, %v533_v2  ;;  %v3628_v12 = vld [vmem:[#allocation2 + $0x91] sm:$0xff]  ;;  %v3723_v6 = vpop.permute.xlu0 %898 }
  0xac   : > { %619 = vst.msk [vmem:[#allocation2 + $0x99] sm:$0xff] %vm316_vm1, %v541_v62  ;;  %790 = vrot.lane.b32.xlu2 %v683_v61, %s3374_s9 }
  0xae   : > { %v446_v13 = vpop.f32.mrf.mxu0 }
  0xaf   : > { %v470_v14 = vpop.f32.mrf.mxu1  ;;  %v447_v15 = vadd.f32 %v3545_v27, %v446_v13 }
  0xb0   : > { %v471_v16 = vadd.f32 %v3545_v27, %v470_v14 }
  0xb1   : > { %v534_v17 = vmax.f32 %v447_v15, 0.0 }
  0xb2   : > { %v542_v18 = vmax.f32 %v471_v16, 0.0  ;;  %v1968_v24 = vld [vmem:[#allocation2 + $0x32] sm:$0xff]  ;;  %3199 = vmatmul.msk.f32.gmra.mxu1 %vm316_vm1, %v307_v30 }
  0xb3   : > { %1331 = vrot.lane.b32.xlu0 %v1974_v63, %s3375_s10  ;;  %1247 = vrot.lane.b32.xlu1 %v1121_v4, %s3374_s9  ;;  %612 = vst.msk [vmem:[#allocation2 + $0x49] sm:$0xff] %vm316_vm1, %v534_v17  ;;  %v3654_v31 = vld [vmem:[#allocation2 + $0x99] sm:$0xff] }
  0xb4   : > { %1315 = vrot.lane.b32.xlu2 %v1123_v5, %s3375_s10  ;;  %620 = vst.msk [vmem:[#allocation2 + $0xa9] sm:$0xff] %vm316_vm1, %v542_v18  ;;  %v1937_v36 = vld [vmem:[#allocation2 + $0x39] sm:$0xff] }
  0xb5   : > { %v3669_v40 = vld [vmem:[#allocation2 + $0x9a] sm:$0xff]  ;;  %v3682_v49 = vld [vmem:[#allocation2 + $0x92] sm:$0xff] }
  0xb6   : > { %v449_v21 = vpop.f32.mrf.mxu0 }
  0xb7   : > { %v450_v22 = vadd.f32 %v3545_v27, %v449_v21  ;;  %v473_v23 = vpop.f32.mrf.mxu1 }
  0xb8   : > { %v474_v25 = vadd.f32 %v3545_v27, %v473_v23  ;;  %v3747_v23 = vld [vmem:[#allocation2 + $0x18] sm:$0xff] }
  0xb9   : > { %v535_v26 = vmax.f32 %v450_v22, 0.0 }
  0xba   : > { %v543_v28 = vmax.f32 %v474_v25, 0.0  ;;  %3200 = vmatmul.msk.f32.gmra.mxu1 %vm316_vm1, %v308_v34  ;;  %v678_v46 = vld [vmem:[#allocation2 + $0x49] sm:$0xff] }
  0xbb   : > { %916 = vrot.lane.b32.xlu0 %v1974_v63, %s3375_s10  ;;  %774 = vrot.lane.b32.xlu1 %v1092_v54, %s3374_s9  ;;  %613 = vst.msk [vmem:[#allocation2 + $0x51] sm:$0xff] %vm316_vm1, %v535_v26  ;;  %v3203_v54 = vld [vmem:[%s5193_s3 + $0x10] sm:$0xff]  ;;  %v1969_v63 = vld [vmem:[#allocation2 + $0x3a] sm:$0xff] }
  0xbc   : > { %900 = vrot.lane.b32.xlu2 %v1123_v5, %s3375_s10  ;;  %621 = vst.msk [vmem:[#allocation2 + $0xb1] sm:$0xff] %vm316_vm1, %v543_v28  ;;  %1593 = vmatpush.msrb.mxu1 %v3203_v54  ;;  %v3701_v57 = vld [vmem:[#allocation2 + $0xa9] sm:$0xff] }
  0xbd   : > { %3346 = vmatpush.msra.mxu2 %v3203_v54  ;;  %3347 = vmatpush.msrb.mxu3 %v3203_v54 }
  0xbe   : > { %v452_v44 = vpop.f32.mrf.mxu0 }
  0xbf   : > { %v476_v33 = vpop.f32.mrf.mxu1  ;;  %v453_v47 = vadd.f32 %v3545_v27, %v452_v44 }
  0xc0   : > { %v477_v35 = vadd.f32 %v3545_v27, %v476_v33 }
  0xc1   : > { %v536_v50 = vmax.f32 %v453_v47, 0.0 }
  0xc2   : > { %v544_v37 = vmax.f32 %v477_v35, 0.0  ;;  %v3717_v3 = vld [vmem:[#allocation2 + $0x51] sm:$0xff] }
  0xc3   : > { %1377 = vrot.lane.b32.xlu0 %v1154_v8, %s3375_s10  ;;  %1317 = vrot.lane.b32.xlu1 %v1124_v9, %s3375_s10  ;;  %614 = vst.msk [vmem:[#allocation2 + $0x61] sm:$0xff] %vm316_vm1, %v536_v50  ;;  %v3729_v11 = vld [vmem:[#allocation2 + $0xb1] sm:$0xff] }
  0xc4   : > { %2174 = vrot.lane.b32.xlu2 %v3622_v10, %s3375_s10  ;;  %622 = vst.msk [vmem:[#allocation2 + $0xc1] sm:$0xff] %vm316_vm1, %v544_v37  ;;  %v1970_v14 = vld [vmem:[#allocation2 + $0x4a] sm:$0xff]  ;;  %v1971_v21 = vld [vmem:[#allocation2 + $0x52] sm:$0xff] }
  0xc6   : > { %v455_v55 = vpop.f32.mrf.mxu0 }
  0xc7   : > { %v479_v38 = vpop.f32.mrf.mxu1  ;;  %v456_v58 = vadd.f32 %v3545_v27, %v455_v55 }
  0xc8   : > { %v480_v39 = vadd.f32 %v3545_v27, %v479_v38 }
  0xca   : > { %v545_v41 = vmax.f32 %v480_v39, 0.0  ;;  %v1940_v38 = vld [vmem:[#allocation2 + $0x61] sm:$0xff] }
  0xcb   : > { %792 = vrot.lane.b32.xlu0 %v3628_v12, %s3374_s9  ;;  %902 = vrot.lane.b32.xlu1 %v1124_v9, %s3375_s10  ;;  %v3782_v50 = vld [vmem:[#allocation2 + $0xc1] sm:$0xff] }
  0xcc   : > { %1333 = vrot.lane.b32.xlu2 %v3622_v10, %s3375_s10  ;;  %623 = vst.msk [vmem:[#allocation2 + $0xc9] sm:$0xff] %vm316_vm1, %v545_v41 }
  0xcf   : > { %v482_v45 = vpop.f32.mrf.mxu1 }
  0xd0   : > { %v483_v48 = vadd.f32 %v3545_v27, %v482_v45 }
  0xd2   : > { %v546_v51 = vmax.f32 %v483_v48, 0.0 }
  0xd3   : > { %2048 = vrot.lane.b32.xlu0 %v3628_v12, %s3374_s9  ;;  %2046 = vrot.lane.b32.xlu1 %v683_v61, %s3374_s9 }
  0xd4   : > { %1375 = vrot.lane.b32.xlu2 %v1153_v20, %s3375_s10  ;;  %624 = vst.msk [vmem:[#allocation2 + $0xd9] sm:$0xff] %vm316_vm1, %v546_v51 }
  0xd7   : > { %v485_v56 = vpop.f32.mrf.mxu1 }
  0xd8   : > { %v486_v59 = vadd.f32 %v3545_v27, %v485_v56 }
  0xda   : > { %v547_v62 = vmax.f32 %v486_v59, 0.0 }
  0xdb   : > { %2160 = vrot.lane.b32.xlu0 %v1968_v24, %s3375_s10  ;;  %1205 = vrot.lane.b32.xlu1 %v683_v61, %s3374_s9  ;;  %v537_v61 = vmax.f32 %v456_v58, 0.0 }
  0xdc   : > { %1249 = vrot.lane.b32.xlu2 %v1122_v29, %s3374_s9  ;;  %625 = vst.msk [vmem:[#allocation2 + $0xe1] sm:$0xff] %vm316_vm1, %v547_v62 }
  0xdd   : > { %615 = vst.msk [vmem:[#allocation2 + $0x69] sm:$0xff] %vm316_vm1, %v537_v61 }
  0xdf   : > { %v488_v2 = vpop.f32.mrf.mxu1 }
  0xe0   : > { %v489_v4 = vadd.f32 %v3545_v27, %v488_v2 }
  0xe2   : > { %v548_v5 = vmax.f32 %v489_v4, 0.0  ;;  %v3802_v4 = vld [vmem:[#allocation2 + $0xaa] sm:$0xff] }
  0xe3   : > { %1319 = vrot.lane.b32.xlu0 %v1968_v24, %s3375_s10  ;;  %794 = vrot.lane.b32.xlu1 %v3654_v31, %s3374_s9 }
  0xe4   : > { %776 = vrot.lane.b32.xlu2 %v676_v32, %s3374_s9  ;;  %626 = vst.msk [vmem:[#allocation2 + $0xf1] sm:$0xff] %vm316_vm1, %v548_v5  ;;  %v681_v62 = vld [vmem:[#allocation2 + $0x69] sm:$0xff] }
  0xe7   : > { %v491_v9 = vpop.f32.mrf.mxu1 }
  0xe8   : > { %v492_v13 = vadd.f32 %v3545_v27, %v491_v9 }
  0xea   : > { %v549_v15 = vmax.f32 %v492_v13, 0.0 }
  0xeb   : > { %904 = vrot.lane.b32.xlu0 %v1968_v24, %s3375_s10  ;;  %2034 = vrot.lane.b32.xlu1 %v1937_v36, %s3374_s9 }
  0xec   : > { %2032 = vrot.lane.b32.xlu2 %v676_v32, %s3374_s9  ;;  %627 = vst.msk [vmem:[#allocation2 + $0xf9] sm:$0xff] %vm316_vm1, %v549_v15  ;;  %v3815_v15 = vld [vmem:[#allocation2 + $0xc9] sm:$0xff] }
  0xef   : > { %v494_v19 = vpop.f32.mrf.mxu1 }
  0xf0   : > { %v495_v20 = vadd.f32 %v3545_v27, %v494_v19 }
  0xf2   : > { %v550_v22 = vmax.f32 %v495_v20, 0.0 }
  0xf3   : > { %2178 = vrot.lane.b32.xlu0 %v3669_v40, %s3375_s10  ;;  %1193 = vrot.lane.b32.xlu1 %v1937_v36, %s3374_s9 }
  0xf4   : > { %1191 = vrot.lane.b32.xlu2 %v676_v32, %s3374_s9  ;;  %628 = vst.msk [vmem:[#allocation2 + $0x109] sm:$0xff] %vm316_vm1, %v550_v22 }
  0xf6   : > { %v3676_v42 = vpop.permute.xlu2 %2044 }
  0xf7   : > { %5224 = vst [vmem:[#allocation3_spill] sm:$0xff] %v3676_v42  ;;  %v497_v30 = vpop.f32.mrf.mxu1 }
  0xf8   : > { %v498_v32 = vadd.f32 %v3545_v27, %v497_v30 }
  0xfa   : > { %v551_v33 = vmax.f32 %v498_v32, 0.0 }
  0xfb   : > { %780 = vrot.lane.b32.xlu0 %v678_v46, %s3374_s9  ;;  %2176 = vrot.lane.b32.xlu1 %v3682_v49, %s3375_s10 }
  0xfc   : > { %778 = vrot.lane.b32.xlu2 %v1937_v36, %s3374_s9  ;;  %629 = vst.msk [vmem:[#allocation2 + $0x111] sm:$0xff] %vm316_vm1, %v551_v33 }
  0xfe   : > { %v3695_v53 = vpop.permute.xlu2 %1203 }
  0xff   : > { %v500_v37 = vpop.f32.mrf.mxu1 }
 0x100   : > { %v501_v39 = vadd.f32 %v3545_v27, %v500_v37 }
 0x102   : > { %v552_v41 = vmax.f32 %v501_v39, 0.0  ;;  %v3838_v39 = vld [vmem:[#allocation2 + $0xf1] sm:$0xff] }
 0x103   : > { %2036 = vrot.lane.b32.xlu0 %v678_v46, %s3374_s9  ;;  %2052 = vrot.lane.b32.xlu1 %v3701_v57, %s3374_s9 }
 0x104   : > { %2162 = vrot.lane.b32.xlu2 %v1969_v63, %s3375_s10  ;;  %630 = vst.msk [vmem:[#allocation2 + $0x121] sm:$0xff] %vm316_vm1, %v552_v41 }
 0x106   : > { %v3715_v1 = vpop.permute.xlu2 %790 }
 0x107   : > { %5225 = vst [vmem:[#allocation4_spill] sm:$0xff] %v3715_v1  ;;  %v503_v47 = vpop.f32.mrf.mxu1 }
 0x108   : > { %v504_v48 = vadd.f32 %v3545_v27, %v503_v47  ;;  %v3843_v47 = vld [vmem:[#allocation2 + $0x30] sm:$0xff] }
 0x10a   : > { %v553_v51 = vmax.f32 %v504_v48, 0.0 }
 0x10b   : > { %1195 = vrot.lane.b32.xlu0 %v678_v46, %s3374_s9  ;;  %782 = vrot.lane.b32.xlu1 %v3717_v3, %s3374_s9 }
 0x10c   : > { %1321 = vrot.lane.b32.xlu2 %v1969_v63, %s3375_s10  ;;  %631 = vst.msk [vmem:[#allocation2 + $0x129] sm:$0xff] %vm316_vm1, %v553_v51 }
 0x10d   : > { %v3727_v7 = vpop.permute.xlu1 %772 }
 0x10e   : > { %v1316_v8 = vpop.permute.xlu2 %1315 }
 0x10f   : > { %v506_v61 = vpop.f32.mrf.mxu1 }
 0x110   : > { %v507_v2 = vadd.f32 %v3545_v27, %v506_v61  ;;  %v3855_v61 = vld [vmem:[#allocation2 + $0xf9] sm:$0xff] }
 0x113   : > { %798 = vrot.lane.b32.xlu0 %v3729_v11, %s3374_s9  ;;  %2164 = vrot.lane.b32.xlu1 %v1970_v14, %s3375_s10 }
 0x114   : > { %906 = vrot.lane.b32.xlu2 %v1969_v63, %s3375_s10  ;;  %v1973_v63 = vld [vmem:[#allocation2 + $0x6a] sm:$0xff] }
 0x115   : > { %v1190_v16 = vpop.permute.xlu0 %1189  ;;  %v3737_v17 = vpop.permute.xlu1 %788 }
 0x116   : > { %5226 = vst [vmem:[#allocation5_spill] sm:$0xff] %v3737_v17  ;;  %v3739_v18 = vpop.permute.xlu2 %900  ;;  %v1412_v54 = vsel %vm316_vm1, %v3787_v52, %v1190_v16 }
 0x117   : > { %v509_v13 = vpop.f32.mrf.mxu1 }
 0x11b   : > { %2166 = vrot.lane.b32.xlu0 %v1971_v21, %s3375_s10  ;;  %1323 = vrot.lane.b32.xlu1 %v1970_v14, %s3375_s10 }
 0x11c   : > { %2050 = vrot.lane.b32.xlu2 %v3654_v31, %s3374_s9 }
 0x11d   : > { %v3749_v24 = vpop.permute.xlu0 %2172  ;;  %v1188_v25 = vpop.permute.xlu1 %1187 }
 0x11e   : > { %5227 = vst [vmem:[#allocation6_spill] sm:$0xff] %v3749_v24  ;;  %v3751_v26 = vpop.permute.xlu2 %2174  ;;  %v1411_v28 = vsel %vm316_vm1, %v3747_v23, %v1188_v25 }
 0x11f   : > { %5228 = vst [vmem:[#allocation7_spill] sm:$0xff] %v3751_v26  ;;  %v1443_v29 = vsel %vm1024_vm5, %v1411_v28, %v1316_v8  ;;  %v512_v22 = vpop.f32.mrf.mxu1 }
 0x120   : > { %3206 = vmatmul.msk.f32.vlgmr.msrb.gmra.mxu1 %vm1478_vm4, %v1443_v29  ;;  %v513_v25 = vadd.f32 %v3545_v27, %v512_v22  ;;  %v1972_v29 = vld [vmem:[#allocation2 + $0x62] sm:$0xff] }
 0x121   : > { %v3871_v22 = vld [vmem:[#allocation2 + $0x109] sm:$0xff] }
 0x122   : > { %v556_v28 = vmax.f32 %v513_v25, 0.0  ;;  %v3882_v25 = vld [vmem:[#allocation2 + $0x38] sm:$0xff] }
 0x123   : > { %1325 = vrot.lane.b32.xlu0 %v1971_v21, %s3375_s10  ;;  %908 = vrot.lane.b32.xlu1 %v1970_v14, %s3375_s10  ;;  %v510_v14 = vadd.f32 %v3545_v27, %v509_v13 }
 0x124   : > { %796 = vrot.lane.b32.xlu2 %v3701_v57, %s3374_s9  ;;  %634 = vst.msk [vmem:[#allocation2 + $0x151] sm:$0xff] %vm316_vm1, %v556_v28 }
 0x125   : > { %v3763_v34 = vpop.permute.xlu0 %1331  ;;  %v3765_v35 = vpop.permute.xlu1 %1247  ;;  %v555_v16 = vmax.f32 %v510_v14, 0.0 }
 0x126   : > { %v3767_v36 = vpop.permute.xlu2 %1333 }
 0x127   : > { %633 = vst.msk [vmem:[#allocation2 + $0x141] sm:$0xff] %vm316_vm1, %v555_v16  ;;  %v515_v37 = vpop.f32.mrf.mxu1  ;;  %v3869_v16 = vld [vmem:[#allocation2 + $0x112] sm:$0xff] }
 0x12b   : > { %910 = vrot.lane.b32.xlu0 %v1971_v21, %s3375_s10  ;;  %2040 = vrot.lane.b32.xlu1 %v1940_v38, %s3374_s9 }
 0x12c   : > { %2038 = vrot.lane.b32.xlu2 %v3717_v3, %s3374_s9 }
 0x12d   : > { %v3775_v44 = vpop.permute.xlu0 %916  ;;  %v3777_v45 = vpop.permute.xlu1 %774 }
 0x12e   : > { %5229 = vst [vmem:[#allocation8_spill] sm:$0xff] %v3775_v44  ;;  %v3779_v46 = vpop.permute.xlu2 %1375 }
 0x133   : > { %800 = vrot.lane.b32.xlu0 %v3782_v50, %s3374_s9  ;;  %1199 = vrot.lane.b32.xlu1 %v1940_v38, %s3374_s9 }
 0x134   : > { %1197 = vrot.lane.b32.xlu2 %v3717_v3, %s3374_s9  ;;  %v554_v3 = vmax.f32 %v507_v2, 0.0 }
 0x135   : > { %v3794_v55 = vpop.permute.xlu0 %1377  ;;  %v1318_v56 = vpop.permute.xlu1 %1317 }
 0x136   : > { %v3796_v58 = vpop.permute.xlu2 %1249  ;;  %v1444_v59 = vsel %vm1024_vm5, %v1412_v54, %v1318_v56  ;;  %632 = vst.msk [vmem:[#allocation2 + $0x139] sm:$0xff] %vm316_vm1, %v554_v3  ;;  %v518_v3 = vpop.f32.mrf.mxu1 }
 0x137   : > { %3207 = vmatmul.msk.f32.gmra.mxu1 %vm1478_vm4, %v1444_v59  ;;  %v519_v13 = vadd.f32 %v3545_v27, %v518_v3  ;;  %v3893_v3 = vld [vmem:[#allocation2 + $0x122] sm:$0xff] }
 0x139   : > { %v558_v14 = vmax.f32 %v519_v13, 0.0  ;;  %v3897_v13 = vld [vmem:[#allocation2 + $0xfa] sm:$0xff] }
 0x13b   : > { %786 = vrot.lane.b32.xlu0 %v681_v62, %s3374_s9  ;;  %2170 = vrot.lane.b32.xlu1 %v1973_v63, %s3375_s10  ;;  %636 = vst.msk [vmem:[#allocation2 + $0x169] sm:$0xff] %vm316_vm1, %v558_v14 }
 0x13c   : > { %2180 = vrot.lane.b32.xlu2 %v3802_v4, %s3375_s10 }
 0x13d   : > { %v3808_v5 = vpop.permute.xlu0 %792  ;;  %v3810_v8 = vpop.permute.xlu1 %902  ;;  %v3966_v44 = vld [vmem:[#allocation2 + $0x139] sm:$0xff] }
 0x13e   : > { %5230 = vst [vmem:[#allocation9_spill] sm:$0xff] %v3808_v5  ;;  %v3812_v9 = vpop.permute.xlu2 %776 }
 0x143   : > { %802 = vrot.lane.b32.xlu0 %v3815_v15, %s3374_s9  ;;  %1329 = vrot.lane.b32.xlu1 %v1973_v63, %s3375_s10 }
 0x144   : > { %784 = vrot.lane.b32.xlu2 %v1940_v38, %s3374_s9  ;;  %v516_v38 = vadd.f32 %v3545_v27, %v515_v37 }
 0x145   : > { %v3822_v19 = vpop.permute.xlu0 %2048  ;;  %v3824_v20 = vpop.permute.xlu1 %2046 }
 0x146   : > { %5231 = vst [vmem:[#allocation10_spill] sm:$0xff] %v3822_v19  ;;  %v3826_v21 = vpop.permute.xlu2 %2032  ;;  %v557_v41 = vmax.f32 %v516_v38, 0.0  ;;  %v521_v38 = vpop.f32.mrf.mxu1 }
 0x147   : > { %5232 = vst [vmem:[#allocation11_spill] sm:$0xff] %v3824_v20  ;;  %v3950_v20 = vld [vmem:[#allocation2 + $0x12a] sm:$0xff] }
 0x148   : > { %635 = vst.msk [vmem:[#allocation2 + $0x159] sm:$0xff] %vm316_vm1, %v557_v41 }
 0x14b   : > { %2042 = vrot.lane.b32.xlu0 %v681_v62, %s3374_s9  ;;  %914 = vrot.lane.b32.xlu1 %v1973_v63, %s3375_s10 }
 0x14c   : > { %2168 = vrot.lane.b32.xlu2 %v1972_v29, %s3375_s10 }
 0x14d   : > { %v3833_v30 = vpop.permute.xlu0 %2160  ;;  %v3835_v32 = vpop.permute.xlu1 %1205 }
 0x14e   : > { %v1192_v33 = vpop.permute.xlu2 %1191 }
 0x14f   : > { %v1413_v48 = vsel %vm316_vm1, %v3843_v47, %v1192_v33  ;;  %v3946_v5 = vld [vmem:[#allocation2 + $0x152] sm:$0xff] }
 0x150   : > { %5244 = vst [vmem:[#allocation23_spill] sm:$0xff] %v3946_v5  ;;  %v3962_v42 = vld [vmem:[#allocation2 + $0x159] sm:$0xff] }
 0x151   : > { %5248 = vst [vmem:[#allocation27_spill] sm:$0xff] %v3962_v42 }
 0x153   : > { %1201 = vrot.lane.b32.xlu0 %v681_v62, %s3374_s9  ;;  %1223 = vrot.lane.b32.xlu1 %v3838_v39, %s3374_s9 }
 0x154   : > { %1327 = vrot.lane.b32.xlu2 %v1972_v29, %s3375_s10 }
 0x155   : > { %v1320_v51 = vpop.permute.xlu0 %1319  ;;  %v3849_v54 = vpop.permute.xlu1 %794 }
 0x156   : > { %5233 = vst [vmem:[#allocation12_spill] sm:$0xff] %v3849_v54  ;;  %v1445_v56 = vsel %vm1024_vm5, %v1413_v48, %v1320_v51  ;;  %v3852_v59 = vpop.permute.xlu2 %778  ;;  %v522_v48 = vadd.f32 %v3545_v27, %v521_v38  ;;  %v3916_v38 = vld [vmem:[#allocation2 + $0x10a] sm:$0xff] }
 0x157   : > { %3208 = vmatmul.msk.f32.gmra.mxu1 %vm1478_vm4, %v1445_v56  ;;  %v3891_v56 = vld [vmem:[#allocation2 + $0x121] sm:$0xff]  ;;  %v3934_v54 = vld [vmem:[#allocation2 + $0x111] sm:$0xff] }
 0x158   : > { %v559_v51 = vmax.f32 %v522_v48, 0.0 }
 0x15a   : > { %637 = vst.msk [vmem:[#allocation2 + $0x171] sm:$0xff] %vm316_vm1, %v559_v51 }
 0x15b   : > { %1207 = vrot.lane.b32.xlu0 %v3628_v12, %s3374_s9  ;;  %1225 = vrot.lane.b32.xlu1 %v3855_v61, %s3374_s9  ;;  %v3875_v12 = vld [vmem:[#allocation2 + $0xf2] sm:$0xff] }
 0x15c   : > { %912 = vrot.lane.b32.xlu2 %v1972_v29, %s3375_s10 }
 0x15d   : > { %v3862_v62 = vpop.permute.xlu0 %904  ;;  %v3864_v63 = vpop.permute.xlu1 %2034 }
 0x15e   : > { %v3866_v2 = vpop.permute.xlu2 %2162 }
 0x163   : > { %1357 = vrot.lane.b32.xlu0 %v3869_v16, %s3375_s10  ;;  %1227 = vrot.lane.b32.xlu1 %v3871_v22, %s3374_s9 }
 0x164   : > { %1351 = vrot.lane.b32.xlu2 %v3875_v12, %s3375_s10 }
 0x165   : > { %v3884_v28 = vpop.permute.xlu0 %2178  ;;  %v1194_v29 = vpop.permute.xlu1 %1193 }
 0x166   : > { %5234 = vst [vmem:[#allocation13_spill] sm:$0xff] %v3884_v28  ;;  %v1322_v33 = vpop.permute.xlu2 %1321  ;;  %v1414_v37 = vsel %vm316_vm1, %v3882_v25, %v1194_v29  ;;  %v3928_v28 = vld [vmem:[#allocation2 + $0x141] sm:$0xff] }
 0x167   : > { %v1446_v41 = vsel %vm1024_vm5, %v1414_v37, %v1322_v33  ;;  %v3910_v33 = vld [vmem:[#allocation2 + $0x13a] sm:$0xff]  ;;  %v3912_v37 = vld [vmem:[#allocation2 + $0x129] sm:$0xff]  ;;  %5239 = vst [vmem:[#allocation18_spill] sm:$0xff] %v3928_v28 }
 0x168   : > { %3209 = vmatmul.msk.f32.gmra.mxu1 %vm1478_vm4, %v1446_v41 }
 0x16b   : > { %1231 = vrot.lane.b32.xlu0 %v3891_v56, %s3374_s9  ;;  %1359 = vrot.lane.b32.xlu1 %v3893_v3, %s3375_s10 }
 0x16c   : > { %1353 = vrot.lane.b32.xlu2 %v3897_v13, %s3375_s10 }
 0x16d   : > { %v3904_v27 = vpop.permute.xlu0 %780  ;;  %v3906_v14 = vpop.permute.xlu1 %2176 }
 0x16e   : > { %5235 = vst [vmem:[#allocation14_spill] sm:$0xff] %v3906_v14  ;;  %v3908_v29 = vpop.permute.xlu2 %906  ;;  %v3930_v14 = vld [vmem:[#allocation2 + $0x142] sm:$0xff] }
 0x16f   : > { %5240 = vst [vmem:[#allocation19_spill] sm:$0xff] %v3930_v14 }
 0x173   : > { %1363 = vrot.lane.b32.xlu0 %v3910_v33, %s3375_s10  ;;  %1233 = vrot.lane.b32.xlu1 %v3912_v37, %s3374_s9 }
 0x174   : > { %1355 = vrot.lane.b32.xlu2 %v3916_v38, %s3375_s10 }
 0x175   : > { %v3922_v41 = vpop.permute.xlu0 %2036  ;;  %v3924_v48 = vpop.permute.xlu1 %2052 }
 0x176   : > { %5236 = vst [vmem:[#allocation15_spill] sm:$0xff] %v3922_v41  ;;  %v3926_v51 = vpop.permute.xlu2 %2050  ;;  %v4090_v41 = vld [vmem:[#allocation2 + $0xda] sm:$0xff] }
 0x177   : > { %5237 = vst [vmem:[#allocation16_spill] sm:$0xff] %v3924_v48 }
 0x178   : > { %5238 = vst [vmem:[#allocation17_spill] sm:$0xff] %v3926_v51  ;;  %v3944_v51 = vld [vmem:[#allocation2 + $0x151] sm:$0xff] }
 0x179   : > { %5243 = vst [vmem:[#allocation22_spill] sm:$0xff] %v3944_v51 }
 0x17b   : > { %1237 = vrot.lane.b32.xlu0 %v3928_v28, %s3374_s9  ;;  %1365 = vrot.lane.b32.xlu1 %v3930_v14, %s3375_s10  ;;  %v3980_v14 = vld [vmem:[#allocation2 + $0x16a] sm:$0xff] }
 0x17c   : > { %1229 = vrot.lane.b32.xlu2 %v3934_v54, %s3374_s9  ;;  %5250 = vst [vmem:[#allocation29_spill] sm:$0xff] %v3980_v14 }
 0x17d   : > { %v1196_v19 = vpop.permute.xlu0 %1195  ;;  %v3940_v26 = vpop.permute.xlu1 %782 }
 0x17e   : > { %5241 = vst [vmem:[#allocation20_spill] sm:$0xff] %v3940_v26  ;;  %v3942_v48 = vpop.permute.xlu2 %796  ;;  %v4002_v26 = vld [vmem:[#allocation2 + $0xb2] sm:$0xff] }
 0x17f   : > { %5242 = vst [vmem:[#allocation21_spill] sm:$0xff] %v3942_v48 }
 0x183   : > { %1239 = vrot.lane.b32.xlu0 %v3944_v51, %s3374_s9  ;;  %1367 = vrot.lane.b32.xlu1 %v3946_v5, %s3375_s10  ;;  %v3970_v5 = vld [vmem:[#allocation2 + $0x48] sm:$0xff] }
 0x184   : > { %1361 = vrot.lane.b32.xlu2 %v3950_v20, %s3375_s10 }
 0x185   : > { %v3956_v24 = vpop.permute.xlu0 %798  ;;  %v3958_v1 = vpop.permute.xlu1 %2164 }
 0x186   : > { %5245 = vst [vmem:[#allocation24_spill] sm:$0xff] %v3956_v24  ;;  %v3960_v48 = vpop.permute.xlu2 %2038  ;;  %v1415_v24 = vsel %vm316_vm1, %v3970_v5, %v1196_v19 }
 0x187   : > { %5246 = vst [vmem:[#allocation25_spill] sm:$0xff] %v3958_v1  ;;  %v3988_v1 = vld [vmem:[#allocation2 + $0x50] sm:$0xff] }
 0x188   : > { %5247 = vst [vmem:[#allocation26_spill] sm:$0xff] %v3960_v48 }
 0x189   : > { %5252 = vst [vmem:[#allocation31_spill] sm:$0xff] %v3988_v1 }
 0x18b   : > { %2054 = vrot.lane.b32.xlu0 %v3729_v11, %s3374_s9  ;;  %1241 = vrot.lane.b32.xlu1 %v3962_v42, %s3374_s9  ;;  %v3984_v42 = vld [vmem:[#allocation2 + $0x15a] sm:$0xff] }
 0x18c   : > { %1235 = vrot.lane.b32.xlu2 %v3966_v44, %s3374_s9  ;;  %5251 = vst [vmem:[#allocation30_spill] sm:$0xff] %v3984_v42 }
 0x18d   : > { %v3976_v17 = vpop.permute.xlu0 %2166  ;;  %v1324_v51 = vpop.permute.xlu1 %1323 }
 0x18e   : > { %5249 = vst [vmem:[#allocation28_spill] sm:$0xff] %v3976_v17  ;;  %v1198_v28 = vpop.permute.xlu2 %1197  ;;  %v1447_v48 = vsel %vm1024_vm5, %v1415_v24, %v1324_v51 }
 0x18f   : > { %3210 = vmatmul.msk.f32.gmra.mxu1 %vm1478_vm4, %v1447_v48  ;;  %v1416_v24 = vsel %vm316_vm1, %v3988_v1, %v1198_v28 }
 0x193   : > { %1371 = vrot.lane.b32.xlu0 %v3980_v14, %s3375_s10  ;;  %1335 = vrot.lane.b32.xlu1 %v3682_v49, %s3375_s10  ;;  %v4000_v14 = vld [vmem:[#allocation2 + $0x171] sm:$0xff] }
 0x194   : > { %1369 = vrot.lane.b32.xlu2 %v3984_v42, %s3375_s10  ;;  %5254 = vst [vmem:[#allocation33_spill] sm:$0xff] %v4000_v14  ;;  %v4006_v42 = vld [vmem:[#allocation2 + $0x169] sm:$0xff] }
 0x195   : > { %v1326_v19 = vpop.permute.xlu0 %1325  ;;  %v3994_v48 = vpop.permute.xlu1 %908  ;;  %5255 = vst [vmem:[#allocation34_spill] sm:$0xff] %v4006_v42 }
 0x196   : > { %v1448_v51 = vsel %vm1024_vm5, %v1416_v24, %v1326_v19  ;;  %v3997_v17 = vpop.permute.xlu2 %2180 }
 0x197   : > { %5253 = vst [vmem:[#allocation32_spill] sm:$0xff] %v3997_v17  ;;  %3211 = vmatmul.msk.f32.gmra.mxu1 %vm1478_vm4, %v1448_v51  ;;  %v4018_v51 = vld [vmem:[#allocation2 + $0x172] sm:$0xff] }
 0x198   : > { %5259 = vst [vmem:[#allocation38_spill] sm:$0xff] %v4018_v51 }
 0x19b   : > { %1245 = vrot.lane.b32.xlu0 %v4000_v14, %s3374_s9  ;;  %2182 = vrot.lane.b32.xlu1 %v4002_v26, %s3375_s10 }
 0x19c   : > { %1243 = vrot.lane.b32.xlu2 %v4006_v42, %s3374_s9 }
 0x19d   : > { %v4012_v28 = vpop.permute.xlu0 %910  ;;  %v4016_v19 = vpop.permute.xlu1 %2040 }
 0x19e   : > { %5256 = vst [vmem:[#allocation35_spill] sm:$0xff] %v4012_v28  ;;  %v4014_v24 = vpop.permute.xlu2 %784  ;;  %v4030_v28 = vld [vmem:[#allocation2 + $0xc2] sm:$0xff] }
 0x19f   : > { %5257 = vst [vmem:[#allocation36_spill] sm:$0xff] %v4014_v24 }
 0x1a0   : > { %5258 = vst [vmem:[#allocation37_spill] sm:$0xff] %v4016_v19 }
 0x1a3   : > { %1337 = vrot.lane.b32.xlu0 %v3669_v40, %s3375_s10  ;;  %1373 = vrot.lane.b32.xlu1 %v4018_v51, %s3375_s10  ;;  %v4038_v51 = vld [vmem:[#allocation2 + $0x60] sm:$0xff] }
 0x1a4   : > { %918 = vrot.lane.b32.xlu2 %v3622_v10, %s3375_s10  ;;  %5262 = vst [vmem:[#allocation41_spill] sm:$0xff] %v4038_v51 }
 0x1a5   : > { %v4026_v17 = vpop.permute.xlu0 %800  ;;  %v1200_v42 = vpop.permute.xlu1 %1199 }
 0x1a6   : > { %5260 = vst [vmem:[#allocation39_spill] sm:$0xff] %v4026_v17  ;;  %v4028_v14 = vpop.permute.xlu2 %2168  ;;  %v1417_v10 = vsel %vm316_vm1, %v4038_v51, %v1200_v42 }
 0x1a7   : > { %5261 = vst [vmem:[#allocation40_spill] sm:$0xff] %v4028_v14 }
 0x1ab   : > { %2184 = vrot.lane.b32.xlu0 %v4030_v28, %s3375_s10  ;;  %920 = vrot.lane.b32.xlu1 %v3682_v49, %s3375_s10 }
 0x1ac   : > { %1209 = vrot.lane.b32.xlu2 %v3654_v31, %s3374_s9 }
 0x1ad   : > { %v4040_v19 = vpop.permute.xlu0 %786  ;;  %v4044_v14 = vpop.permute.xlu1 %2170 }
 0x1ae   : > { %5263 = vst [vmem:[#allocation42_spill] sm:$0xff] %v4040_v19  ;;  %v1328_v17 = vpop.permute.xlu2 %1327 }
 0x1af   : > { %5264 = vst [vmem:[#allocation43_spill] sm:$0xff] %v4044_v14  ;;  %v1449_v24 = vsel %vm1024_vm5, %v1417_v10, %v1328_v17  ;;  %v4072_v10 = vld [vmem:[#allocation2 + $0xca] sm:$0xff] }
 0x1b0   : > { %3212 = vmatmul.msk.f32.gmra.mxu1 %vm1478_vm4, %v1449_v24  ;;  %v4068_v24 = vld [vmem:[#allocation2 + $0xd9] sm:$0xff] }
 0x1b3   : > { %922 = vrot.lane.b32.xlu0 %v3669_v40, %s3375_s10  ;;  %1211 = vrot.lane.b32.xlu1 %v3701_v57, %s3374_s9 }
 0x1b4   : > { %2056 = vrot.lane.b32.xlu2 %v3782_v50, %s3374_s9 }
 0x1b5   : > { %v4054_v31 = vpop.permute.xlu0 %802  ;;  %v1330_v42 = vpop.permute.xlu1 %1329 }
 0x1b6   : > { %5265 = vst [vmem:[#allocation44_spill] sm:$0xff] %v4054_v31  ;;  %v4056_v49 = vpop.permute.xlu2 %912 }
 0x1b7   : > { %5266 = vst [vmem:[#allocation45_spill] sm:$0xff] %v4056_v49 }
 0x1bb   : > { %1213 = vrot.lane.b32.xlu0 %v3729_v11, %s3374_s9  ;;  %2058 = vrot.lane.b32.xlu1 %v3815_v15, %s3374_s9  ;;  %v4078_v11 = vld [vmem:[#allocation2 + $0x68] sm:$0xff] }
 0x1bc   : > { %1339 = vrot.lane.b32.xlu2 %v3802_v4, %s3375_s10  ;;  %5269 = vst [vmem:[#allocation48_spill] sm:$0xff] %v4078_v11 }
 0x1bd   : > { %v4064_v40 = vpop.permute.xlu0 %2042  ;;  %v4066_v17 = vpop.permute.xlu1 %914 }
 0x1be   : > { %5267 = vst [vmem:[#allocation46_spill] sm:$0xff] %v4064_v40  ;;  %v1352_v57 = vpop.permute.xlu2 %1351 }
 0x1bf   : > { %5268 = vst [vmem:[#allocation47_spill] sm:$0xff] %v4066_v17  ;;  %v4082_v17 = vld [vmem:[#allocation2 + $0xf0] sm:$0xff] }
 0x1c0   : > { %5270 = vst [vmem:[#allocation49_spill] sm:$0xff] %v4082_v17 }
 0x1c3   : > { %2060 = vrot.lane.b32.xlu0 %v4068_v24, %s3374_s9  ;;  %1341 = vrot.lane.b32.xlu1 %v4002_v26, %s3375_s10 }
 0x1c4   : > { %2186 = vrot.lane.b32.xlu2 %v4072_v10, %s3375_s10 }
 0x1c5   : > { %v1202_v31 = vpop.permute.xlu0 %1201  ;;  %v1224_v19 = vpop.permute.xlu1 %1223 }
 0x1c6   : > { %v1418_v14 = vsel %vm316_vm1, %v4078_v11, %v1202_v31  ;;  %v1354_v40 = vpop.permute.xlu2 %1353  ;;  %v1429_v49 = vsel %vm316_vm1, %v4082_v17, %v1224_v19  ;;  %v4101_v19 = vld [vmem:[#allocation2 + $0x78] sm:$0xff]  ;;  %v4120_v11 = vld [vmem:[#allocation2 + $0x80] sm:$0xff] }
 0x1c7   : > { %v1450_v51 = vsel %vm1024_vm5, %v1418_v14, %v1330_v42  ;;  %v1461_v1 = vsel %vm1024_vm5, %v1429_v49, %v1352_v57  ;;  %v1058_v14 = vld [vmem:[%s5193_s3 + $0x8] sm:$0xf]  ;;  %v4109_v49 = vld [vmem:[#allocation2 + $0xf8] sm:$0xff] }
 0x1c8   : > { %3213 = vmatmul.msk.f32.gmra.mxu1 %vm1478_vm4, %v1450_v51  ;;  %3224 = vmatmul.msk.f32.vlgmr.msra.gmra.mxu2 %vm1478_vm4, %v1461_v1  ;;  %v1419_v1 = vsel %vm316_vm1, %v4101_v19, %v3695_v53  ;;  %v1420_v53 = vsel %vm316_vm1, %v4120_v11, %v3835_v32  ;;  %v4146_v32 = vld [vmem:[#allocation2 + $0x110] sm:$0xff] }
 0x1c9   : > { %3238 = vmatpush.msk.msrb.mxu2 %vm413_vm0, %v1058_v14  ;;  %v4118_v14 = vld [vmem:[#allocation2 + $0xe2] sm:$0xff]  ;;  %5272 = vst [vmem:[#allocation51_spill] sm:$0xff] %v4146_v32 }
 0x1cb   : > { %1343 = vrot.lane.b32.xlu0 %v4030_v28, %s3375_s10  ;;  %2188 = vrot.lane.b32.xlu1 %v4090_v41, %s3375_s10 }
 0x1cc   : > { %924 = vrot.lane.b32.xlu2 %v3802_v4, %s3375_s10  ;;  %v1451_v4 = vsel %vm1024_vm5, %v1419_v1, %v3763_v34 }
 0x1cd   : > { %v4103_v51 = vpop.permute.xlu0 %1207  ;;  %v1226_v42 = vpop.permute.xlu1 %1225 }
 0x1ce   : > { %v1356_v31 = vpop.permute.xlu2 %1355  ;;  %v1430_v57 = vsel %vm316_vm1, %v4109_v49, %v1226_v42 }
 0x1cf   : > { %v1462_v17 = vsel %vm1024_vm5, %v1430_v57, %v1354_v40 }
 0x1d0   : > { %3214 = vmatmul.msk.f32.gmra.mxu1 %vm1478_vm4, %v1451_v4  ;;  %3225 = vmatmul.msk.f32.gmra.mxu2 %vm1478_vm4, %v1462_v17  ;;  %v4131_v17 = vld [vmem:[#allocation2 + $0x108] sm:$0xff]  ;;  %v1452_v4 = vsel %vm1024_vm5, %v1420_v53, %v3767_v36 }
 0x1d1   : > { %5271 = vst [vmem:[#allocation50_spill] sm:$0xff] %v4131_v17 }
 0x1d3   : > { %2190 = vrot.lane.b32.xlu0 %v4118_v14, %s3375_s10  ;;  %926 = vrot.lane.b32.xlu1 %v4002_v26, %s3375_s10 }
 0x1d4   : > { %1215 = vrot.lane.b32.xlu2 %v3782_v50, %s3374_s9  ;;  %v4142_v50 = vld [vmem:[#allocation2 + $0xe1] sm:$0xff] }
 0x1d5   : > { %v1358_v34 = vpop.permute.xlu0 %1357  ;;  %v1228_v1 = vpop.permute.xlu1 %1227 }
 0x1d6   : > { %v1230_v40 = vpop.permute.xlu2 %1229  ;;  %v1431_v42 = vsel %vm316_vm1, %v4131_v17, %v1228_v1 }
 0x1d7   : > { %v1463_v26 = vsel %vm1024_vm5, %v1431_v42, %v1356_v31  ;;  %v1432_v36 = vsel %vm316_vm1, %v4146_v32, %v1230_v40 }
 0x1d8   : > { %3215 = vmatmul.msk.f32.gmra.mxu1 %vm1478_vm4, %v1452_v4  ;;  %3226 = vmatmul.msk.f32.gmra.mxu2 %vm1478_vm4, %v1463_v26  ;;  %v1464_v1 = vsel %vm1024_vm5, %v1432_v36, %v1358_v34  ;;  %v1057_v36 = vld [vmem:[%s5193_s3] sm:$0xff] }
 0x1d9   : > { %1805 = vmatpush.msrb.mxu2 %v1057_v36  ;;  %v2635_v36 = vld [vmem:[%s3438_s8] sm:$0xff] }
 0x1db   : > { %928 = vrot.lane.b32.xlu0 %v4030_v28, %s3375_s10  ;;  %1217 = vrot.lane.b32.xlu1 %v3815_v15, %s3374_s9  ;;  %v3272_v28 = vld [vmem:[%s5193_s3 + $0x28] sm:$0xf]  ;;  %v4162_v15 = vld [vmem:[#allocation2 + $0x120] sm:$0xff] }
 0x1dc   : > { %2062 = vrot.lane.b32.xlu2 %v4142_v50, %s3374_s9  ;;  %3273 = vmatpush.msk.msra.mxu3 %vm413_vm0, %v3272_v28  ;;  %5273 = vst [vmem:[#allocation52_spill] sm:$0xff] %v4162_v15 }
 0x1dd   : > { %v1232_v57 = vpop.permute.xlu0 %1231  ;;  %v1360_v53 = vpop.permute.xlu1 %1359 }
 0x1de   : > { %v1362_v31 = vpop.permute.xlu2 %1361  ;;  %v1433_v40 = vsel %vm316_vm1, %v4162_v15, %v1232_v57  ;;  %v4177_v57 = vld [vmem:[#allocation2 + $0x128] sm:$0xff]  ;;  %v4189_v15 = vld [vmem:[#allocation2 + $0x138] sm:$0xff] }
 0x1df   : > { %v1465_v26 = vsel %vm1024_vm5, %v1433_v40, %v1360_v53  ;;  %5274 = vst [vmem:[#allocation53_spill] sm:$0xff] %v4177_v57 }
 0x1e0   : > { %3227 = vmatmul.msk.f32.gmra.mxu2 %vm1478_vm4, %v1464_v1 }
 0x1e3   : > { %1219 = vrot.lane.b32.xlu0 %v4068_v24, %s3374_s9  ;;  %2064 = vrot.lane.b32.xlu1 %v3838_v39, %s3374_s9 }
 0x1e4   : > { %1345 = vrot.lane.b32.xlu2 %v4072_v10, %s3375_s10 }
 0x1e5   : > { %v1364_v42 = vpop.permute.xlu0 %1363  ;;  %v1234_v4 = vpop.permute.xlu1 %1233 }
 0x1e6   : > { %v1236_v34 = vpop.permute.xlu2 %1235  ;;  %v1434_v53 = vsel %vm316_vm1, %v4177_v57, %v1234_v4  ;;  %v1085_v57 = vld [vmem:[#allocation2 + $0x150] sm:$0xff] }
 0x1e7   : > { %v1435_v4 = vsel %vm316_vm1, %v4189_v15, %v1236_v34 }
 0x1e8   : > { %3228 = vmatmul.msk.f32.gmra.mxu2 %vm1478_vm4, %v1465_v26  ;;  %v1466_v26 = vsel %vm1024_vm5, %v1434_v53, %v1362_v31 }
 0x1eb   : > { %2066 = vrot.lane.b32.xlu0 %v3855_v61, %s3374_s9  ;;  %1347 = vrot.lane.b32.xlu1 %v4090_v41, %s3375_s10 }
 0x1ec   : > { %2192 = vrot.lane.b32.xlu2 %v3875_v12, %s3375_s10 }
 0x1ed   : > { %v1238_v28 = vpop.permute.xlu0 %1237  ;;  %v1366_v40 = vpop.permute.xlu1 %1365 }
 0x1ee   : > { %v1370_v1 = vpop.permute.xlu2 %1369 }
 0x1f0   : > { %3229 = vmatmul.msk.f32.gmra.mxu2 %vm1478_vm4, %v1466_v26 }
 0x1f3   : > { %2699 = vrot.lane.b32.xlu0 %v2635_v36, %s3374_s9  ;;  %2194 = vrot.lane.b32.xlu1 %v3897_v13, %s3375_s10  ;;  %v1467_v36 = vsel %vm1024_vm5, %v1435_v4, %v1364_v42 }
 0x1f4   : > { %930 = vrot.lane.b32.xlu2 %v4072_v10, %s3375_s10  ;;  %v3271_v10 = vld [vmem:[%s5193_s3 + $0x20] sm:$0xff] }
 0x1f5   : > { %v1240_v32 = vpop.permute.xlu0 %1239  ;;  %v1368_v17 = vpop.permute.xlu1 %1367  ;;  %2437 = vmatpush.msra.mxu3 %v3271_v10  ;;  %v640_v10 = vld [vmem:[#allocation2] sm:$0xff] }
 0x1f6   : > { %v1437_v31 = vsel %vm316_vm1, %v1085_v57, %v1240_v32  ;;  %v1244_v53 = vpop.permute.xlu2 %1243  ;;  %v4207_v32 = vld [vmem:[#allocation2 + $0x140] sm:$0xff]  ;;  %v1086_v57 = vld [vmem:[#allocation2 + $0x158] sm:$0xff] }
 0x1f7   : > { %v1469_v26 = vsel %vm1024_vm5, %v1437_v31, %v1368_v17  ;;  %v1436_v17 = vsel %vm316_vm1, %v4207_v32, %v1238_v28  ;;  %v1087_v28 = vld [vmem:[#allocation2 + $0x168] sm:$0xff] }
 0x1f8   : > { %3232 = vmatmul.msk.f32.vlgmr.msrb.gmra.mxu3 %vm1478_vm4, %v1469_v26  ;;  %3230 = vmatmul.msk.f32.gmra.mxu2 %vm1478_vm4, %v1467_v36  ;;  %v2636_v36 = vld [vmem:[%s3438_s8 + $0x8] sm:$0xff] }
 0x1fb   : > { %932 = vrot.lane.b32.xlu0 %v4090_v41, %s3375_s10  ;;  %1349 = vrot.lane.b32.xlu1 %v4118_v14, %s3375_s10  ;;  %v1468_v41 = vsel %vm1024_vm5, %v1436_v17, %v1366_v40  ;;  %v992_v40 = vsel %vm316_vm1, %v640_v10, %v3678_v43  ;;  %v4228_v17 = vld [vmem:[#allocation2 + $0x90] sm:$0xff]  ;;  %v641_v43 = vld [vmem:[#allocation2 + $0x8] sm:$0xff] }
 0x1fc   : > { %1221 = vrot.lane.b32.xlu2 %v4142_v50, %s3374_s9 }
 0x1fd   : > { %v2055_v42 = vpop.permute.xlu0 %2054  ;;  %v1242_v4 = vpop.permute.xlu1 %1241 }
 0x1fe   : > { %v4213_v34 = vpop.permute.xlu2 %918  ;;  %v1438_v31 = vsel %vm316_vm1, %v1086_v57, %v1242_v4  ;;  %v1421_v4 = vsel %vm316_vm1, %v4228_v17, %v4103_v51  ;;  %v993_v51 = vsel %vm316_vm1, %v641_v43, %v3705_v60  ;;  %v4263_v60 = vld [vmem:[#allocation2 + $0x98] sm:$0xff] }
 0x1ff   : > { %v1470_v26 = vsel %vm1024_vm5, %v1438_v31, %v1370_v1  ;;  %v1439_v1 = vsel %vm316_vm1, %v1087_v28, %v1244_v53 }
 0x200   : > { %3231 = vmatmul.msk.f32.gmra.mxu2 %vm1478_vm4, %v1468_v41  ;;  %3233 = vmatmul.msk.f32.gmra.mxu3 %vm1478_vm4, %v1470_v26 }
 0x203   : > { %2701 = vrot.lane.b32.xlu0 %v2636_v36, %s3374_s9  ;;  %2068 = vrot.lane.b32.xlu1 %v3871_v22, %s3374_s9 }
 0x204   : > { %804 = vrot.lane.b32.xlu2 %v4068_v24, %s3374_s9  ;;  %v1025_v24 = vsel %vm1024_vm5, %v992_v40, %v3710_v0  ;;  %v4249_v0 = vld [vmem:[#allocation2 + $0xb0] sm:$0xff] }
 0x205   : > { %v1372_v57 = vpop.permute.xlu0 %1371  ;;  %v1336_v41 = vpop.permute.xlu1 %1335  ;;  %v2267_v10 = vsel %vm316_vm1, %v4249_v0, %v2055_v42 }
 0x206   : > { %v1210_v31 = vpop.permute.xlu2 %1209  ;;  %v1471_v26 = vsel %vm1024_vm5, %v1439_v1, %v1372_v57  ;;  %v1453_v36 = vsel %vm1024_vm5, %v1421_v4, %v1336_v41  ;;  %v1088_v57 = vld [vmem:[#allocation2 + $0x170] sm:$0xff] }
 0x207   : > { %3216 = vmatmul.msk.f32.gmra.mxu1 %vm1478_vm4, %v1453_v36  ;;  %v1422_v42 = vsel %vm316_vm1, %v4263_v60, %v1210_v31  ;;  %v994_v36 = vsel %vm316_vm1, %v3747_v23, %v3727_v7  ;;  %v2637_v31 = vld [vmem:[%s3438_s8 + $0x10] sm:$0xff]  ;;  %v4285_v7 = vld [vmem:[#allocation2 + $0xc0] sm:$0xff] }
 0x208   : > { %3234 = vmatmul.msk.f32.gmra.mxu3 %vm1478_vm4, %v1471_v26  ;;  %3239 = vmatmul.msk.f32.vlgmr.msrb.gmra.mxu2 %vm1478_vm4, %v1025_v24  ;;  %v1089_v23 = vld [vmem:[#allocation2 + $0x180] sm:$0xff] }
 0x20b   : > { %2070 = vrot.lane.b32.xlu0 %v3934_v54, %s3374_s9  ;;  %806 = vrot.lane.b32.xlu1 %v4142_v50, %s3374_s9  ;;  %v1026_v50 = vsel %vm1024_vm5, %v993_v51, %v3723_v6 }
 0x20c   : > { %2196 = vrot.lane.b32.xlu2 %v3916_v38, %s3375_s10 }
 0x20d   : > { %v1246_v53 = vpop.permute.xlu0 %1245  ;;  %v2183_v40 = vpop.permute.xlu1 %2182 }
 0x20e   : > { %v2057_v28 = vpop.permute.xlu2 %2056  ;;  %v4254_v1 = vsel %vm1024_vm5, %v2267_v10, %v2183_v40  ;;  %v1440_v6 = vsel %vm316_vm1, %v1088_v57, %v1246_v53 }
 0x20f   : > { %v2268_v43 = vsel %vm316_vm1, %v4285_v7, %v2057_v28 }
 0x210   : > { %3240 = vmatmul.msk.f32.gmra.mxu2 %vm1478_vm4, %v1026_v50 }
 0x213   : > { %808 = vrot.lane.b32.xlu0 %v3838_v39, %s3374_s9  ;;  %2198 = vrot.lane.b32.xlu1 %v3869_v16, %s3375_s10 }
 0x214   : > { %934 = vrot.lane.b32.xlu2 %v4118_v14, %s3375_s10  ;;  %v1027_v14 = vsel %vm1024_vm5, %v994_v36, %v3739_v18  ;;  %v1441_v18 = vsel %vm316_vm1, %v1089_v23, %v3765_v35  ;;  %v1090_v35 = vld [vmem:[#allocation2 + $0x188] sm:$0xff] }
 0x215   : > { %v1338_v4 = vpop.permute.xlu0 %1337  ;;  %v1374_v39 = vpop.permute.xlu1 %1373  ;;  %v1473_v50 = vsel %vm1024_vm5, %v1441_v18, %v3779_v46 }
 0x216   : > { %v1454_v41 = vsel %vm1024_vm5, %v1422_v42, %v1338_v4  ;;  %v1340_v26 = vpop.permute.xlu2 %1339  ;;  %v1472_v24 = vsel %vm1024_vm5, %v1440_v6, %v1374_v39  ;;  %v2638_v42 = vld [vmem:[%s3438_s8 + $0x18] sm:$0xff]  ;;  %v996_v4 = vsel %vm316_vm1, %v3843_v47, %v3812_v9  ;;  %v2639_v39 = vld [vmem:[%s3438_s8 + $0x20] sm:$0xff]  ;;  %v2256_v9 = vsel %vm316_vm1, %v3843_v47, %v3826_v21 }
 0x217   : > { %3217 = vmatmul.msk.f32.gmra.mxu1 %vm1478_vm4, %v1454_v41  ;;  %3235 = vmatmul.msk.f32.gmra.mxu3 %vm1478_vm4, %v1472_v24  ;;  %v1029_v41 = vsel %vm1024_vm5, %v996_v4, %v3862_v62  ;;  %v2288_v24 = vsel %vm1024_vm5, %v2256_v9, %v3833_v30  ;;  %v2257_v30 = vsel %vm316_vm1, %v3882_v25, %v3864_v63  ;;  %v4367_v47 = vld [vmem:[#allocation2 + $0xd8] sm:$0xff]  ;;  %v5279_v4 = vld [vmem:[#allocation35_spill] sm:$0xff] }
 0x218   : > { %3241 = vmatmul.msk.f32.gmra.mxu2 %vm1478_vm4, %v1027_v14  ;;  %v997_v14 = vsel %vm316_vm1, %v3882_v25, %v3852_v59  ;;  %v2289_v25 = vsel %vm1024_vm5, %v2257_v30, %v3866_v2 }
 0x21b   : > { %2200 = vrot.lane.b32.xlu0 %v3893_v3, %s3375_s10  ;;  %936 = vrot.lane.b32.xlu1 %v3875_v12, %s3375_s10  ;;  %v995_v12 = vsel %vm316_vm1, %v3787_v52, %v3777_v45  ;;  %v1442_v45 = vsel %vm316_vm1, %v1090_v35, %v3796_v58  ;;  %v4316_v52 = vld [vmem:[#allocation2 + $0xa8] sm:$0xff] }
 0x21c   : > { %2703 = vrot.lane.b32.xlu2 %v2637_v31, %s3374_s9  ;;  %v1028_v28 = vsel %vm1024_vm5, %v995_v12, %v3810_v8  ;;  %v1474_v58 = vsel %vm1024_vm5, %v1442_v45, %v3794_v55  ;;  %v5278_v45 = vld [vmem:[#allocation25_spill] sm:$0xff] }
 0x21d   : > { %v2185_v51 = vpop.permute.xlu0 %2184  ;;  %v4292_v10 = vpop.permute.xlu1 %920 }
 0x21e   : > { %v2187_v53 = vpop.permute.xlu2 %2186  ;;  %v4295_v40 = vsel %vm1024_vm5, %v2268_v43, %v2185_v51 }
 0x21f   : > { %3236 = vmatmul.msk.f32.gmra.mxu3 %vm1478_vm4, %v1473_v50 }
 0x220   : > { %3242 = vmatmul.msk.f32.gmra.mxu2 %vm1478_vm4, %v1028_v28 }
 0x223   : > { %938 = vrot.lane.b32.xlu0 %v3897_v13, %s3375_s10  ;;  %2705 = vrot.lane.b32.xlu1 %v2638_v42, %s3374_s9  ;;  %v5277_v42 = vld [vmem:[#allocation31_spill] sm:$0xff] }
 0x224   : > { %2072 = vrot.lane.b32.xlu2 %v3891_v56, %s3374_s9 }
 0x225   : > { %v4314_v46 = vpop.permute.xlu0 %922  ;;  %v1212_v57 = vpop.permute.xlu1 %1211 }
 0x226   : > { %v4318_v8 = vpop.permute.xlu2 %924  ;;  %v1423_v13 = vsel %vm316_vm1, %v4316_v52, %v1212_v57 }
 0x227   : > { %3237 = vmatmul.msk.f32.gmra.mxu3 %vm1478_vm4, %v1474_v58  ;;  %v1455_v6 = vsel %vm1024_vm5, %v1423_v13, %v1340_v26  ;;  %v4342_v26 = vld [vmem:[#allocation2 + $0xc8] sm:$0xff]  ;;  %v5280_v58 = vld [vmem:[#allocation19_spill] sm:$0xff] }
 0x228   : > { %3218 = vmatmul.msk.f32.gmra.mxu1 %vm1478_vm4, %v1455_v6  ;;  %3243 = vmatmul.msk.f32.gmra.mxu2 %vm1478_vm4, %v1029_v41  ;;  %v2640_v13 = vld [vmem:[%s3438_s8 + $0x28] sm:$0xff]  ;;  %v4414_v6 = vld [vmem:[#allocation2 + $0xe0] sm:$0xff] }
 0x22b   : > { %2707 = vrot.lane.b32.xlu0 %v2639_v39, %s3374_s9  ;;  %2074 = vrot.lane.b32.xlu1 %v3912_v37, %s3374_s9 }
 0x22c   : > { %810 = vrot.lane.b32.xlu2 %v3855_v61, %s3374_s9  ;;  %v1030_v61 = vsel %vm1024_vm5, %v997_v14, %v3908_v29  ;;  %v5282_v14 = vld [vmem:[#allocation36_spill] sm:$0xff] }
 0x22d   : > { %v1214_v55 = vpop.permute.xlu0 %1213  ;;  %v2059_v36 = vpop.permute.xlu1 %2058 }
 0x22e   : > { %v1216_v62 = vpop.permute.xlu2 %1215  ;;  %v2269_v31 = vsel %vm316_vm1, %v4342_v26, %v2059_v36  ;;  %v1424_v29 = vsel %vm316_vm1, %v4249_v0, %v1214_v55  ;;  %v5281_v55 = vld [vmem:[#allocation26_spill] sm:$0xff] }
 0x22f   : > { %3274 = vmatmul.msk.f32.vlgmr.msra.gmra.mxu3 %vm1478_vm4, %v2288_v24  ;;  %v4355_v21 = vsel %vm1024_vm5, %v2269_v31, %v2187_v53  ;;  %v1425_v2 = vsel %vm316_vm1, %v4285_v7, %v1216_v62  ;;  %v5275_v53 = vld [vmem:[#allocation15_spill] sm:$0xff]  ;;  %v2259_v9 = vsel %vm316_vm1, %v5277_v42, %v5281_v55  ;;  %v5294_v55 = vld [vmem:[#allocation5_spill] sm:$0xff] }
 0x230   : > { %3244 = vmatmul.msk.f32.gmra.mxu2 %vm1478_vm4, %v1030_v61  ;;  %v5284_v61 = vld [vmem:[#allocation28_spill] sm:$0xff] }
 0x231   : > { %v2291_v30 = vsel %vm1024_vm5, %v2259_v9, %v5284_v61  ;;  %v1002_v9 = vsel %vm316_vm1, %v4101_v19, %v5294_v55 }
 0x233   : > { %2076 = vrot.lane.b32.xlu0 %v3966_v44, %s3374_s9  ;;  %812 = vrot.lane.b32.xlu1 %v3871_v22, %s3374_s9  ;;  %v998_v22 = vsel %vm316_vm1, %v3970_v5, %v3904_v27 }
 0x234   : > { %2202 = vrot.lane.b32.xlu2 %v3950_v20, %s3375_s10  ;;  %v1031_v18 = vsel %vm1024_vm5, %v998_v22, %v3994_v48  ;;  %v2258_v48 = vsel %vm316_vm1, %v3970_v5, %v5275_v53  ;;  %v5289_v53 = vld [vmem:[#allocation48_spill] sm:$0xff] }
 0x235   : > { %v2061_v59 = vpop.permute.xlu0 %2060  ;;  %v1342_v51 = vpop.permute.xlu1 %1341  ;;  %v2290_v57 = vsel %vm1024_vm5, %v2258_v48, %v5278_v45  ;;  %v2642_v45 = vld [vmem:[%s3438_s8 + $0x38] sm:$0xff] }
 0x236   : > { %v2270_v23 = vsel %vm316_vm1, %v4367_v47, %v2061_v59  ;;  %v2063_v43 = vpop.permute.xlu2 %2062  ;;  %v1456_v63 = vsel %vm1024_vm5, %v1424_v29, %v1342_v51  ;;  %v5285_v59 = vld [vmem:[#allocation45_spill] sm:$0xff] }
 0x237   : > { %3219 = vmatmul.msk.f32.gmra.mxu1 %vm1478_vm4, %v1456_v63  ;;  %3275 = vmatmul.msk.f32.gmra.mxu3 %vm1478_vm4, %v2289_v25  ;;  %v2271_v41 = vsel %vm316_vm1, %v4414_v6, %v2063_v43  ;;  %v5286_v43 = vld [vmem:[#allocation18_spill] sm:$0xff]  ;;  %v5287_v63 = vld [vmem:[#allocation37_spill] sm:$0xff] }
 0x238   : > { %3245 = vmatmul.msk.f32.gmra.mxu2 %vm1478_vm4, %v1031_v18 }
 0x23b   : > { %814 = vrot.lane.b32.xlu0 %v3934_v54, %s3374_s9  ;;  %2204 = vrot.lane.b32.xlu1 %v3910_v33, %s3375_s10  ;;  %v5276_v54 = vld [vmem:[#allocation20_spill] sm:$0xff] }
 0x23c   : > { %940 = vrot.lane.b32.xlu2 %v3916_v38, %s3375_s10  ;;  %v999_v35 = vsel %vm316_vm1, %v5277_v42, %v5276_v54  ;;  %v5291_v42 = vld [vmem:[#allocation47_spill] sm:$0xff] }
 0x23d   : > { %v1344_v27 = vpop.permute.xlu0 %1343  ;;  %v2189_v28 = vpop.permute.xlu1 %2188  ;;  %v1032_v5 = vsel %vm1024_vm5, %v999_v35, %v5279_v4  ;;  %v5293_v4 = vld [vmem:[#allocation46_spill] sm:$0xff] }
 0x23e   : > { %v1457_v12 = vsel %vm1024_vm5, %v1425_v2, %v1344_v27  ;;  %v1346_v50 = vpop.permute.xlu2 %1345  ;;  %v4402_v38 = vsel %vm1024_vm5, %v2270_v23, %v2189_v28  ;;  %v2641_v23 = vld [vmem:[%s3438_s8 + $0x30] sm:$0xff]  ;;  %v5288_v27 = vld [vmem:[#allocation42_spill] sm:$0xff] }
 0x23f   : > { %3220 = vmatmul.msk.f32.gmra.mxu1 %vm1478_vm4, %v1457_v12  ;;  %3276 = vmatmul.msk.f32.gmra.mxu3 %vm1478_vm4, %v2290_v57  ;;  %v5290_v12 = vld [vmem:[#allocation40_spill] sm:$0xff]  ;;  %v5292_v57 = vld [vmem:[#allocation22_spill] sm:$0xff] }
 0x240   : > { %3246 = vmatmul.msk.f32.gmra.mxu2 %vm1478_vm4, %v1032_v5  ;;  %v2261_v5 = vsel %vm316_vm1, %v5289_v53, %v5293_v4 }
 0x243   : > { %2206 = vrot.lane.b32.xlu0 %v5280_v58, %s3375_s10  ;;  %942 = vrot.lane.b32.xlu1 %v3869_v16, %s3375_s10  ;;  %v5283_v16 = vld [vmem:[#allocation41_spill] sm:$0xff] }
 0x244   : > { %2709 = vrot.lane.b32.xlu2 %v2640_v13, %s3374_s9  ;;  %v1000_v31 = vsel %vm316_vm1, %v5283_v16, %v5282_v14  ;;  %v2260_v25 = vsel %vm316_vm1, %v5283_v16, %v5287_v63  ;;  %v5295_v14 = vld [vmem:[#allocation49_spill] sm:$0xff] }
 0x245   : > { %v2191_v39 = vpop.permute.xlu0 %2190  ;;  %v4422_v36 = vpop.permute.xlu1 %926  ;;  %v1033_v29 = vsel %vm1024_vm5, %v1000_v31, %v5285_v59  ;;  %v2292_v28 = vsel %vm1024_vm5, %v2260_v25, %v5290_v12  ;;  %v5296_v31 = vld [vmem:[#allocation43_spill] sm:$0xff] }
 0x246   : > { %v2193_v62 = vpop.permute.xlu2 %2192  ;;  %v4425_v24 = vsel %vm1024_vm5, %v2271_v41, %v2191_v39  ;;  %v2293_v61 = vsel %vm1024_vm5, %v2261_v5, %v5296_v31  ;;  %v5300_v25 = vld [vmem:[#allocation3_spill] sm:$0xff]  ;;  %v5307_v31 = vld [vmem:[#allocation29_spill] sm:$0xff] }
 0x247   : > { %3277 = vmatmul.msk.f32.gmra.mxu3 %vm1478_vm4, %v2291_v30  ;;  %v5297_v30 = vld [vmem:[#allocation8_spill] sm:$0xff] }
 0x248   : > { %3247 = vmatmul.msk.f32.gmra.mxu2 %vm1478_vm4, %v1033_v29  ;;  %v2827_v29 = vld [vmem:[%s5195_s5] sm:$0xff] }
 0x249   : > { %2943 = vmatpush.msrb.mxu0 %v2827_v29 }
 0x24b   : > { %944 = vrot.lane.b32.xlu0 %v3893_v3, %s3375_s10  ;;  %2711 = vrot.lane.b32.xlu1 %v2641_v23, %s3374_s9  ;;  %v4442_v51 = vpop.f32.mrf.mxu2  ;;  %v1001_v3 = vsel %vm316_vm1, %v5289_v53, %v5288_v27  ;;  %v5298_v23 = vld [vmem:[#allocation27_spill] sm:$0xff] }
 0x24c   : > { %2078 = vrot.lane.b32.xlu2 %v5286_v43, %s3374_s9  ;;  %v1034_v35 = vsel %vm1024_vm5, %v1001_v3, %v5291_v42  ;;  %v5299_v43 = vld [vmem:[#allocation23_spill] sm:$0xff]  ;;  %v5303_v42 = vld [vmem:[#allocation30_spill] sm:$0xff] }
 0x24d   : > { %v4444_v22 = vpop.permute.xlu0 %928  ;;  %v1218_v2 = vpop.permute.xlu1 %1217 }
 0x24e   : > { %v4449_v18 = vpop.permute.xlu2 %930  ;;  %v1426_v48 = vsel %vm316_vm1, %v4342_v26, %v1218_v2  ;;  %v2262_v2 = vsel %vm316_vm1, %v4101_v19, %v5300_v25 }
 0x24f   : > { %3278 = vmatmul.msk.f32.gmra.mxu3 %vm1478_vm4, %v2292_v28  ;;  %v1458_v54 = vsel %vm1024_vm5, %v1426_v48, %v1346_v50  ;;  %v5301_v48 = vld [vmem:[#allocation4_spill] sm:$0xff]  ;;  %v5302_v28 = vld [vmem:[#allocation6_spill] sm:$0xff] }
 0x250   : > { %3221 = vmatmul.msk.f32.gmra.mxu1 %vm1478_vm4, %v1458_v54  ;;  %3248 = vmatmul.msk.f32.gmra.mxu2 %vm1478_vm4, %v1034_v35  ;;  %v2294_v54 = vsel %vm1024_vm5, %v2262_v2, %v5302_v28  ;;  %v5304_v35 = vld [vmem:[#allocation11_spill] sm:$0xff]  ;;  %v5310_v2 = vld [vmem:[#allocation14_spill] sm:$0xff] }
 0x253   : > { %2713 = vrot.lane.b32.xlu0 %v2642_v45, %s3374_s9  ;;  %2080 = vrot.lane.b32.xlu1 %v5292_v57, %s3374_s9  ;;  %v4473_v50 = vpop.f32.mrf.mxu2  ;;  %v2263_v45 = vsel %vm316_vm1, %v4120_v11, %v5304_v35 }
 0x254   : > { %816 = vrot.lane.b32.xlu2 %v3891_v56, %s3374_s9  ;;  %v1035_v56 = vsel %vm1024_vm5, %v1002_v9, %v5297_v30 }
 0x255   : > { %v1220_v13 = vpop.permute.xlu0 %1219  ;;  %v2065_v39 = vpop.permute.xlu1 %2064 }
 0x256   : > { %v1222_v41 = vpop.permute.xlu2 %1221  ;;  %v2272_v16 = vsel %vm316_vm1, %v5295_v14, %v2065_v39  ;;  %v1427_v27 = vsel %vm316_vm1, %v4367_v47, %v1220_v13 }
 0x257   : > { %3279 = vmatmul.msk.f32.gmra.mxu3 %vm1478_vm4, %v2293_v61  ;;  %v4486_v59 = vsel %vm1024_vm5, %v2272_v16, %v2193_v62  ;;  %v2643_v16 = vld [vmem:[%s3438_s8 + $0x40] sm:$0xff]  ;;  %v1428_v29 = vsel %vm316_vm1, %v4414_v6, %v1222_v41  ;;  %v2644_v41 = vld [vmem:[%s3438_s8 + $0x48] sm:$0xff] }
 0x258   : > { %3249 = vmatmul.msk.f32.gmra.mxu2 %vm1478_vm4, %v1035_v56  ;;  %v5308_v56 = vld [vmem:[#allocation10_spill] sm:$0xff] }
 0x25b   : > { %2082 = vrot.lane.b32.xlu0 %v5298_v23, %s3374_s9  ;;  %818 = vrot.lane.b32.xlu1 %v3912_v37, %s3374_s9  ;;  %v4498_v63 = vpop.f32.mrf.mxu2  ;;  %v1003_v37 = vsel %vm316_vm1, %v4120_v11, %v5301_v48  ;;  %v5306_v11 = vld [vmem:[#allocation7_spill] sm:$0xff] }
 0x25c   : > { %2208 = vrot.lane.b32.xlu2 %v5299_v43, %s3375_s10  ;;  %v1036_v19 = vsel %vm1024_vm5, %v1003_v37, %v4213_v34  ;;  %v2295_v9 = vsel %vm1024_vm5, %v2263_v45, %v5306_v11  ;;  %v5312_v37 = vld [vmem:[#allocation34_spill] sm:$0xff]  ;;  %v5315_v45 = vld [vmem:[#allocation13_spill] sm:$0xff] }
 0x25d   : > { %v2067_v62 = vpop.permute.xlu0 %2066  ;;  %v1348_v3 = vpop.permute.xlu1 %1347  ;;  %v5316_v11 = vld [vmem:[#allocation33_spill] sm:$0xff] }
 0x25e   : > { %v4505_v53 = vpop.permute.xlu2 %804  ;;  %v1459_v12 = vsel %vm1024_vm5, %v1427_v27, %v1348_v3  ;;  %v2273_v34 = vsel %vm316_vm1, %v4109_v49, %v2067_v62  ;;  %v5309_v62 = vld [vmem:[#allocation12_spill] sm:$0xff]  ;;  %v5311_v3 = vld [vmem:[#allocation17_spill] sm:$0xff] }
 0x25f   : > { %3222 = vmatmul.msk.f32.gmra.mxu1 %vm1478_vm4, %v1459_v12  ;;  %3280 = vmatmul.msk.f32.gmra.mxu3 %vm1478_vm4, %v2294_v54  ;;  %v2265_v48 = vsel %vm316_vm1, %v4263_v60, %v5311_v3 }
 0x260   : > { %3250 = vmatmul.msk.f32.gmra.mxu2 %vm1478_vm4, %v1036_v19  ;;  %v5313_v19 = vld [vmem:[#allocation21_spill] sm:$0xff] }
 0x263   : > { %820 = vrot.lane.b32.xlu0 %v3966_v44, %s3374_s9  ;;  %2210 = vrot.lane.b32.xlu1 %v5303_v42, %s3375_s10  ;;  %v4527_v57 = vpop.f32.mrf.mxu2  ;;  %v5305_v44 = vld [vmem:[#allocation9_spill] sm:$0xff]  ;;  %v5314_v42 = vld [vmem:[#allocation50_spill] sm:$0xff] }
 0x264   : > { %946 = vrot.lane.b32.xlu2 %v3950_v20, %s3375_s10  ;;  %v1004_v39 = vsel %vm316_vm1, %v4228_v17, %v5305_v44 }
 0x265   : > { %v4529_v4 = vpop.permute.xlu0 %2699  ;;  %v2195_v13 = vpop.permute.xlu1 %2194  ;;  %v1037_v20 = vsel %vm1024_vm5, %v1004_v39, %v4292_v10  ;;  %v2264_v10 = vsel %vm316_vm1, %v4228_v17, %v5308_v56  ;;  %v699_v39 = vld [vmem:[#allocation2 + $0x141] sm:$0xff]  ;;  %v5318_v56 = vld [vmem:[#allocation24_spill] sm:$0xff] }
 0x266   : > { %v2197_v5 = vpop.permute.xlu2 %2196  ;;  %v4537_v55 = vsel %vm1024_vm5, %v2273_v34, %v2195_v13  ;;  %v2296_v27 = vsel %vm1024_vm5, %v2264_v10, %v5310_v2  ;;  %v2645_v13 = vld [vmem:[%s3438_s8 + $0x50] sm:$0xff]  ;;  %v1007_v10 = vsel %vm316_vm1, %v4249_v0, %v5318_v56  ;;  %v5320_v0 = vld [vmem:[#allocation38_spill] sm:$0xff]  ;;  %v1010_v56 = vsel %vm316_vm1, %v4367_v47, %v4505_v53 }
 0x267   : > { %3281 = vmatmul.msk.f32.gmra.mxu3 %vm1478_vm4, %v2295_v9 }
 0x268   : > { %3251 = vmatmul.msk.f32.gmra.mxu2 %vm1478_vm4, %v1037_v20 }
 0x26b   : > { %2212 = vrot.lane.b32.xlu0 %v5307_v31, %s3375_s10  ;;  %948 = vrot.lane.b32.xlu1 %v3910_v33, %s3375_s10  ;;  %v4551_v61 = vpop.f32.mrf.mxu2  ;;  %v1005_v33 = vsel %vm316_vm1, %v4263_v60, %v5309_v62  ;;  %v2297_v60 = vsel %vm1024_vm5, %v2265_v48, %v5315_v45  ;;  %v5322_v45 = vld [vmem:[#allocation44_spill] sm:$0xff] }
 0x26c   : > { %2715 = vrot.lane.b32.xlu2 %v2643_v16, %s3374_s9  ;;  %v1038_v17 = vsel %vm1024_vm5, %v1005_v33, %v4314_v46  ;;  %v5317_v16 = vld [vmem:[#allocation16_spill] sm:$0xff]  ;;  %v1040_v33 = vsel %vm1024_vm5, %v1007_v10, %v4422_v36  ;;  %v5321_v36 = vld [vmem:[#allocation39_spill] sm:$0xff] }
 0x26d   : > { %v4553_v30 = vpop.permute.xlu0 %932  ;;  %v1350_v43 = vpop.permute.xlu1 %1349  ;;  %v1008_v3 = vsel %vm316_vm1, %v4285_v7, %v5321_v36  ;;  %v1966_v36 = vld [vmem:[#allocation2 + $0x199] sm:$0xff] }
 0x26e   : > { %v4560_v23 = vpop.permute.xlu2 %934  ;;  %v1460_v25 = vsel %vm1024_vm5, %v1428_v29, %v1350_v43  ;;  %v5319_v43 = vld [vmem:[#allocation32_spill] sm:$0xff]  ;;  %v1041_v48 = vsel %vm1024_vm5, %v1008_v3, %v4444_v22  ;;  %v1043_v10 = vsel %vm1024_vm5, %v1010_v56, %v4553_v30  ;;  %v2648_v3 = vld [vmem:[%s3438_s8 + $0x68] sm:$0xff] }
 0x26f   : > { %3223 = vmatmul.msk.f32.gmra.mxu1 %vm1478_vm4, %v1460_v25  ;;  %3282 = vmatmul.msk.f32.gmra.mxu3 %vm1478_vm4, %v2296_v27  ;;  %v700_v25 = vld [vmem:[#allocation2 + $0x151] sm:$0xff] }
 0x270   : > { %3252 = vmatmul.msk.f32.gmra.mxu2 %vm1478_vm4, %v1038_v17 }
 0x273   : > { %950 = vrot.lane.b32.xlu0 %v5280_v58, %s3375_s10  ;;  %2717 = vrot.lane.b32.xlu1 %v2644_v41, %s3374_s9  ;;  %v4582_v12 = vpop.f32.mrf.mxu2  ;;  %v1006_v58 = vsel %vm316_vm1, %v4316_v52, %v5313_v19  ;;  %v1996_v19 = vld [vmem:[#allocation2 + $0x182] sm:$0xff] }
 0x274   : > { %2084 = vrot.lane.b32.xlu2 %v5312_v37, %s3374_s9  ;;  %v1039_v34 = vsel %vm1024_vm5, %v1006_v58, %v4318_v8  ;;  %v2266_v8 = vsel %vm316_vm1, %v4316_v52, %v5317_v16  ;;  %v1964_v52 = vld [vmem:[#allocation2 + $0x181] sm:$0xff]  ;;  %v732_v58 = vld [vmem:[#allocation2 + $0x152] sm:$0xff] }
 0x275   : > { %v4584_v28 = vpop.permute.xlu0 %2701  ;;  %v2069_v54 = vpop.permute.xlu1 %2068  ;;  %v2298_v62 = vsel %vm1024_vm5, %v2266_v8, %v5319_v43  ;;  %v2647_v43 = vld [vmem:[%s3438_s8 + $0x60] sm:$0xff] }
 0x276   : > { %v4586_v46 = vpop.permute.xlu2 %2703  ;;  %v2274_v35 = vsel %vm316_vm1, %v5314_v42, %v2069_v54  ;;  %v701_v54 = vld [vmem:[#allocation2 + $0x159] sm:$0xff] }
 0x277   : > { %3283 = vmatmul.msk.f32.gmra.mxu3 %vm1478_vm4, %v2297_v60  ;;  %v4600_v44 = vsel %vm1024_vm5, %v2274_v35, %v2197_v5  ;;  %v1009_v60 = vsel %vm316_vm1, %v4342_v26, %v5322_v45 }
 0x278   : > { %3253 = vmatmul.msk.f32.gmra.mxu2 %vm1478_vm4, %v1039_v34  ;;  %v1042_v34 = vsel %vm1024_vm5, %v1009_v60, %v4449_v18  ;;  %v1967_v60 = vld [vmem:[#allocation2 + $0x1a1] sm:$0xff] }
 0x27b   : > { %2719 = vrot.lane.b32.xlu0 %v2645_v13, %s3374_s9  ;;  %2086 = vrot.lane.b32.xlu1 %v5316_v11, %s3374_s9  ;;  %v4607_v9 = vpop.f32.mrf.mxu2  ;;  %v4619_v29 = vpop.f32.mrf.mxu3  ;;  %v2646_v13 = vld [vmem:[%s3438_s8 + $0x58] sm:$0xff] }
 0x27c   : > { %822 = vrot.lane.b32.xlu2 %v699_v39, %s3374_s9  ;;  %v1997_v39 = vld [vmem:[#allocation2 + $0x18a] sm:$0xff]  ;;  %v733_v11 = vld [vmem:[#allocation2 + $0x15a] sm:$0xff] }
 0x27d   : > { %v4609_v20 = vpop.permute.xlu0 %2070  ;;  %v807_v31 = vpop.permute.xlu1 %806 }
 0x27e   : > { %v4614_v5 = vpop.permute.xlu2 %2072  ;;  %v1011_v53 = vsel %vm316_vm1, %v4414_v6, %v807_v31 }
 0x27f   : > { %3284 = vmatmul.msk.f32.gmra.mxu3 %vm1478_vm4, %v2298_v62  ;;  %v734_v62 = vld [vmem:[#allocation2 + $0x16a] sm:$0xff] }
 0x280   : > { %3254 = vmatmul.msk.f32.gmra.mxu2 %vm1478_vm4, %v1040_v33 }
 0x283   : > { %2088 = vrot.lane.b32.xlu0 %v1964_v52, %s3374_s9  ;;  %824 = vrot.lane.b32.xlu1 %v700_v25, %s3374_s9  ;;  %v4631_v2 = vpop.f32.mrf.mxu2  ;;  %v4646_v37 = vpop.f32.mrf.mxu3  ;;  %v1965_v52 = vld [vmem:[#allocation2 + $0x189] sm:$0xff] }
 0x284   : > { %2214 = vrot.lane.b32.xlu2 %v5320_v0, %s3375_s10  ;;  %v1044_v0 = vsel %vm1024_vm5, %v1011_v53, %v4560_v23  ;;  %v4749_v53 = vld [vmem:[%s5194_s4] ss:$0 sm:$0xff] }
 0x285   : > { %v4633_v27 = vpop.permute.xlu0 %808  ;;  %v4637_v41 = vpop.permute.xlu1 %2198 }
 0x286   : > { %v4635_v17 = vpop.permute.xlu2 %810  ;;  %v1012_v23 = vsel %vm316_vm1, %v5295_v14, %v4633_v27 }
 0x287   : > { %3285 = vmatmul.msk.f32.gmra.mxu3 %vm1478_vm4, %v4254_v1 }
 0x288   : > { %3255 = vmatmul.msk.f32.gmra.mxu2 %vm1478_vm4, %v1041_v48 }
 0x28b   : > { %826 = vrot.lane.b32.xlu0 %v701_v54, %s3374_s9  ;;  %2216 = vrot.lane.b32.xlu1 %v1996_v19, %s3375_s10  ;;  %v4652_v7 = vpop.f32.mrf.mxu2  ;;  %v4667_v16 = vpop.f32.mrf.mxu3  ;;  %v702_v54 = vld [vmem:[#allocation2 + $0x169] sm:$0xff] }
 0x28c   : > { %952 = vrot.lane.b32.xlu2 %v732_v58, %s3375_s10  ;;  %v1595_v58 = vpop.f32.mrf.mxu1 }
 0x28d   : > { %v4654_v22 = vpop.permute.xlu0 %2200  ;;  %v937_v1 = vpop.permute.xlu1 %936 }
 0x28e   : > { %v4656_v35 = vpop.permute.xlu2 %2202  ;;  %v1045_v45 = vsel %vm1024_vm5, %v1012_v23, %v937_v1 }
 0x28f   : > { %3286 = vmatmul.msk.f32.gmra.mxu3 %vm1478_vm4, %v4295_v40 }
 0x290   : > { %3256 = vmatmul.msk.f32.gmra.mxu2 %vm1478_vm4, %v1042_v34  ;;  %v1998_v34 = vld [vmem:[#allocation2 + $0x19a] sm:$0xff] }
 0x293   : > { %2218 = vrot.lane.b32.xlu0 %v1997_v39, %s3375_s10  ;;  %954 = vrot.lane.b32.xlu1 %v733_v11, %s3375_s10  ;;  %v4672_v26 = vpop.f32.mrf.mxu2 }
 0x294   : > { %2721 = vrot.lane.b32.xlu2 %v2646_v13, %s3374_s9  ;;  %v703_v13 = vld [vmem:[#allocation2 + $0x171] sm:$0xff]  ;;  %v1598_v56 = vpop.f32.mrf.mxu1 }
 0x295   : > { %v939_v18 = vpop.permute.xlu0 %938  ;;  %v4676_v40 = vpop.permute.xlu1 %2705 }
 0x296   : > { %v4674_v8 = vpop.permute.xlu2 %940 }
 0x297   : > { %3287 = vmatmul.msk.f32.gmra.mxu3 %vm1478_vm4, %v4355_v21 }
 0x298   : > { %3257 = vmatmul.msk.f32.gmra.mxu2 %vm1478_vm4, %v1043_v10 }
 0x29a   : > { %v4687_v33 = vpop.f32.mrf.mxu3 }
 0x29b   : > { %956 = vrot.lane.b32.xlu0 %v734_v62, %s3375_s10  ;;  %2723 = vrot.lane.b32.xlu1 %v2647_v43, %s3374_s9  ;;  %v4692_v47 = vpop.f32.mrf.mxu2  ;;  %v1999_v43 = vld [vmem:[#allocation2 + $0x1a2] sm:$0xff]  ;;  %v2650_v62 = vld [vmem:[%s3438_s8 + $0x78] sm:$0xff] }
 0x29c   : > { %2090 = vrot.lane.b32.xlu2 %v1965_v52, %s3374_s9  ;;  %v1808_v52 = vadd.f32 %v4652_v7, %v1595_v58  ;;  %v1601_v23 = vpop.f32.mrf.mxu1 }
 0x29d   : > { %v4696_v21 = vpop.permute.xlu0 %2707  ;;  %v4700_v25 = vpop.permute.xlu1 %2074 }
 0x29e   : > { %v4698_v30 = vpop.permute.xlu2 %2709 }
 0x29f   : > { %3288 = vmatmul.msk.f32.gmra.mxu3 %vm1478_vm4, %v4402_v38 }
 0x2a0   : > { %3258 = vmatmul.msk.f32.gmra.mxu2 %vm1478_vm4, %v1044_v0 }
 0x2a2   : > { %v4708_v48 = vpop.f32.mrf.mxu3 }
 0x2a3   : > { %2092 = vrot.lane.b32.xlu1 %v1966_v36, %s3374_s9  ;;  %2725 = vrot.lane.b32.xlu0 %v2648_v3, %s3374_s9  ;;  %v4713_v6 = vpop.f32.mrf.mxu2 }
 0x2a4   : > { %828 = vrot.lane.b32.xlu2 %v702_v54, %s3374_s9 }
 0x2a5   : > { %v4715_v31 = vpop.permute.xlu0 %2076  ;;  %v813_v19 = vpop.permute.xlu1 %812 }
 0x2a6   : > { %v4717_v38 = vpop.permute.xlu2 %2078  ;;  %v1014_v7 = vsel %vm316_vm1, %v5314_v42, %v813_v19  ;;  %v2653_v42 = vld [vmem:[%s3438_s8 + $0x90] sm:$0xff]  ;;  %v1811_v19 = vadd.f32 %v4672_v26, %v1598_v56 }
 0x2a7   : > { %3289 = vmatmul.msk.f32.gmra.mxu3 %vm1478_vm4, %v4425_v24  ;;  %v1013_v24 = vsel %vm316_vm1, %v4109_v49, %v4635_v17  ;;  %v735_v17 = vld [vmem:[#allocation2 + $0x172] sm:$0xff] }
 0x2a8   : > { %3259 = vmatmul.msk.f32.gmra.mxu2 %vm1478_vm4, %v1045_v45  ;;  %v1046_v10 = vsel %vm1024_vm5, %v1013_v24, %v939_v18  ;;  %v1047_v45 = vsel %vm1024_vm5, %v1014_v7, %v4674_v8  ;;  %v5323_v56 = vld [vmem:[#allocation51_spill] sm:$0xff]  ;;  %v1814_v7 = vadd.f32 %v4692_v47, %v1601_v23  ;;  %v5324_v23 = vld [vmem:[#allocation52_spill] sm:$0xff] }
 0x2aa   : > { %v4726_v39 = vpop.f32.mrf.mxu3 }
 0x2ab   : > { %830 = vrot.lane.b32.xlu1 %v703_v13, %s3374_s9  ;;  %2094 = vrot.lane.b32.xlu0 %v1967_v60, %s3374_s9  ;;  %v4731_v14 = vpop.f32.mrf.mxu2  ;;  %v2651_v60 = vld [vmem:[%s3438_s8 + $0x80] sm:$0xff] }
 0x2ac   : > { %2220 = vrot.lane.b32.xlu2 %v1998_v34, %s3375_s10  ;;  %v2649_v34 = vld [vmem:[%s3438_s8 + $0x70] sm:$0xff] }
 0x2ad   : > { %v815_v27 = vpop.permute.xlu0 %814  ;;  %v4738_v11 = vpop.permute.xlu1 %2204 }
 0x2ae   : > { %v4733_v1 = vpop.permute.xlu2 %816 }
 0x2af   : > { %3290 = vmatmul.msk.f32.gmra.mxu3 %vm1478_vm4, %v4486_v59 }
 0x2b0   : > { %3260 = vmatmul.msk.f32.gmra.mxu2 %vm1478_vm4, %v1046_v10 }
 0x2b2   : > { %v2439_v49 = vpop.f32.mrf.mxu3 }
 0x2b3   : > { %2222 = vrot.lane.b32.xlu1 %v1999_v43, %s3375_s10  ;;  %2729 = vrot.lane.b32.xlu0 %v2650_v62, %s3374_s9  ;;  %v2535_v59 = vadd.f32 %v2439_v49, %v1808_v52  ;;  %v4754_v18 = vpop.f32.mrf.mxu2  ;;  %v1604_v52 = vpop.f32.mrf.mxu1 }
 0x2b4   : > { %958 = vrot.lane.b32.xlu2 %v735_v17, %s3375_s10 }
 0x2b5   : > { %v4758_v0 = vpop.permute.xlu0 %2206  ;;  %v2571_v36 = vadd.f32 %v4749_v53, %v2535_v59  ;;  %v943_v54 = vpop.permute.xlu1 %942  ;;  %v2654_v59 = vld [vmem:[%s3438_s8 + $0x98] sm:$0xff] }
 0x2b6   : > { %v4761_v3 = vpop.permute.xlu2 %2208 }
 0x2b7   : > { %v2603_v58 = vmax.f32 %v2571_v36, 0.0  ;;  %3291 = vmatmul.msk.f32.gmra.mxu3 %vm1478_vm4, %v4537_v55 }
 0x2b8   : > { %3261 = vmatmul.msk.f32.gmra.mxu2 %vm1478_vm4, %v1047_v45 }
 0x2b9   : > { %v2795_v13 = vsel %vm316_vm1, %v2603_v58, %v4529_v4  ;;  %v1015_v4 = vsel %vm316_vm1, %v5323_v56, %v815_v27 }
 0x2ba   : > { %v2442_v24 = vpop.f32.mrf.mxu3  ;;  %3306 = vmatmul.msk.f32.vlgmr.msrb.gmra.mxu0 %vm1024_vm5, %v2795_v13  ;;  %v1048_v49 = vsel %vm1024_vm5, %v1015_v4, %v943_v54  ;;  %v2276_v4 = vsel %vm316_vm1, %v5324_v23, %v4614_v5 }
 0x2bb   : > { %2731 = vrot.lane.b32.xlu1 %v2651_v60, %s3374_s9  ;;  %v2536_v55 = vadd.f32 %v2442_v24, %v1811_v19  ;;  %v4776_v10 = vpop.f32.mrf.mxu2  ;;  %2735 = vrot.lane.b32.xlu0 %v2653_v42, %s3374_s9  ;;  %v2652_v19 = vld [vmem:[%s3438_s8 + $0x88] sm:$0xff]  ;;  %v1607_v13 = vpop.f32.mrf.mxu1 }
 0x2bc   : > { %2727 = vrot.lane.b32.xlu2 %v2649_v34, %s3374_s9  ;;  %v1016_v34 = vsel %vm316_vm1, %v5324_v23, %v4733_v1 }
 0x2bd   : > { %v945_v8 = vpop.permute.xlu0 %944  ;;  %v2572_v43 = vadd.f32 %v4749_v53, %v2536_v55  ;;  %v4783_v62 = vpop.permute.xlu1 %2711 }
 0x2be   : > { %v947_v26 = vpop.permute.xlu2 %946  ;;  %v1049_v24 = vsel %vm1024_vm5, %v1016_v34, %v945_v8 }
 0x2bf   : > { %v2604_v17 = vmax.f32 %v2572_v43, 0.0  ;;  %3292 = vmatmul.msk.f32.gmra.mxu3 %vm1478_vm4, %v4600_v44  ;;  %v2275_v44 = vsel %vm316_vm1, %v5323_v56, %v4609_v20  ;;  %v1817_v20 = vadd.f32 %v4713_v6, %v1604_v52  ;;  %v2308_v6 = vsel %vm1024_vm5, %v2276_v4, %v4654_v22 }
 0x2c0   : > { %3262 = vmatmul.msk.f32.gmra.mxu2 %vm1478_vm4, %v1048_v49 }
 0x2c1   : > { %v2796_v36 = vsel %vm316_vm1, %v2604_v17, %v4584_v28  ;;  %v2307_v28 = vsel %vm1024_vm5, %v2275_v44, %v4637_v41 }
 0x2c2   : > { %v2445_v58 = vpop.f32.mrf.mxu3  ;;  %3307 = vmatmul.msk.f32.gmra.mxu0 %vm1024_vm5, %v2796_v36 }
 0x2c3   : > { %2737 = vrot.lane.b32.xlu1 %v2654_v59, %s3374_s9  ;;  %v2537_v27 = vadd.f32 %v2445_v58, %v1814_v7  ;;  %v4795_v54 = vpop.f32.mrf.mxu2  ;;  %v2656_v59 = vld [vmem:[%s3438_s8 + $0xa8] sm:$0xff]  ;;  %v1610_v58 = vpop.f32.mrf.mxu1 }
 0x2c4   : > { %2733 = vrot.lane.b32.xlu2 %v2652_v19, %s3374_s9  ;;  %2741 = vrot.lane.b32.xlu0 %v2656_v59, %s3374_s9  ;;  %v2655_v59 = vld [vmem:[%s3438_s8 + $0xa0] sm:$0xff] }
 0x2c5   : > { %v4797_v45 = vpop.permute.xlu0 %2713  ;;  %v2573_v60 = vadd.f32 %v4749_v53, %v2537_v27  ;;  %v4810_v42 = vpop.permute.xlu1 %2080  ;;  %v1820_v27 = vadd.f32 %v4731_v14, %v1607_v13  ;;  %v2657_v13 = vld [vmem:[%s3438_s8 + $0xb0] sm:$0xff] }
 0x2c6   : > { %v4803_v47 = vpop.permute.xlu2 %2715 }
 0x2c7   : > { %v2605_v55 = vmax.f32 %v2573_v60, 0.0  ;;  %3293 = vmatmul.msk.f32.gmra.mxu3 %vm1478_vm4, %v2307_v28  ;;  %v5325_v60 = vld [vmem:[#allocation53_spill] sm:$0xff] }
 0x2c8   : > { %3263 = vmatmul.msk.f32.gmra.mxu2 %vm1478_vm4, %v1049_v24  ;;  %v2277_v28 = vsel %vm316_vm1, %v5325_v60, %v4700_v25 }
 0x2c9   : > { %v2797_v41 = vsel %vm316_vm1, %v2605_v55, %v4586_v46  ;;  %v665_v46 = vld [vmem:[#allocation2 + $0x128] sm:$0xff]  ;;  %v2309_v14 = vsel %vm1024_vm5, %v2277_v28, %v4656_v35  ;;  %v2279_v28 = vsel %vm316_vm1, %v4207_v32, %v4717_v38 }
 0x2ca   : > { %v2448_v1 = vpop.f32.mrf.mxu3  ;;  %3308 = vmatmul.msk.f32.gmra.mxu0 %vm1024_vm5, %v2797_v41 }
 0x2cb   : > { %v2538_v43 = vadd.f32 %v2448_v1, %v1817_v20  ;;  %v4821_v56 = vpop.f32.mrf.mxu2  ;;  %2743 = vrot.lane.b32.xlu1 %v2657_v13, %s3374_s9  ;;  %v1613_v25 = vpop.f32.mrf.mxu1  ;;  %v1823_v20 = vadd.f32 %v4754_v18, %v1610_v58 }
 0x2cc   : > { %2739 = vrot.lane.b32.xlu2 %v2655_v59, %s3374_s9 }
 0x2cd   : > { %v4823_v8 = vpop.permute.xlu0 %2082  ;;  %v2574_v49 = vadd.f32 %v4749_v53, %v2538_v43  ;;  %v819_v52 = vpop.permute.xlu1 %818 }
 0x2ce   : > { %v4829_v17 = vpop.permute.xlu2 %2084  ;;  %v1017_v36 = vsel %vm316_vm1, %v665_v46, %v819_v52 }
 0x2cf   : > { %v2606_v7 = vmax.f32 %v2574_v49, 0.0  ;;  %3294 = vmatmul.msk.f32.gmra.mxu3 %vm1478_vm4, %v2308_v6  ;;  %v1050_v5 = vsel %vm1024_vm5, %v1017_v36, %v947_v26  ;;  %v2278_v49 = vsel %vm316_vm1, %v4189_v15, %v4715_v31  ;;  %v666_v6 = vld [vmem:[#allocation2 + $0x138] sm:$0xff]  ;;  %v1826_v31 = vadd.f32 %v4776_v10, %v1613_v25 }
 0x2d0   : > { %3264 = vmatmul.msk.f32.gmra.mxu2 %vm1478_vm4, %v1050_v5  ;;  %v2310_v18 = vsel %vm1024_vm5, %v2278_v49, %v4738_v11 }
 0x2d1   : > { %v2798_v22 = vsel %vm316_vm1, %v2606_v7, %v4676_v40 }
 0x2d2   : > { %v2451_v44 = vpop.f32.mrf.mxu3  ;;  %3309 = vmatmul.msk.f32.gmra.mxu0 %vm1024_vm5, %v2798_v22 }
 0x2d3   : > { %v2539_v23 = vadd.f32 %v2451_v44, %v1820_v27  ;;  %v4846_v34 = vpop.f32.mrf.mxu2  ;;  %v1616_v15 = vpop.f32.mrf.mxu1  ;;  %v667_v27 = vld [vmem:[#allocation2 + $0x140] sm:$0xff] }
 0x2d4   : > { %v1829_v32 = vadd.f32 %v4795_v54, %v1616_v15 }
 0x2d5   : > { %v821_v19 = vpop.permute.xlu0 %820  ;;  %v2575_v26 = vadd.f32 %v4749_v53, %v2539_v23  ;;  %v4849_v24 = vpop.permute.xlu1 %2210 }
 0x2d6   : > { %v823_v55 = vpop.permute.xlu2 %822 }
 0x2d7   : > { %v2607_v40 = vmax.f32 %v2575_v26, 0.0  ;;  %3295 = vmatmul.msk.f32.gmra.mxu3 %vm1478_vm4, %v2309_v14  ;;  %v1019_v44 = vsel %vm316_vm1, %v667_v27, %v823_v55  ;;  %v2659_v14 = vld [vmem:[%s3438_s8 + $0xc0] sm:$0xff]  ;;  %v3362_v55 = vld [vmem:[#allocation2 + $0x150] sm:$0xff] }
 0x2d8   : > { %2747 = vrot.lane.b32.xlu0 %v2659_v14, %s3374_s9  ;;  %v2280_v25 = vsel %vm316_vm1, %v3362_v55, %v4810_v42  ;;  %v3364_v14 = vld [vmem:[#allocation2 + $0x168] sm:$0xff] }
 0x2d9   : > { %v2799_v41 = vsel %vm316_vm1, %v2607_v40, %v4696_v21  ;;  %v1018_v21 = vsel %vm316_vm1, %v666_v6, %v821_v19  ;;  %v2311_v19 = vsel %vm1024_vm5, %v2279_v28, %v4758_v0  ;;  %v2312_v54 = vsel %vm1024_vm5, %v2280_v25, %v4761_v3  ;;  %v2660_v6 = vld [vmem:[%s3438_s8 + $0xc8] sm:$0xff] }
 0x2da   : > { %v2454_v1 = vpop.f32.mrf.mxu3  ;;  %3310 = vmatmul.msk.f32.gmra.mxu0 %vm1024_vm5, %v2799_v41  ;;  %2749 = vrot.lane.b32.xlu1 %v2660_v6, %s3374_s9 }
 0x2db   : > { %v2540_v43 = vadd.f32 %v2454_v1, %v1823_v20  ;;  %v4860_v4 = vpop.f32.mrf.mxu2  ;;  %v1619_v0 = vpop.f32.mrf.mxu1 }
 0x2dc   : > { %v1832_v42 = vadd.f32 %v4821_v56, %v1619_v0 }
 0x2dd   : > { %v4862_v35 = vpop.permute.xlu0 %2212  ;;  %v2576_v46 = vadd.f32 %v4749_v53, %v2540_v43  ;;  %v949_v52 = vpop.permute.xlu1 %948 }
 0x2de   : > { %v1051_v36 = vsel %vm1024_vm5, %v1018_v21, %v949_v52  ;;  %v4877_v5 = vpop.permute.xlu2 %2214 }
 0x2df   : > { %v2608_v7 = vmax.f32 %v2576_v46, 0.0  ;;  %3296 = vmatmul.msk.f32.gmra.mxu3 %vm1478_vm4, %v2310_v18  ;;  %3265 = vmatmul.msk.f32.gmra.mxu2 %vm1478_vm4, %v1051_v36 }
 0x2e1   : > { %v2800_v11 = vsel %vm316_vm1, %v2608_v7, %v4698_v30  ;;  %v3363_v7 = vld [vmem:[#allocation2 + $0x158] sm:$0xff] }
 0x2e2   : > { %v2457_v58 = vpop.f32.mrf.mxu3  ;;  %3311 = vmatmul.msk.f32.gmra.mxu0 %vm1024_vm5, %v2800_v11  ;;  %v2281_v36 = vsel %vm316_vm1, %v3363_v7, %v4823_v8  ;;  %v668_v11 = vld [vmem:[#allocation2 + $0x150] sm:$0xff] }
 0x2e3   : > { %v2541_v22 = vadd.f32 %v2457_v58, %v1826_v31  ;;  %v4890_v30 = vpop.f32.mrf.mxu2  ;;  %v1622_v3 = vpop.f32.mrf.mxu1  ;;  %v2313_v56 = vsel %vm1024_vm5, %v2281_v36, %v4849_v24  ;;  %v2658_v58 = vld [vmem:[%s3438_s8 + $0xb8] sm:$0xff] }
 0x2e4   : > { %2745 = vrot.lane.b32.xlu2 %v2658_v58, %s3374_s9 }
 0x2e5   : > { %v951_v60 = vpop.permute.xlu0 %950  ;;  %v2577_v23 = vadd.f32 %v4749_v53, %v2541_v22  ;;  %v4892_v26 = vpop.permute.xlu1 %2717 }
 0x2e6   : > { %v1052_v10 = vsel %vm1024_vm5, %v1019_v44, %v951_v60  ;;  %v953_v20 = vpop.permute.xlu2 %952  ;;  %v1835_v44 = vadd.f32 %v4846_v34, %v1622_v3 }
 0x2e7   : > { %v2609_v13 = vmax.f32 %v2577_v23, 0.0  ;;  %3297 = vmatmul.msk.f32.gmra.mxu3 %vm1478_vm4, %v2311_v19  ;;  %3266 = vmatmul.msk.f32.gmra.mxu2 %vm1478_vm4, %v1052_v10 }
 0x2e9   : > { %v2801_v38 = vsel %vm316_vm1, %v2609_v13, %v4783_v62  ;;  %v2282_v13 = vsel %vm316_vm1, %v3364_v14, %v4829_v17  ;;  %v4950_v17 = vld [vmem:[#allocation2 + $0x170] sm:$0xff] }
 0x2ea   : > { %v2460_v40 = vpop.f32.mrf.mxu3  ;;  %3312 = vmatmul.msk.f32.gmra.mxu0 %vm1024_vm5, %v2801_v38  ;;  %v2314_v34 = vsel %vm1024_vm5, %v2282_v13, %v4862_v35  ;;  %v1933_v13 = vld [vmem:[#allocation2 + $0x188] sm:$0xff] }
 0x2eb   : > { %v2542_v41 = vadd.f32 %v2460_v40, %v1829_v32  ;;  %v4912_v46 = vpop.f32.mrf.mxu2  ;;  %v1625_v19 = vpop.f32.mrf.mxu1  ;;  %v2662_v40 = vld [vmem:[%s3438_s8 + $0xd8] sm:$0xff] }
 0x2ec   : > { %2753 = vrot.lane.b32.xlu0 %v2662_v40, %s3374_s9  ;;  %v1838_v55 = vadd.f32 %v4860_v4, %v1625_v19 }
 0x2ed   : > { %v4904_v1 = vpop.permute.xlu0 %2719  ;;  %v2578_v43 = vadd.f32 %v4749_v53, %v2542_v41  ;;  %v2087_v49 = vpop.permute.xlu1 %2086 }
 0x2ee   : > { %v4922_v15 = vpop.permute.xlu2 %2721  ;;  %v2283_v35 = vsel %vm316_vm1, %v4950_v17, %v2087_v49 }
 0x2ef   : > { %v2610_v62 = vmax.f32 %v2578_v43, 0.0  ;;  %3298 = vmatmul.msk.f32.gmra.mxu3 %vm1478_vm4, %v2312_v54 }
 0x2f1   : > { %v2802_v18 = vsel %vm316_vm1, %v2610_v62, %v4797_v45  ;;  %v669_v62 = vld [vmem:[#allocation2 + $0x158] sm:$0xff] }
 0x2f2   : > { %v2463_v21 = vpop.f32.mrf.mxu3  ;;  %3313 = vmatmul.msk.f32.gmra.mxu0 %vm1024_vm5, %v2802_v18 }
 0x2f3   : > { %v2543_v52 = vadd.f32 %v2463_v21, %v1832_v42  ;;  %v4936_v60 = vpop.f32.mrf.mxu2  ;;  %v1628_v6 = vpop.f32.mrf.mxu1  ;;  %v2663_v21 = vld [vmem:[%s3438_s8 + $0xe0] sm:$0xff] }
 0x2f4   : > { %2755 = vrot.lane.b32.xlu1 %v2663_v21, %s3374_s9  ;;  %v1841_v49 = vadd.f32 %v4890_v30, %v1628_v6  ;;  %v2666_v21 = vld [vmem:[%s3438_s8 + $0xf8] sm:$0xff] }
 0x2f5   : > { %v4918_v59 = vpop.permute.xlu0 %2088  ;;  %v2579_v31 = vadd.f32 %v4749_v53, %v2543_v52  ;;  %v825_v45 = vpop.permute.xlu1 %824 }
 0x2f6   : > { %v1020_v22 = vsel %vm316_vm1, %v668_v11, %v825_v45  ;;  %v1932_v11 = vld [vmem:[#allocation2 + $0x180] sm:$0xff] }
 0x2f7   : > { %v2611_v27 = vmax.f32 %v2579_v31, 0.0  ;;  %3299 = vmatmul.msk.f32.gmra.mxu3 %vm1478_vm4, %v2313_v56  ;;  %v1053_v8 = vsel %vm1024_vm5, %v1020_v22, %v953_v20  ;;  %v2284_v22 = vsel %vm316_vm1, %v1932_v11, %v4918_v59 }
 0x2f8   : > { %3267 = vmatmul.msk.f32.gmra.mxu2 %vm1478_vm4, %v1053_v8 }
 0x2f9   : > { %v2803_v24 = vsel %vm316_vm1, %v2611_v27, %v4803_v47  ;;  %v2091_v47 = vpop.permute.xlu2 %2090 }
 0x2fa   : > { %v2466_v28 = vpop.f32.mrf.mxu3  ;;  %3314 = vmatmul.msk.f32.gmra.mxu0 %vm1024_vm5, %v2803_v24 }
 0x2fb   : > { %v2544_v23 = vadd.f32 %v2466_v28, %v1835_v44  ;;  %v4955_v43 = vpop.f32.mrf.mxu2  ;;  %v1631_v27 = vpop.f32.mrf.mxu1  ;;  %v2661_v28 = vld [vmem:[%s3438_s8 + $0xd0] sm:$0xff] }
 0x2fc   : > { %2751 = vrot.lane.b32.xlu2 %v2661_v28, %s3374_s9  ;;  %2761 = vrot.lane.b32.xlu1 %v2666_v21, %s3374_s9 }
 0x2fd   : > { %v827_v10 = vpop.permute.xlu0 %826  ;;  %v2580_v32 = vadd.f32 %v4749_v53, %v2544_v23  ;;  %v2217_v38 = vpop.permute.xlu1 %2216 }
 0x2fe   : > { %v1021_v4 = vsel %vm316_vm1, %v669_v62, %v827_v10  ;;  %v2316_v44 = vsel %vm1024_vm5, %v2284_v22, %v2217_v38  ;;  %v1844_v10 = vadd.f32 %v4912_v46, %v1631_v27 }
 0x2ff   : > { %v2612_v0 = vmax.f32 %v2580_v32, 0.0  ;;  %3300 = vmatmul.msk.f32.gmra.mxu3 %vm1478_vm4, %v2314_v34  ;;  %v2285_v34 = vsel %vm316_vm1, %v1933_v13, %v2091_v47 }
 0x301   : > { %v2804_v25 = vsel %vm316_vm1, %v2612_v0, %v4892_v26  ;;  %v2315_v26 = vsel %vm1024_vm5, %v2283_v35, %v4877_v5  ;;  %v829_v7 = vpop.permute.xlu2 %828  ;;  %v670_v5 = vld [vmem:[#allocation2 + $0x168] sm:$0xff]  ;;  %v1934_v35 = vld [vmem:[#allocation2 + $0x198] sm:$0xff] }
 0x302   : > { %v2469_v20 = vpop.f32.mrf.mxu3  ;;  %3315 = vmatmul.msk.f32.gmra.mxu0 %vm1024_vm5, %v2804_v25  ;;  %v1022_v45 = vsel %vm316_vm1, %v670_v5, %v829_v7  ;;  %v2665_v25 = vld [vmem:[%s3438_s8 + $0xf0] sm:$0xff] }
 0x303   : > { %v2545_v41 = vadd.f32 %v2469_v20, %v1838_v55  ;;  %v1634_v40 = vpop.f32.mrf.mxu1  ;;  %2759 = vrot.lane.b32.xlu0 %v2665_v25, %s3374_s9 }
 0x305   : > { %v2219_v54 = vpop.permute.xlu0 %2218  ;;  %v2581_v42 = vadd.f32 %v4749_v53, %v2545_v41  ;;  %v955_v18 = vpop.permute.xlu1 %954  ;;  %v1847_v41 = vadd.f32 %v4936_v60, %v1634_v40 }
 0x306   : > { %v1054_v3 = vsel %vm1024_vm5, %v1021_v4, %v955_v18  ;;  %v2317_v0 = vsel %vm1024_vm5, %v2285_v34, %v2219_v54 }
 0x307   : > { %v2613_v52 = vmax.f32 %v2581_v42, 0.0  ;;  %3301 = vmatmul.msk.f32.gmra.mxu3 %vm1478_vm4, %v2315_v26  ;;  %3268 = vmatmul.msk.f32.gmra.mxu2 %vm1478_vm4, %v1054_v3 }
 0x309   : > { %v2805_v36 = vsel %vm316_vm1, %v2613_v52, %v4904_v1  ;;  %v1852_v1 = vpop.f32.mrf.mxu2  ;;  %v2221_v32 = vpop.permute.xlu2 %2220 }
 0x30a   : > { %v2472_v31 = vpop.f32.mrf.mxu3  ;;  %3316 = vmatmul.msk.f32.gmra.mxu0 %vm1024_vm5, %v2805_v36 }
 0x30b   : > { %v2546_v56 = vadd.f32 %v2472_v31, %v1841_v49  ;;  %v1637_v60 = vpop.f32.mrf.mxu1  ;;  %v1935_v31 = vld [vmem:[#allocation2 + $0x1a0] sm:$0xff] }
 0x30c   : > { %v1850_v7 = vadd.f32 %v4955_v43, %v1637_v60 }
 0x30d   : > { %v957_v58 = vpop.permute.xlu0 %956  ;;  %v2582_v30 = vadd.f32 %v4749_v53, %v2546_v56  ;;  %v2724_v24 = vpop.permute.xlu1 %2723 }
 0x30e   : > { %v1055_v8 = vsel %vm1024_vm5, %v1022_v45, %v957_v58 }
 0x30f   : > { %v2614_v23 = vmax.f32 %v2582_v30, 0.0  ;;  %3302 = vmatmul.msk.f32.gmra.mxu3 %vm1478_vm4, %v2316_v44  ;;  %3269 = vmatmul.msk.f32.gmra.mxu2 %vm1478_vm4, %v1055_v8  ;;  %v2664_v30 = vld [vmem:[%s3438_s8 + $0xe8] sm:$0xff] }
 0x310   : > { %2757 = vrot.lane.b32.xlu2 %v2664_v30, %s3374_s9 }
 0x311   : > { %v2806_v59 = vsel %vm316_vm1, %v2614_v23, %v4922_v15  ;;  %v1855_v15 = vpop.f32.mrf.mxu2  ;;  %v959_v4 = vpop.permute.xlu2 %958 }
 0x312   : > { %v2475_v19 = vpop.f32.mrf.mxu3  ;;  %3317 = vmatmul.msk.f32.gmra.mxu0 %vm1024_vm5, %v2806_v59 }
 0x313   : > { %v2547_v14 = vadd.f32 %v2475_v19, %v1844_v10  ;;  %v1640_v44 = vpop.f32.mrf.mxu1 }
 0x315   : > { %v2583_v38 = vadd.f32 %v4749_v53, %v2547_v14  ;;  %v2093_v55 = vpop.permute.xlu1 %2092  ;;  %v2726_v46 = vpop.permute.xlu0 %2725 }
 0x316   : > { %v2286_v54 = vsel %vm316_vm1, %v1934_v35, %v2093_v55 }
 0x317   : > { %v2615_v20 = vmax.f32 %v2583_v38, 0.0  ;;  %3303 = vmatmul.msk.f32.gmra.mxu3 %vm1478_vm4, %v2317_v0  ;;  %v2318_v26 = vsel %vm1024_vm5, %v2286_v54, %v2221_v32  ;;  %v5020_v0 = vld [vmem:[%s5196_s6] ss:$0 sm:$0xff] }
 0x319   : > { %v2807_v47 = vsel %vm316_vm1, %v2615_v20, %v2724_v24  ;;  %v1858_v56 = vpop.f32.mrf.mxu2  ;;  %v2728_v22 = vpop.permute.xlu2 %2727  ;;  %v1853_v24 = vadd.f32 %v1852_v1, %v1640_v44 }
 0x31a   : > { %v2478_v6 = vpop.f32.mrf.mxu3  ;;  %3318 = vmatmul.msk.f32.gmra.mxu0 %vm1024_vm5, %v2807_v47 }
 0x31b   : > { %v2548_v62 = vadd.f32 %v2478_v6, %v1847_v41  ;;  %v1643_v32 = vpop.f32.mrf.mxu1 }
 0x31c   : > { %v1856_v34 = vadd.f32 %v1855_v15, %v1643_v32 }
 0x31d   : > { %v2584_v42 = vadd.f32 %v4749_v53, %v2548_v62  ;;  %v831_v18 = vpop.permute.xlu1 %830  ;;  %v2095_v5 = vpop.permute.xlu0 %2094 }
 0x31e   : > { %v1023_v3 = vsel %vm316_vm1, %v4950_v17, %v831_v18  ;;  %v2287_v45 = vsel %vm316_vm1, %v1935_v31, %v2095_v5 }
 0x31f   : > { %v2616_v52 = vmax.f32 %v2584_v42, 0.0  ;;  %3304 = vmatmul.msk.f32.gmra.mxu3 %vm1478_vm4, %v2318_v26  ;;  %v1056_v49 = vsel %vm1024_vm5, %v1023_v3, %v959_v4 }
 0x320   : > { %3270 = vmatmul.msk.f32.gmra.mxu2 %vm1478_vm4, %v1056_v49 }
 0x321   : > { %v2808_v36 = vsel %vm316_vm1, %v2616_v52, %v2726_v46  ;;  %v1861_v59 = vpop.f32.mrf.mxu2  ;;  %v2734_v18 = vpop.permute.xlu2 %2733 }
 0x322   : > { %v2481_v11 = vpop.f32.mrf.mxu3  ;;  %3319 = vmatmul.msk.f32.gmra.mxu0 %vm1024_vm5, %v2808_v36  ;;  %v1862_v60 = vadd.f32 %v1861_v59, %v4442_v51 }
 0x323   : > { %v2549_v17 = vadd.f32 %v2481_v11, %v1850_v7  ;;  %v1646_v41 = vpop.f32.mrf.mxu1 }
 0x324   : > { %v1859_v47 = vadd.f32 %v1858_v56, %v1646_v41 }
 0x325   : > { %v2585_v58 = vadd.f32 %v4749_v53, %v2549_v17  ;;  %v2223_v27 = vpop.permute.xlu1 %2222  ;;  %v2730_v14 = vpop.permute.xlu0 %2729 }
 0x326   : > { %v2319_v43 = vsel %vm1024_vm5, %v2287_v45, %v2223_v27 }
 0x327   : > { %v2617_v8 = vmax.f32 %v2585_v58, 0.0  ;;  %3305 = vmatmul.msk.f32.gmra.mxu3 %vm1478_vm4, %v2319_v43 }
 0x329   : > { %v2809_v28 = vsel %vm316_vm1, %v2617_v8, %v2728_v22  ;;  %v1864_v25 = vpop.f32.mrf.mxu2 }
 0x32a   : > { %v2484_v23 = vpop.f32.mrf.mxu3  ;;  %3320 = vmatmul.msk.f32.gmra.mxu0 %vm1024_vm5, %v2809_v28  ;;  %v1865_v58 = vadd.f32 %v1864_v25, %v4473_v50 }
 0x32b   : > { %v2550_v10 = vadd.f32 %v2484_v23, %v1853_v24 }
 0x32d   : > { %v2586_v19 = vadd.f32 %v4749_v53, %v2550_v10  ;;  %v2732_v20 = vpop.permute.xlu1 %2731  ;;  %v2736_v56 = vpop.permute.xlu0 %2735 }
 0x32f   : > { %v2618_v13 = vmax.f32 %v2586_v19, 0.0 }
 0x331   : > { %v2810_v38 = vsel %vm316_vm1, %v2618_v13, %v2730_v14  ;;  %v1867_v52 = vpop.f32.mrf.mxu2 }
 0x332   : > { %v2487_v40 = vpop.f32.mrf.mxu3  ;;  %3321 = vmatmul.msk.f32.gmra.mxu0 %vm1024_vm5, %v2810_v38  ;;  %v1868_v50 = vadd.f32 %v1867_v52, %v4498_v63 }
 0x333   : > { %v2551_v1 = vadd.f32 %v2487_v40, %v1856_v34  ;;  %v2740_v34 = vpop.permute.xlu2 %2739 }
 0x335   : > { %v2587_v55 = vadd.f32 %v4749_v53, %v2551_v1  ;;  %v2738_v44 = vpop.permute.xlu1 %2737 }
 0x337   : > { %v2619_v46 = vmax.f32 %v2587_v55, 0.0  ;;  %v2945_v35 = vpop.f32.mrf.mxu0 }
 0x338   : > { %v2946_v15 = vadd.f32 %v5020_v0, %v2945_v35 }
 0x339   : > { %v2811_v6 = vsel %vm316_vm1, %v2619_v46, %v2732_v20  ;;  %v1870_v27 = vpop.f32.mrf.mxu2 }
 0x33a   : > { %v3041_v54 = vmax.f32 %v2946_v15, 0.0  ;;  %v2490_v62 = vpop.f32.mrf.mxu3  ;;  %3322 = vmatmul.msk.f32.gmra.mxu0 %vm1024_vm5, %v2811_v6  ;;  %v1871_v63 = vadd.f32 %v1870_v27, %v4527_v57  ;;  %v2742_v15 = vpop.permute.xlu0 %2741 }
 0x33b   : > { %v2552_v42 = vadd.f32 %v2490_v62, %v1859_v47 }
 0x33c   : > { %3074 = vst.msk [vmem:[%s5029_s13] sm:$0xff] %vm3073_vm6, %v3041_v54 }
 0x33d   : > { %v2588_v4 = vadd.f32 %v4749_v53, %v2552_v42 }
 0x33f   : > { %v2620_v26 = vmax.f32 %v2588_v4, 0.0  ;;  %v2948_v21 = vpop.f32.mrf.mxu0 }
 0x340   : > { %v2949_v3 = vadd.f32 %v5020_v0, %v2948_v21  ;;  %v2744_v21 = vpop.permute.xlu1 %2743 }
 0x341   : > { %v2812_v49 = vsel %vm316_vm1, %v2620_v26, %v2734_v18  ;;  %v1873_v13 = vpop.f32.mrf.mxu2 }
 0x342   : > { %v3042_v7 = vmax.f32 %v2949_v3, 0.0  ;;  %v2493_v36 = vpop.f32.mrf.mxu3  ;;  %3323 = vmatmul.msk.f32.gmra.mxu0 %vm1024_vm5, %v2812_v49  ;;  %v1874_v57 = vadd.f32 %v1873_v13, %v4551_v61 }
 0x343   : > { %v2553_v31 = vadd.f32 %v2493_v36, %v1862_v60 }
 0x344   : > { %3075 = vst.msk [vmem:[%s5029_s13 + $0x8] sm:$0xff] %vm3073_vm6, %v3042_v7 }
 0x345   : > { %v2589_v5 = vadd.f32 %v4749_v53, %v2553_v31 }
 0x347   : > { %v2621_v11 = vmax.f32 %v2589_v5, 0.0  ;;  %v2951_v17 = vpop.f32.mrf.mxu0 }
 0x348   : > { %v2952_v45 = vadd.f32 %v5020_v0, %v2951_v17 }
 0x349   : > { %v2813_v51 = vsel %vm316_vm1, %v2621_v11, %v2736_v56  ;;  %v1876_v41 = vpop.f32.mrf.mxu2  ;;  %v2746_v11 = vpop.permute.xlu2 %2745 }
 0x34a   : > { %v3043_v22 = vmax.f32 %v2952_v45, 0.0  ;;  %v2496_v30 = vpop.f32.mrf.mxu3  ;;  %3324 = vmatmul.msk.f32.gmra.mxu0 %vm1024_vm5, %v2813_v51  ;;  %v1877_v61 = vadd.f32 %v1876_v41, %v4582_v12 }
 0x34b   : > { %v2554_v8 = vadd.f32 %v2496_v30, %v1865_v58 }
 0x34c   : > { %3076 = vst.msk [vmem:[%s5029_s13 + $0x10] sm:$0xff] %vm3073_vm6, %v3043_v22 }
 0x34d   : > { %v2590_v43 = vadd.f32 %v4749_v53, %v2554_v8 }
 0x34f   : > { %v2622_v24 = vmax.f32 %v2590_v43, 0.0  ;;  %v2954_v28 = vpop.f32.mrf.mxu0 }
 0x350   : > { %v2955_v23 = vadd.f32 %v5020_v0, %v2954_v28 }
 0x351   : > { %v2814_v10 = vsel %vm316_vm1, %v2622_v24, %v2738_v44  ;;  %v1879_v60 = vpop.f32.mrf.mxu2  ;;  %v2748_v44 = vpop.permute.xlu0 %2747 }
 0x352   : > { %v3044_v59 = vmax.f32 %v2955_v23, 0.0  ;;  %v2499_v19 = vpop.f32.mrf.mxu3  ;;  %3325 = vmatmul.msk.f32.gmra.mxu0 %vm1024_vm5, %v2814_v10  ;;  %v1880_v51 = vadd.f32 %v1879_v60, %v4607_v9 }
 0x353   : > { %v2555_v14 = vadd.f32 %v2499_v19, %v1868_v50 }
 0x354   : > { %3077 = vst.msk [vmem:[%s5029_s13 + $0x18] sm:$0xff] %vm3073_vm6, %v3044_v59 }
 0x355   : > { %v2591_v32 = vadd.f32 %v4749_v53, %v2555_v14 }
 0x357   : > { %v2623_v38 = vmax.f32 %v2591_v32, 0.0  ;;  %v2957_v40 = vpop.f32.mrf.mxu0  ;;  %v2750_v32 = vpop.permute.xlu1 %2749 }
 0x358   : > { %v2958_v1 = vadd.f32 %v5020_v0, %v2957_v40 }
 0x359   : > { %v2815_v55 = vsel %vm316_vm1, %v2623_v38, %v2740_v34  ;;  %v1882_v27 = vpop.f32.mrf.mxu2 }
 0x35a   : > { %v3045_v25 = vmax.f32 %v2958_v1, 0.0  ;;  %v2502_v20 = vpop.f32.mrf.mxu3  ;;  %3326 = vmatmul.msk.f32.gmra.mxu0 %vm1024_vm5, %v2815_v55  ;;  %v1883_v9 = vadd.f32 %v1882_v27, %v4631_v2 }
 0x35b   : > { %v2556_v46 = vadd.f32 %v2502_v20, %v1871_v63 }
 0x35c   : > { %3078 = vst.msk [vmem:[%s5029_s13 + $0x20] sm:$0xff] %vm3073_vm6, %v3045_v25 }
 0x35d   : > { %v2592_v35 = vadd.f32 %v4749_v53, %v2556_v46 }
 0x35f   : > { %v2624_v47 = vmax.f32 %v2592_v35, 0.0  ;;  %v2960_v6 = vpop.f32.mrf.mxu0  ;;  %v2752_v35 = vpop.permute.xlu2 %2751 }
 0x360   : > { %v2961_v54 = vadd.f32 %v5020_v0, %v2960_v6 }
 0x361   : > { %v2816_v62 = vsel %vm316_vm1, %v2624_v47, %v2742_v15 }
 0x362   : > { %v3046_v42 = vmax.f32 %v2961_v54, 0.0  ;;  %v2505_v4 = vpop.f32.mrf.mxu3  ;;  %3327 = vmatmul.msk.f32.gmra.mxu0 %vm1024_vm5, %v2816_v62  ;;  %v1885_v10 = vpop.f32.mrf.mxu2 }
 0x363   : > { %v2557_v18 = vadd.f32 %v2505_v4, %v1874_v57  ;;  %v1886_v2 = vadd.f32 %v1885_v10, %v4619_v29 }
 0x364   : > { %3079 = vst.msk [vmem:[%s5029_s13 + $0x28] sm:$0xff] %vm3073_vm6, %v3046_v42 }
 0x365   : > { %v2593_v26 = vadd.f32 %v4749_v53, %v2557_v18  ;;  %v2754_v18 = vpop.permute.xlu0 %2753 }
 0x367   : > { %v2625_v52 = vmax.f32 %v2593_v26, 0.0  ;;  %v2963_v3 = vpop.f32.mrf.mxu0 }
 0x368   : > { %v2964_v49 = vadd.f32 %v5020_v0, %v2963_v3 }
 0x369   : > { %v2817_v7 = vsel %vm316_vm1, %v2625_v52, %v2744_v21 }
 0x36a   : > { %v3047_v36 = vmax.f32 %v2964_v49, 0.0  ;;  %v2508_v31 = vpop.f32.mrf.mxu3  ;;  %3328 = vmatmul.msk.f32.gmra.mxu0 %vm1024_vm5, %v2817_v7  ;;  %v1888_v20 = vpop.f32.mrf.mxu2 }
 0x36b   : > { %v2558_v5 = vadd.f32 %v2508_v31, %v1877_v61  ;;  %v1889_v29 = vadd.f32 %v1888_v20, %v4646_v37  ;;  %v2756_v31 = vpop.permute.xlu1 %2755 }
 0x36c   : > { %3080 = vst.msk [vmem:[%s5029_s13 + $0x30] sm:$0xff] %vm3073_vm6, %v3047_v36 }
 0x36d   : > { %v2594_v56 = vadd.f32 %v4749_v53, %v2558_v5 }
 0x36f   : > { %v2626_v17 = vmax.f32 %v2594_v56, 0.0  ;;  %v2966_v45 = vpop.f32.mrf.mxu0 }
 0x370   : > { %v2967_v58 = vadd.f32 %v5020_v0, %v2966_v45 }
 0x371   : > { %v2818_v12 = vsel %vm316_vm1, %v2626_v17, %v2746_v11 }
 0x372   : > { %v3048_v22 = vmax.f32 %v2967_v58, 0.0  ;;  %v2511_v30 = vpop.f32.mrf.mxu3  ;;  %3329 = vmatmul.msk.f32.gmra.mxu0 %vm1024_vm5, %v2818_v12 }
 0x373   : > { %v2559_v8 = vadd.f32 %v2511_v30, %v1880_v51 }
 0x374   : > { %3081 = vst.msk [vmem:[%s5029_s13 + $0x38] sm:$0xff] %vm3073_vm6, %v3048_v22  ;;  %v2758_v22 = vpop.permute.xlu2 %2757 }
 0x375   : > { %v2595_v43 = vadd.f32 %v4749_v53, %v2559_v8 }
 0x377   : > { %v2627_v24 = vmax.f32 %v2595_v43, 0.0  ;;  %v2969_v28 = vpop.f32.mrf.mxu0 }
 0x378   : > { %v2970_v23 = vadd.f32 %v5020_v0, %v2969_v28 }
 0x379   : > { %v2819_v50 = vsel %vm316_vm1, %v2627_v24, %v2748_v44 }
 0x37a   : > { %v3049_v59 = vmax.f32 %v2970_v23, 0.0  ;;  %v2514_v19 = vpop.f32.mrf.mxu3  ;;  %3330 = vmatmul.msk.f32.gmra.mxu0 %vm1024_vm5, %v2819_v50  ;;  %v2760_v50 = vpop.permute.xlu0 %2759 }
 0x37b   : > { %v2560_v14 = vadd.f32 %v2514_v19, %v1883_v9  ;;  %v1891_v42 = vpop.f32.mrf.mxu2 }
 0x37c   : > { %3082 = vst.msk [vmem:[%s5029_s13 + $0x40] sm:$0xff] %vm3073_vm6, %v3049_v59  ;;  %v1892_v37 = vadd.f32 %v1891_v42, %v4667_v16 }
 0x37d   : > { %v2596_v13 = vadd.f32 %v4749_v53, %v2560_v14 }
 0x37f   : > { %v2628_v34 = vmax.f32 %v2596_v13, 0.0  ;;  %v2972_v38 = vpop.f32.mrf.mxu0 }
 0x380   : > { %v2973_v40 = vadd.f32 %v5020_v0, %v2972_v38 }
 0x381   : > { %v2820_v1 = vsel %vm316_vm1, %v2628_v34, %v2750_v32 }
 0x382   : > { %v3050_v63 = vmax.f32 %v2973_v40, 0.0  ;;  %v2517_v55 = vpop.f32.mrf.mxu3  ;;  %3331 = vmatmul.msk.f32.gmra.mxu0 %vm1024_vm5, %v2820_v1  ;;  %v2762_v1 = vpop.permute.xlu1 %2761 }
 0x383   : > { %v2561_v25 = vadd.f32 %v2517_v55, %v1886_v2 }
 0x384   : > { %3083 = vst.msk [vmem:[%s5029_s13 + $0x48] sm:$0xff] %vm3073_vm6, %v3050_v63 }
 0x385   : > { %v2597_v46 = vadd.f32 %v4749_v53, %v2561_v25 }
 0x387   : > { %v2629_v41 = vmax.f32 %v2597_v46, 0.0  ;;  %v2975_v15 = vpop.f32.mrf.mxu0 }
 0x388   : > { %v2976_v47 = vadd.f32 %v5020_v0, %v2975_v15 }
 0x389   : > { %v2821_v6 = vsel %vm316_vm1, %v2629_v41, %v2752_v35 }
 0x38a   : > { %v3051_v54 = vmax.f32 %v2976_v47, 0.0  ;;  %v2520_v57 = vpop.f32.mrf.mxu3  ;;  %3332 = vmatmul.msk.f32.gmra.mxu0 %vm1024_vm5, %v2821_v6  ;;  %v1894_v7 = vpop.f32.mrf.mxu2 }
 0x38b   : > { %v2562_v62 = vadd.f32 %v2520_v57, %v1889_v29  ;;  %v1895_v16 = vadd.f32 %v1894_v7, %v4687_v33 }
 0x38c   : > { %3084 = vst.msk [vmem:[%s5029_s13 + $0x50] sm:$0xff] %vm3073_vm6, %v3051_v54 }
 0x38d   : > { %v2598_v4 = vadd.f32 %v4749_v53, %v2562_v62 }
 0x38f   : > { %v2630_v26 = vmax.f32 %v2598_v4, 0.0  ;;  %v2978_v21 = vpop.f32.mrf.mxu0 }
 0x390   : > { %v2979_v52 = vadd.f32 %v5020_v0, %v2978_v21 }
 0x391   : > { %v2822_v3 = vsel %vm316_vm1, %v2630_v26, %v2754_v18 }
 0x392   : > { %v3052_v60 = vmax.f32 %v2979_v52, 0.0  ;;  %v2523_v49 = vpop.f32.mrf.mxu3  ;;  %3333 = vmatmul.msk.f32.gmra.mxu0 %vm1024_vm5, %v2822_v3  ;;  %v1897_v27 = vpop.f32.mrf.mxu2 }
 0x393   : > { %v2563_v61 = vadd.f32 %v2523_v49, %v1892_v37  ;;  %v1898_v33 = vadd.f32 %v1897_v27, %v4708_v48 }
 0x394   : > { %3085 = vst.msk [vmem:[%s5029_s13 + $0x58] sm:$0xff] %vm3073_vm6, %v3052_v60 }
 0x395   : > { %v2599_v36 = vadd.f32 %v4749_v53, %v2563_v61 }
 0x397   : > { %v2631_v5 = vmax.f32 %v2599_v36, 0.0  ;;  %v2981_v56 = vpop.f32.mrf.mxu0 }
 0x398   : > { %v2982_v11 = vadd.f32 %v5020_v0, %v2981_v56 }
 0x399   : > { %v2823_v17 = vsel %vm316_vm1, %v2631_v5, %v2756_v31 }
 0x39a   : > { %v3053_v45 = vmax.f32 %v2982_v11, 0.0  ;;  %v2526_v58 = vpop.f32.mrf.mxu3  ;;  %3334 = vmatmul.msk.f32.gmra.mxu0 %vm1024_vm5, %v2823_v17 }
 0x39b   : > { %v2564_v51 = vadd.f32 %v2526_v58, %v1895_v16 }
 0x39c   : > { %3086 = vst.msk [vmem:[%s5029_s13 + $0x60] sm:$0xff] %vm3073_vm6, %v3053_v45 }
 0x39d   : > { %v2600_v12 = vadd.f32 %v4749_v53, %v2564_v51 }
 0x39f   : > { %v2632_v30 = vmax.f32 %v2600_v12, 0.0  ;;  %v2984_v8 = vpop.f32.mrf.mxu0 }
 0x3a0   : > { %v2985_v43 = vadd.f32 %v5020_v0, %v2984_v8 }
 0x3a1   : > { %v2824_v44 = vsel %vm316_vm1, %v2632_v30, %v2758_v22 }
 0x3a2   : > { %v3054_v24 = vmax.f32 %v2985_v43, 0.0  ;;  %v2529_v28 = vpop.f32.mrf.mxu3  ;;  %3335 = vmatmul.msk.f32.gmra.mxu0 %vm1024_vm5, %v2824_v44 }
 0x3a3   : > { %v2565_v23 = vadd.f32 %v2529_v28, %v1898_v33  ;;  %v1900_v59 = vpop.f32.mrf.mxu2 }
 0x3a4   : > { %3087 = vst.msk [vmem:[%s5029_s13 + $0x68] sm:$0xff] %vm3073_vm6, %v3054_v24  ;;  %v1901_v13 = vadd.f32 %v1900_v59, %v4726_v39 }
 0x3a5   : > { %v2601_v9 = vadd.f32 %v4749_v53, %v2565_v23 }
 0x3a7   : > { %v2633_v10 = vmax.f32 %v2601_v9, 0.0  ;;  %v2987_v19 = vpop.f32.mrf.mxu0 }
 0x3a8   : > { %v2988_v14 = vadd.f32 %v5020_v0, %v2987_v19 }
 0x3a9   : > { %v2825_v48 = vsel %vm316_vm1, %v2633_v10, %v2760_v50 }
 0x3aa   : > { %v3055_v32 = vmax.f32 %v2988_v14, 0.0  ;;  %3336 = vmatmul.msk.f32.gmra.mxu0 %vm1024_vm5, %v2825_v48  ;;  %v2532_v34 = vpop.f32.mrf.mxu3 }
 0x3ab   : > { %v2566_v38 = vadd.f32 %v2532_v34, %v1901_v13 }
 0x3ac   : > { %3088 = vst.msk [vmem:[%s5029_s13 + $0x70] sm:$0xff] %vm3073_vm6, %v3055_v32 }
 0x3ad   : > { %v2602_v40 = vadd.f32 %v4749_v53, %v2566_v38 }
 0x3af   : > { %v2990_v2 = vpop.f32.mrf.mxu0  ;;  %v2634_v63 = vmax.f32 %v2602_v40, 0.0 }
 0x3b0   : > { %v2991_v55 = vadd.f32 %v5020_v0, %v2990_v2 }
 0x3b1   : > { %v2826_v39 = vsel %vm316_vm1, %v2634_v63, %v2762_v1 }
 0x3b2   : > { %v3056_v25 = vmax.f32 %v2991_v55, 0.0  ;;  %3337 = vmatmul.msk.f32.gmra.mxu0 %vm1024_vm5, %v2826_v39 }
 0x3b4   : > { %3089 = vst.msk [vmem:[%s5029_s13 + $0x78] sm:$0xff] %vm3073_vm6, %v3056_v25 }
 0x3b7   : > { %v2993_v20 = vpop.f32.mrf.mxu0 }
 0x3b8   : > { %v2994_v46 = vadd.f32 %v5020_v0, %v2993_v20 }
 0x3ba   : > { %v3057_v35 = vmax.f32 %v2994_v46, 0.0 }
 0x3bc   : > { %3090 = vst.msk [vmem:[%s5029_s13 + $0x80] sm:$0xff] %vm3073_vm6, %v3057_v35 }
 0x3bf   : > { %v2996_v53 = vpop.f32.mrf.mxu0 }
 0x3c0   : > { %v2997_v41 = vadd.f32 %v5020_v0, %v2996_v53 }
 0x3c2   : > { %v3058_v15 = vmax.f32 %v2997_v41, 0.0 }
 0x3c4   : > { %3091 = vst.msk [vmem:[%s5029_s13 + $0x88] sm:$0xff] %vm3073_vm6, %v3058_v15 }
 0x3c7   : > { %v2999_v47 = vpop.f32.mrf.mxu0 }
 0x3c8   : > { %v3000_v29 = vadd.f32 %v5020_v0, %v2999_v47 }
 0x3ca   : > { %v3059_v6 = vmax.f32 %v3000_v29, 0.0 }
 0x3cc   : > { %3092 = vst.msk [vmem:[%s5029_s13 + $0x90] sm:$0xff] %vm3073_vm6, %v3059_v6 }
 0x3cf   : > { %v3002_v54 = vpop.f32.mrf.mxu0 }
 0x3d0   : > { %v3003_v57 = vadd.f32 %v5020_v0, %v3002_v54 }
 0x3d2   : > { %v3060_v62 = vmax.f32 %v3003_v57, 0.0 }
 0x3d4   : > { %3093 = vst.msk [vmem:[%s5029_s13 + $0x98] sm:$0xff] %vm3073_vm6, %v3060_v62 }
 0x3d7   : > { %v3005_v42 = vpop.f32.mrf.mxu0 }
 0x3d8   : > { %v3006_v4 = vadd.f32 %v5020_v0, %v3005_v42 }
 0x3da   : > { %v3061_v18 = vmax.f32 %v3006_v4, 0.0 }
 0x3dc   : > { %3094 = vst.msk [vmem:[%s5029_s13 + $0xa0] sm:$0xff] %vm3073_vm6, %v3061_v18 }
 0x3df   : > { %v3008_v26 = vpop.f32.mrf.mxu0 }
 0x3e0   : > { %v3009_v21 = vadd.f32 %v5020_v0, %v3008_v26 }
 0x3e2   : > { %v3062_v52 = vmax.f32 %v3009_v21, 0.0 }
 0x3e4   : > { %3095 = vst.msk [vmem:[%s5029_s13 + $0xa8] sm:$0xff] %vm3073_vm6, %v3062_v52 }
 0x3e7   : > { %v3011_v37 = vpop.f32.mrf.mxu0 }
 0x3e8   : > { %v3012_v3 = vadd.f32 %v5020_v0, %v3011_v37 }
 0x3ea   : > { %v3063_v60 = vmax.f32 %v3012_v3, 0.0 }
 0x3ec   : > { %3096 = vst.msk [vmem:[%s5029_s13 + $0xb0] sm:$0xff] %vm3073_vm6, %v3063_v60 }
 0x3ef   : > { %v3014_v49 = vpop.f32.mrf.mxu0 }
 0x3f0   : > { %v3015_v61 = vadd.f32 %v5020_v0, %v3014_v49 }
 0x3f2   : > { %v3064_v7 = vmax.f32 %v3015_v61, 0.0 }
 0x3f4   : > { %3097 = vst.msk [vmem:[%s5029_s13 + $0xb8] sm:$0xff] %vm3073_vm6, %v3064_v7 }
 0x3f7   : > { %v3017_v36 = vpop.f32.mrf.mxu0 }
 0x3f8   : > { %v3018_v31 = vadd.f32 %v5020_v0, %v3017_v36 }
 0x3fa   : > { %v3065_v5 = vmax.f32 %v3018_v31, 0.0 }
 0x3fc   : > { %3098 = vst.msk [vmem:[%s5029_s13 + $0xc0] sm:$0xff] %vm3073_vm6, %v3065_v5 }
 0x3ff   : > { %v3020_v56 = vpop.f32.mrf.mxu0 }
 0x400   : > { %v3021_v11 = vadd.f32 %v5020_v0, %v3020_v56 }
 0x402   : > { %v3066_v16 = vmax.f32 %v3021_v11, 0.0 }
 0x404   : > { %3099 = vst.msk [vmem:[%s5029_s13 + $0xc8] sm:$0xff] %vm3073_vm6, %v3066_v16 }
 0x407   : > { %v3023_v17 = vpop.f32.mrf.mxu0 }
 0x408   : > { %v3024_v45 = vadd.f32 %v5020_v0, %v3023_v17 }
 0x40a   : > { %v3067_v58 = vmax.f32 %v3024_v45, 0.0 }
 0x40c   : > { %3100 = vst.msk [vmem:[%s5029_s13 + $0xd0] sm:$0xff] %vm3073_vm6, %v3067_v58 }
 0x40f   : > { %v3026_v51 = vpop.f32.mrf.mxu0 }
 0x410   : > { %v3027_v12 = vadd.f32 %v5020_v0, %v3026_v51 }
 0x412   : > { %v3068_v27 = vmax.f32 %v3027_v12, 0.0 }
 0x414   : > { %3101 = vst.msk [vmem:[%s5029_s13 + $0xd8] sm:$0xff] %vm3073_vm6, %v3068_v27 }
 0x417   : > { %v3029_v22 = vpop.f32.mrf.mxu0 }
 0x418   : > { %v3030_v30 = vadd.f32 %v5020_v0, %v3029_v22 }
 0x41a   : > { %v3069_v8 = vmax.f32 %v3030_v30, 0.0 }
 0x41c   : > { %3102 = vst.msk [vmem:[%s5029_s13 + $0xe0] sm:$0xff] %vm3073_vm6, %v3069_v8 }
 0x41f   : > { %v3032_v43 = vpop.f32.mrf.mxu0 }
 0x420   : > { %v3033_v33 = vadd.f32 %v5020_v0, %v3032_v43 }
 0x422   : > { %v3070_v44 = vmax.f32 %v3033_v33, 0.0 }
 0x424   : > { %3103 = vst.msk [vmem:[%s5029_s13 + $0xe8] sm:$0xff] %vm3073_vm6, %v3070_v44 }
 0x427   : > { %v3035_v24 = vpop.f32.mrf.mxu0 }
 0x428   : > { %v3036_v28 = vadd.f32 %v5020_v0, %v3035_v24 }
 0x42a   : > { %v3071_v23 = vmax.f32 %v3036_v28, 0.0 }
 0x42c   : > { %3104 = vst.msk [vmem:[%s5029_s13 + $0xf0] sm:$0xff] %vm3073_vm6, %v3071_v23 }
 0x42f   : > { %v3038_v9 = vpop.f32.mrf.mxu0 }
 0x430   : > { %v3039_v50 = vadd.f32 %v5020_v0, %v3038_v9 }
 0x432   : > { %v3072_v10 = vmax.f32 %v3039_v50, 0.0 }
 0x434   : > { %3105 = vst.msk [vmem:[%s5029_s13 + $0xf8] sm:$0xff] %vm3073_vm6, %v3072_v10 }
 0x435 PF: > { %s17_s24 = sadd.s32 1, %s3371_s24  }
 0x436   : > { %p14_p4 = scmp.ge.s32.totalorder %s17_s24, 4  }
 0x438   :  { %16 = sbr.rel (!%p14_p4) target bundleno = 1 (0x1), region = 83 }

</bundles_post_ra>
